<compile_context>
chip_gen: v7x
topology: tpu7x:2x2x1
jax: 0.10.0
libtpu: 0.0.40
codegen_flags: <defaults>
</compile_context>

<pallas_src>
import functools

import jax
import jax.numpy as jnp
from jax.experimental import pallas as pl
from jax.experimental.pallas import tpu as pltpu

EPS = 1e-5
_VMEM = pl.BlockSpec(memory_space=pltpu.MemorySpace.VMEM)

# (conv_k, conv_stride, conv_pad, pool_k, pool_stride, pool_pad) per stage.
CONV_CFG = (
    (7, 2, 3, 3, 2, 1),   # Conv(3->64, 7, s2, p3)    + MaxPool(3, 2, pad=1)
    (3, 2, 1, 2, 2, 0),   # Conv(64->128, 3, s2, p1)  + MaxPool(2, 2)
    (3, 2, 1, 2, 2, 0),   # Conv(128->256, 3, s2, p1) + MaxPool(2, 2)
    (3, 2, 1, 1, 1, 0),   # Conv(256->512, 3, s2, p1), no pool (KK = 1)
)


def _round_up(n, m):
    return ((n + m - 1) // m) * m


# ---------------------------------------------------------------------------
# Pallas kernels
# ---------------------------------------------------------------------------
def _conv_pool_kernel(cols_ref, w_ref, sh_ref, o_ref, acc_ref):
    """Fused conv (as matmul) + folded BN + ReLU + maxpool over the grid KK axis.

    cols_ref: (TM, Kp)   bf16  one pool-window's im2col columns (KK squeezed)
    w_ref:    (Kp, Cout) bf16  conv weights, BN scale folded in, K/Cout padded
    sh_ref:   (1, Cout)  f32   folded BN shift (conv bias folded in)
    o_ref:    (TM, Cout) bf16  pooled activation tile
    acc_ref:  (TM, Cout) f32   VMEM running-max accumulator
    """
    t = pl.program_id(1)
    y = jnp.dot(cols_ref[...], w_ref[...], preferred_element_type=jnp.float32)
    y = jnp.maximum(y + sh_ref[...], 0.0)          # f32 BN shift + ReLU epilogue

    @pl.when(t == 0)
    def _():
        acc_ref[...] = y

    @pl.when(t > 0)
    def _():
        acc_ref[...] = jnp.maximum(acc_ref[...], y)

    @pl.when(t == pl.num_programs(1) - 1)
    def _():
        o_ref[...] = acc_ref[...].astype(o_ref.dtype)


def conv_bn_relu_pool(cols, w, shift):
    """cols: (KK, M, Kp) bf16 -> (M, Cout) bf16 pooled activation."""
    kk, mp, kp = cols.shape
    cout = w.shape[1]

    tm = min(256, _round_up(mp, 8))              # tile <= 256, multiple of 8
    mp_pad = _round_up(mp, tm)
    if mp_pad > mp:                               # pad rows; sliced off below
        cols = jnp.pad(cols, ((0, 0), (0, mp_pad - mp), (0, 0)))

    grid = (mp_pad // tm, kk)                     # pool-window axis innermost
    out = pl.pallas_call(
        _conv_pool_kernel,
        out_shape=jax.ShapeDtypeStruct((mp_pad, cout), jnp.bfloat16),
        grid_spec=pltpu.PrefetchScalarGridSpec(
            num_scalar_prefetch=0,
            grid=grid,
            in_specs=[
                pl.BlockSpec((None, tm, kp), lambda i, t: (t, i, 0)),
                pl.BlockSpec((kp, cout), lambda i, t: (0, 0)),
                pl.BlockSpec((1, cout), lambda i, t: (0, 0)),
            ],
            out_specs=pl.BlockSpec((tm, cout), lambda i, t: (i, 0)),
            scratch_shapes=[pltpu.VMEM((tm, cout), jnp.float32)],
        ),
        compiler_params=pltpu.CompilerParams(
            dimension_semantics=("parallel", "arbitrary"),
        ),
    )(cols, w, shift)
    return out[:mp] if mp_pad > mp else out


def _head_kernel(cnn_ref, kp_ref,
                 w1_ref, b1_ref, w2_ref, b2_ref,
                 w3a_ref, w3b_ref, b3_ref,
                 w4_ref, b4_ref, w5_ref, b5_ref, o_ref):
    """Adaptive avg-pool + keypoint MLP + concat + fusion head, one kernel.

    All BatchNorm1d layers were folded into the following Linear's weight/bias
    at prepare time, so each layer is just dot + bias + ReLU.
    cnn_ref: (B, PQ, 512) bf16 stage-4 activation (spatial flattened).
    """
    # AdaptiveAvgPool2d((1,1)) + flatten
    cnn = jnp.mean(cnn_ref[...].astype(jnp.float32), axis=1)          # (B, 512)
    cnn = cnn.astype(jnp.bfloat16)

    # keypoint MLP (BN folded forward into the next weight)
    h = jnp.dot(kp_ref[...], w1_ref[...], preferred_element_type=jnp.float32)
    h = jnp.maximum(h + b1_ref[...], 0.0)
    h = jnp.dot(h.astype(jnp.bfloat16), w2_ref[...],
                preferred_element_type=jnp.float32)
    h = jnp.maximum(h + b2_ref[...], 0.0)

    # fusion[0]: concat([cnn, h], -1) @ W3 == cnn @ W3a + h @ W3b
    y = jnp.dot(cnn, w3a_ref[...], preferred_element_type=jnp.float32)
    y = y + jnp.dot(h.astype(jnp.bfloat16), w3b_ref[...],
                    preferred_element_type=jnp.float32)
    y = jnp.maximum(y + b3_ref[...], 0.0)

    # fusion[1]
    y = jnp.dot(y.astype(jnp.bfloat16), w4_ref[...],
                preferred_element_type=jnp.float32)
    y = jnp.maximum(y + b4_ref[...], 0.0)

    # final classifier (output lanes padded to 128; sliced outside)
    out = jnp.dot(y.astype(jnp.bfloat16), w5_ref[...],
                  preferred_element_type=jnp.float32) + b5_ref[...]
    o_ref[...] = out


def fused_head(cnn_3d, kp, hp):
    b = cnn_3d.shape[0]
    nout = hp["w5"].shape[1]
    args = (cnn_3d, kp,
            hp["w1"], hp["b1"], hp["w2"], hp["b2"],
            hp["w3a"], hp["w3b"], hp["b3"],
            hp["w4"], hp["b4"], hp["w5"], hp["b5"])
    return pl.pallas_call(
        _head_kernel,
        out_shape=jax.ShapeDtypeStruct((b, nout), jnp.float32),
        in_specs=[_VMEM] * len(args),
        out_specs=_VMEM,
    )(*args)


# ---------------------------------------------------------------------------
# Glue: im2col + pool-window expansion (XLA ops, outside the kernels)
# ---------------------------------------------------------------------------
def _build_pooled_cols(x_nhwc, k, stride, pad, pk, ps, pp, kpad):
    """Returns cols (pk*pk, B*Po*Qo, kpad) bf16 with K order (kh, kw, cin),
    plus (B, Po, Qo).  Pool padding is realized by edge-replicating the conv
    activation rows: the duplicated value lies inside the same pool window, so
    the max is unchanged (equivalent to -inf padding)."""
    assert pp < pk, "edge-replicate pool padding only valid for pool_pad < pool_k"

    xp = jnp.pad(x_nhwc, ((0, 0), (pad, pad), (pad, pad), (0, 0)))
    b, hp, wp, cin = xp.shape
    ho = (hp - k) // stride + 1
    wo = (wp - k) // stride + 1

    # standard conv im2col, element order (kh, kw, cin)
    slices = []
    for i in range(k):
        for j in range(k):
            slices.append(
                xp[:, i: i + stride * (ho - 1) + 1: stride,
                      j: j + stride * (wo - 1) + 1: stride, :])
    patches = jnp.concatenate(slices, axis=-1)        # (B, Ho, Wo, k*k*Cin)

    # pool-window expansion: edge-replicate pad + static strided slices
    po = (ho + 2 * pp - pk) // ps + 1
    qo = (wo + 2 * pp - pk) // ps + 1
    kdim = k * k * cin
    if pp > 0:
        patches = jnp.pad(patches, ((0, 0), (pp, pp), (pp, pp), (0, 0)),
                          mode="edge")
    cols = []
    for u in range(pk):
        for v in range(pk):
            win = patches[:, u: u + ps * (po - 1) + 1: ps,
                             v: v + ps * (qo - 1) + 1: ps, :]
            cols.append(win.reshape(b * po * qo, kdim))
    cols = jnp.stack(cols, axis=0)                    # (pk*pk, M, kdim)
    if kpad > kdim:
        cols = jnp.pad(cols, ((0, 0), (0, 0), (0, kpad - kdim)))
    return cols.astype(jnp.bfloat16), (b, po, qo)


# ---------------------------------------------------------------------------
# Parameters: synthetic init + one-time kernel-native preparation (hoisted)
# ---------------------------------------------------------------------------
def init_params(key, num_classes=4, keypoint_dim=36):
    keys = iter(jax.random.split(key, 32))

    def nrm(shape, s=0.05):
        return s * jax.random.normal(next(keys), shape, jnp.float32)

    def bn(n):
        return (jnp.ones((n,), jnp.float32), jnp.zeros((n,), jnp.float32),
                jnp.zeros((n,), jnp.float32), jnp.ones((n,), jnp.float32))

    def conv_p(cout, cin, k):
        return (nrm((cout, cin, k, k)), nrm((cout,))) + bn(cout)

    def lin_bn_p(cout, cin):
        return (nrm((cout, cin)), nrm((cout,))) + bn(cout)

    return {
        "conv": [conv_p(64, 3, 7), conv_p(128, 64, 3),
                 conv_p(256, 128, 3), conv_p(512, 256, 3)],
        "mlp": [lin_bn_p(256, keypoint_dim), lin_bn_p(128, 256)],
        "fusion": [lin_bn_p(256, 512 + 128), lin_bn_p(128, 256),
                   (nrm((num_classes, 128)), nrm((num_classes,)))],
    }


def prepare_params(params):
    """One-time relayout + BN folding into kernel-native bf16/f32 operands."""
    prep = {"conv": [], "head": {}}

    # ---- conv stages: fold BN scale into weights, pad cin / K / cout --------
    cin_pad = 3                                    # image channels, no pad
    for (w, b, gamma, beta, rmean, rvar) in params["conv"]:
        cout, cin, k, _ = w.shape
        cout_pad = _round_up(cout, 128)            # lane-dense output channels
        scale = gamma / jnp.sqrt(rvar + EPS)
        shift = beta + scale * (b - rmean)         # conv bias folded into shift
        wt = jnp.transpose(w, (2, 3, 1, 0)) * scale        # (kh,kw,cin,cout) f32
        if cin_pad > cin:
            wt = jnp.pad(wt, ((0, 0), (0, 0), (0, cin_pad - cin), (0, 0)))
        kdim = k * k * cin_pad
        kpad = _round_up(kdim, 128)
        wm = wt.reshape(kdim, cout)
        wm = jnp.pad(wm, ((0, kpad - kdim), (0, cout_pad - cout)))
        shift = jnp.pad(shift, (0, cout_pad - cout))
        prep["conv"].append({
            "w": wm.astype(jnp.bfloat16),
            "shift": shift.reshape(1, cout_pad).astype(jnp.float32),
        })
        cin_pad = cout_pad                         # next stage sees padded channels

    # ---- head: fold each BatchNorm1d into the next Linear (f32, cast once) --
    def lin_bn_raw(p, in_pad=None):
        w, b, gamma, beta, rmean, rvar = p         # w: (out, in) PyTorch layout
        wt = w.T.astype(jnp.float32)               # (in, out)
        if in_pad is not None and in_pad > wt.shape[0]:
            wt = jnp.pad(wt, ((0, in_pad - wt.shape[0]), (0, 0)))
        scale = gamma / jnp.sqrt(rvar + EPS)
        shift = beta - scale * rmean
        return wt, b.astype(jnp.float32), scale, shift

    w1, b1, s1, t1 = lin_bn_raw(params["mlp"][0], in_pad=128)
    w2, b2, s2, t2 = lin_bn_raw(params["mlp"][1])
    w3, b3, s3, t3 = lin_bn_raw(params["fusion"][0])
    w4, b4, s4, t4 = lin_bn_raw(params["fusion"][1])
    w5_raw, b5_raw = params["fusion"][2]
    w5 = w5_raw.T.astype(jnp.float32)              # (128, num_classes)
    b5 = b5_raw.astype(jnp.float32)

    cnn_dim = params["conv"][-1][0].shape[0]       # 512

    w2f, b2f = s1[:, None] * w2, b2 + t1 @ w2                       # BN1 -> W2
    w3a = w3[:cnn_dim]
    w3b, b3f = s2[:, None] * w3[cnn_dim:], b3 + t2 @ w3[cnn_dim:]   # BN2 -> W3b
    w4f, b4f = s3[:, None] * w4, b4 + t3 @ w4                       # BN3 -> W4
    w5f, b5f = s4[:, None] * w5, b5 + t4 @ w5                       # BN4 -> W5

    ncls = w5f.shape[1]
    npad = _round_up(ncls, 128)                    # lane-dense classifier output
    w5f = jnp.pad(w5f, ((0, 0), (0, npad - ncls)))
    b5f = jnp.pad(b5f, (0, npad - ncls))

    def bf16(x):
        return x.astype(jnp.bfloat16)

    def row(x):
        return x.reshape(1, -1).astype(jnp.float32)

    h = prep["head"]
    h["w1"], h["b1"] = bf16(w1), row(b1)
    h["w2"], h["b2"] = bf16(w2f), row(b2f)
    h["w3a"], h["w3b"], h["b3"] = bf16(w3a), bf16(w3b), row(b3f)
    h["w4"], h["b4"] = bf16(w4f), row(b4f)
    h["w5"], h["b5"] = bf16(w5f), row(b5f)
    return prep


# ---------------------------------------------------------------------------
# Forward pass (matches HybridCNN.forward, eval mode)
# ---------------------------------------------------------------------------
@functools.partial(jax.jit, static_argnames=("num_classes",))
def hybrid_cnn_forward(prep, image_nchw, keypoints, *, num_classes=4):
    x = jnp.transpose(image_nchw, (0, 2, 3, 1)).astype(jnp.bfloat16)  # NCHW->NHWC

    n_stages = len(CONV_CFG)
    for si, (cp, (k, s, p, pk, ps, pp)) in enumerate(zip(prep["conv"], CONV_CFG)):
        kpad, cout = cp["w"].shape
        cols, (b, po, qo) = _build_pooled_cols(x, k, s, p, pk, ps, pp, kpad)
        y = conv_bn_relu_pool(cols, cp["w"], cp["shift"])   # (B*Po*Qo, Cout)
        if si + 1 < n_stages:
            x = y.reshape(b, po, qo, cout)
        else:
            x = y.reshape(b, po * qo, cout)   # feed head directly; mean in-kernel

    hp = prep["head"]
    kp_pad = hp["w1"].shape[0]
    kp = jnp.pad(keypoints.astype(jnp.float32),
                 ((0, 0), (0, kp_pad - keypoints.shape[1])))

    logits = fused_head(x, kp.astype(jnp.bfloat16), hp)
    return logits[:, :num_classes]


# ---------------------------------------------------------------------------
if __name__ == "__main__":
    key = jax.random.PRNGKey(0)
    k_img, k_kp, k_par = jax.random.split(key, 3)

    B, H, W = 2, 64, 64          # 64x64 image survives the 4 stride-2 convs + pools
    image = jax.random.normal(k_img, (B, 3, H, W), jnp.float32)   # NCHW like PyTorch
    keypoints = jax.random.normal(k_kp, (B, 36), jnp.float32)

    params = init_params(k_par, num_classes=4, keypoint_dim=36)
    prep = prepare_params(params)    # hoisted relayout / BN folding (one time)

    out = hybrid_cnn_forward(prep, image, keypoints, num_classes=4)
    out = jax.block_until_ready(out)
    assert out.shape == (B, 4), out.shape
    assert bool(jnp.all(jnp.isfinite(out)))
    print("KERNEL_OK")
</pallas_src>

<mosaic_0001>
module attributes {stable_mosaic.version = 11 : i64} {
  func.func @_conv_pool_kernel(%arg0: i32, %arg1: i32, %arg2: memref<1x256x256xbf16, #tpu.memory_space<vmem>>, %arg3: memref<256x128xbf16, #tpu.memory_space<vmem>>, %arg4: memref<1x128xf32, #tpu.memory_space<vmem>>, %arg5: memref<256x128xbf16, #tpu.memory_space<vmem>>, %arg6: memref<256x128xf32, #tpu.memory_space<vmem>>) attributes {dimension_semantics = [#tpu.dimension_semantics<parallel>, #tpu.dimension_semantics<arbitrary>], iteration_bounds = array<i64: 2, 9>, scalar_prefetch = 0 : i64, scratch_operands = 1 : i64, tpu.core_type = #tpu.core_type<tc>, window_params = [{transform_indices = @transform_0, window_bounds = array<i64: 1, 256, 256>}, {pipeline_mode = #tpu.pipeline_mode<synchronous>, transform_indices = @transform_1, window_bounds = array<i64: 256, 128>}, {pipeline_mode = #tpu.pipeline_mode<synchronous>, transform_indices = @transform_2, window_bounds = array<i64: 1, 128>}, {transform_indices = @transform_3, window_bounds = array<i64: 256, 128>}]} {
    %c0 = arith.constant 0 : index
    %c0_0 = arith.constant 0 : index
    %c0_1 = arith.constant 0 : index
    %0 = vector.load %arg2[%c0, %c0_0, %c0_1] : memref<1x256x256xbf16, #tpu.memory_space<vmem>>, vector<1x256x256xbf16>
    %1 = vector.shape_cast %0 : vector<1x256x256xbf16> to vector<256x256xbf16>
    %c0_2 = arith.constant 0 : index
    %c0_3 = arith.constant 0 : index
    %2 = vector.load %arg3[%c0_2, %c0_3] : memref<256x128xbf16, #tpu.memory_space<vmem>>, vector<256x128xbf16>
    %cst = arith.constant dense<0.000000e+00> : vector<256x128xf32>
    %3 = tpu.matmul %1, %2, %cst {dimension_numbers = #tpu.dot_dimension_numbers<[1], [0], [0], [1], [0, 0, 1, 1], [], []>} : vector<256x256xbf16>, vector<256x128xbf16>, vector<256x128xf32> -> vector<256x128xf32>
    %c0_4 = arith.constant 0 : index
    %c0_5 = arith.constant 0 : index
    %4 = vector.load %arg4[%c0_4, %c0_5] : memref<1x128xf32, #tpu.memory_space<vmem>>, vector<1x128xf32>
    %5 = vector.broadcast %4 : vector<1x128xf32> to vector<256x128xf32>
    %6 = arith.addf %3, %5 : vector<256x128xf32>
    %cst_6 = arith.constant 0.000000e+00 : f32
    %7 = vector.broadcast %cst_6 : f32 to vector<256x128xf32>
    %8 = arith.maximumf %6, %7 : vector<256x128xf32>
    %c0_i32 = arith.constant 0 : i32
    %9 = arith.cmpi eq, %arg1, %c0_i32 : i32
    %10 = arith.extui %9 : i1 to i32
    %c0_i32_7 = arith.constant 0 : i32
    %11 = arith.cmpi ne, %10, %c0_i32_7 : i32
    scf.if %11 {
      %c0_11 = arith.constant 0 : index
      %c0_12 = arith.constant 0 : index
      %18 = vector.load %arg6[%c0_11, %c0_12] : memref<256x128xf32, #tpu.memory_space<vmem>>, vector<256x128xf32>
      tpu.vector_store %arg6[%c0_11, %c0_12], %8 {strides = array<i32>} : memref<256x128xf32, #tpu.memory_space<vmem>>, vector<256x128xf32>,
    } else {
    }
    %c0_i32_8 = arith.constant 0 : i32
    %12 = arith.cmpi sgt, %arg1, %c0_i32_8 : i32
    %13 = arith.extui %12 : i1 to i32
    %c0_i32_9 = arith.constant 0 : i32
    %14 = arith.cmpi ne, %13, %c0_i32_9 : i32
    scf.if %14 {
      %c0_11 = arith.constant 0 : index
      %c0_12 = arith.constant 0 : index
      %18 = vector.load %arg6[%c0_11, %c0_12] : memref<256x128xf32, #tpu.memory_space<vmem>>, vector<256x128xf32>
      %19 = arith.maximumf %18, %8 : vector<256x128xf32>
      %c0_13 = arith.constant 0 : index
      %c0_14 = arith.constant 0 : index
      %20 = vector.load %arg6[%c0_13, %c0_14] : memref<256x128xf32, #tpu.memory_space<vmem>>, vector<256x128xf32>
      tpu.vector_store %arg6[%c0_13, %c0_14], %19 {strides = array<i32>} : memref<256x128xf32, #tpu.memory_space<vmem>>, vector<256x128xf32>,
    } else {
    }
    %c8_i32 = arith.constant 8 : i32
    %15 = arith.cmpi eq, %arg1, %c8_i32 : i32
    %16 = arith.extui %15 : i1 to i32
    %c0_i32_10 = arith.constant 0 : i32
    %17 = arith.cmpi ne, %16, %c0_i32_10 : i32
    scf.if %17 {
      %c0_11 = arith.constant 0 : index
      %c0_12 = arith.constant 0 : index
      %18 = vector.load %arg6[%c0_11, %c0_12] : memref<256x128xf32, #tpu.memory_space<vmem>>, vector<256x128xf32>
      %19 = arith.truncf %18 : vector<256x128xf32> to vector<256x128xbf16>
      %c0_13 = arith.constant 0 : index
      %c0_14 = arith.constant 0 : index
      %20 = vector.load %arg5[%c0_13, %c0_14] : memref<256x128xbf16, #tpu.memory_space<vmem>>, vector<256x128xbf16>
      tpu.vector_store %arg5[%c0_13, %c0_14], %19 {strides = array<i32>} : memref<256x128xbf16, #tpu.memory_space<vmem>>, vector<256x128xbf16>,
    } else {
    }
    return
  }
  func.func @transform_0(%arg0: i32, %arg1: i32) -> (i32, i32, i32) {
    %c0_i32 = arith.constant 0 : i32
    %c0_i32_0 = arith.constant 0 : i32
    return %arg1, %arg0, %c0_i32 : i32, i32, i32
  }
  func.func @transform_1(%arg0: i32, %arg1: i32) -> (i32, i32) {
    %c0_i32 = arith.constant 0 : i32
    %c0_i32_0 = arith.constant 0 : i32
    %c0_i32_1 = arith.constant 0 : i32
    return %c0_i32, %c0_i32_0 : i32, i32
  }
  func.func @transform_2(%arg0: i32, %arg1: i32) -> (i32, i32) {
    %c0_i32 = arith.constant 0 : i32
    %c0_i32_0 = arith.constant 0 : i32
    %c0_i32_1 = arith.constant 0 : i32
    return %c0_i32, %c0_i32_0 : i32, i32
  }
  func.func @transform_3(%arg0: i32, %arg1: i32) -> (i32, i32) {
    %c0_i32 = arith.constant 0 : i32
    %c0_i32_0 = arith.constant 0 : i32
    return %arg0, %c0_i32 : i32, i32
  }
}

module attributes {stable_mosaic.version = 11 : i64} {
  func.func @_conv_pool_kernel(%arg0: i32, %arg1: i32, %arg2: memref<1x32x1152xbf16, #tpu.memory_space<vmem>>, %arg3: memref<1152x128xbf16, #tpu.memory_space<vmem>>, %arg4: memref<1x128xf32, #tpu.memory_space<vmem>>, %arg5: memref<32x128xbf16, #tpu.memory_space<vmem>>, %arg6: memref<32x128xf32, #tpu.memory_space<vmem>>) attributes {dimension_semantics = [#tpu.dimension_semantics<parallel>, #tpu.dimension_semantics<arbitrary>], iteration_bounds = array<i64: 1, 4>, scalar_prefetch = 0 : i64, scratch_operands = 1 : i64, tpu.core_type = #tpu.core_type<tc>, window_params = [{transform_indices = @transform_0, window_bounds = array<i64: 1, 32, 1152>}, {pipeline_mode = #tpu.pipeline_mode<synchronous>, transform_indices = @transform_1, window_bounds = array<i64: 1152, 128>}, {pipeline_mode = #tpu.pipeline_mode<synchronous>, transform_indices = @transform_2, window_bounds = array<i64: 1, 128>}, {transform_indices = @transform_3, window_bounds = array<i64: 32, 128>}]} {
    %c0 = arith.constant 0 : index
    %c0_0 = arith.constant 0 : index
    %c0_1 = arith.constant 0 : index
    %0 = vector.load %arg2[%c0, %c0_0, %c0_1] : memref<1x32x1152xbf16, #tpu.memory_space<vmem>>, vector<1x32x1152xbf16>
    %1 = vector.shape_cast %0 : vector<1x32x1152xbf16> to vector<32x1152xbf16>
    %c0_2 = arith.constant 0 : index
    %c0_3 = arith.constant 0 : index
    %2 = vector.load %arg3[%c0_2, %c0_3] : memref<1152x128xbf16, #tpu.memory_space<vmem>>, vector<1152x128xbf16>
    %cst = arith.constant dense<0.000000e+00> : vector<32x128xf32>
    %3 = tpu.matmul %1, %2, %cst {dimension_numbers = #tpu.dot_dimension_numbers<[1], [0], [0], [1], [0, 0, 1, 1], [], []>} : vector<32x1152xbf16>, vector<1152x128xbf16>, vector<32x128xf32> -> vector<32x128xf32>
    %c0_4 = arith.constant 0 : index
    %c0_5 = arith.constant 0 : index
    %4 = vector.load %arg4[%c0_4, %c0_5] : memref<1x128xf32, #tpu.memory_space<vmem>>, vector<1x128xf32>
    %5 = vector.broadcast %4 : vector<1x128xf32> to vector<32x128xf32>
    %6 = arith.addf %3, %5 : vector<32x128xf32>
    %cst_6 = arith.constant 0.000000e+00 : f32
    %7 = vector.broadcast %cst_6 : f32 to vector<32x128xf32>
    %8 = arith.maximumf %6, %7 : vector<32x128xf32>
    %c0_i32 = arith.constant 0 : i32
    %9 = arith.cmpi eq, %arg1, %c0_i32 : i32
    %10 = arith.extui %9 : i1 to i32
    %c0_i32_7 = arith.constant 0 : i32
    %11 = arith.cmpi ne, %10, %c0_i32_7 : i32
    scf.if %11 {
      %c0_11 = arith.constant 0 : index
      %c0_12 = arith.constant 0 : index
      %18 = vector.load %arg6[%c0_11, %c0_12] : memref<32x128xf32, #tpu.memory_space<vmem>>, vector<32x128xf32>
      tpu.vector_store %arg6[%c0_11, %c0_12], %8 {strides = array<i32>} : memref<32x128xf32, #tpu.memory_space<vmem>>, vector<32x128xf32>,
    } else {
    }
    %c0_i32_8 = arith.constant 0 : i32
    %12 = arith.cmpi sgt, %arg1, %c0_i32_8 : i32
    %13 = arith.extui %12 : i1 to i32
    %c0_i32_9 = arith.constant 0 : i32
    %14 = arith.cmpi ne, %13, %c0_i32_9 : i32
    scf.if %14 {
      %c0_11 = arith.constant 0 : index
      %c0_12 = arith.constant 0 : index
      %18 = vector.load %arg6[%c0_11, %c0_12] : memref<32x128xf32, #tpu.memory_space<vmem>>, vector<32x128xf32>
      %19 = arith.maximumf %18, %8 : vector<32x128xf32>
      %c0_13 = arith.constant 0 : index
      %c0_14 = arith.constant 0 : index
      %20 = vector.load %arg6[%c0_13, %c0_14] : memref<32x128xf32, #tpu.memory_space<vmem>>, vector<32x128xf32>
      tpu.vector_store %arg6[%c0_13, %c0_14], %19 {strides = array<i32>} : memref<32x128xf32, #tpu.memory_space<vmem>>, vector<32x128xf32>,
    } else {
    }
    %c3_i32 = arith.constant 3 : i32
    %15 = arith.cmpi eq, %arg1, %c3_i32 : i32
    %16 = arith.extui %15 : i1 to i32
    %c0_i32_10 = arith.constant 0 : i32
    %17 = arith.cmpi ne, %16, %c0_i32_10 : i32
    scf.if %17 {
      %c0_11 = arith.constant 0 : index
      %c0_12 = arith.constant 0 : index
      %18 = vector.load %arg6[%c0_11, %c0_12] : memref<32x128xf32, #tpu.memory_space<vmem>>, vector<32x128xf32>
      %19 = arith.truncf %18 : vector<32x128xf32> to vector<32x128xbf16>
      %c0_13 = arith.constant 0 : index
      %c0_14 = arith.constant 0 : index
      %20 = vector.load %arg5[%c0_13, %c0_14] : memref<32x128xbf16, #tpu.memory_space<vmem>>, vector<32x128xbf16>
      tpu.vector_store %arg5[%c0_13, %c0_14], %19 {strides = array<i32>} : memref<32x128xbf16, #tpu.memory_space<vmem>>, vector<32x128xbf16>,
    } else {
    }
    return
  }
  func.func @transform_0(%arg0: i32, %arg1: i32) -> (i32, i32, i32) {
    %c0_i32 = arith.constant 0 : i32
    %c0_i32_0 = arith.constant 0 : i32
    return %arg1, %arg0, %c0_i32 : i32, i32, i32
  }
  func.func @transform_1(%arg0: i32, %arg1: i32) -> (i32, i32) {
    %c0_i32 = arith.constant 0 : i32
    %c0_i32_0 = arith.constant 0 : i32
    %c0_i32_1 = arith.constant 0 : i32
    return %c0_i32, %c0_i32_0 : i32, i32
  }
  func.func @transform_2(%arg0: i32, %arg1: i32) -> (i32, i32) {
    %c0_i32 = arith.constant 0 : i32
    %c0_i32_0 = arith.constant 0 : i32
    %c0_i32_1 = arith.constant 0 : i32
    return %c0_i32, %c0_i32_0 : i32, i32
  }
  func.func @transform_3(%arg0: i32, %arg1: i32) -> (i32, i32) {
    %c0_i32 = arith.constant 0 : i32
    %c0_i32_0 = arith.constant 0 : i32
    return %arg0, %c0_i32 : i32, i32
  }
}

module attributes {stable_mosaic.version = 11 : i64} {
  func.func @_conv_pool_kernel(%arg0: i32, %arg1: i32, %arg2: memref<1x8x1152xbf16, #tpu.memory_space<vmem>>, %arg3: memref<1152x256xbf16, #tpu.memory_space<vmem>>, %arg4: memref<1x256xf32, #tpu.memory_space<vmem>>, %arg5: memref<8x256xbf16, #tpu.memory_space<vmem>>, %arg6: memref<8x256xf32, #tpu.memory_space<vmem>>) attributes {dimension_semantics = [#tpu.dimension_semantics<parallel>, #tpu.dimension_semantics<arbitrary>], iteration_bounds = array<i64: 1, 4>, scalar_prefetch = 0 : i64, scratch_operands = 1 : i64, tpu.core_type = #tpu.core_type<tc>, window_params = [{transform_indices = @transform_0, window_bounds = array<i64: 1, 8, 1152>}, {pipeline_mode = #tpu.pipeline_mode<synchronous>, transform_indices = @transform_1, window_bounds = array<i64: 1152, 256>}, {pipeline_mode = #tpu.pipeline_mode<synchronous>, transform_indices = @transform_2, window_bounds = array<i64: 1, 256>}, {transform_indices = @transform_3, window_bounds = array<i64: 8, 256>}]} {
    %c0 = arith.constant 0 : index
    %c0_0 = arith.constant 0 : index
    %c0_1 = arith.constant 0 : index
    %0 = vector.load %arg2[%c0, %c0_0, %c0_1] : memref<1x8x1152xbf16, #tpu.memory_space<vmem>>, vector<1x8x1152xbf16>
    %1 = vector.shape_cast %0 : vector<1x8x1152xbf16> to vector<8x1152xbf16>
    %c0_2 = arith.constant 0 : index
    %c0_3 = arith.constant 0 : index
    %2 = vector.load %arg3[%c0_2, %c0_3] : memref<1152x256xbf16, #tpu.memory_space<vmem>>, vector<1152x256xbf16>
    %cst = arith.constant dense<0.000000e+00> : vector<8x256xf32>
    %3 = tpu.matmul %1, %2, %cst {dimension_numbers = #tpu.dot_dimension_numbers<[1], [0], [0], [1], [0, 0, 1, 1], [], []>} : vector<8x1152xbf16>, vector<1152x256xbf16>, vector<8x256xf32> -> vector<8x256xf32>
    %c0_4 = arith.constant 0 : index
    %c0_5 = arith.constant 0 : index
    %4 = vector.load %arg4[%c0_4, %c0_5] : memref<1x256xf32, #tpu.memory_space<vmem>>, vector<1x256xf32>
    %5 = vector.broadcast %4 : vector<1x256xf32> to vector<8x256xf32>
    %6 = arith.addf %3, %5 : vector<8x256xf32>
    %cst_6 = arith.constant 0.000000e+00 : f32
    %7 = vector.broadcast %cst_6 : f32 to vector<8x256xf32>
    %8 = arith.maximumf %6, %7 : vector<8x256xf32>
    %c0_i32 = arith.constant 0 : i32
    %9 = arith.cmpi eq, %arg1, %c0_i32 : i32
    %10 = arith.extui %9 : i1 to i32
    %c0_i32_7 = arith.constant 0 : i32
    %11 = arith.cmpi ne, %10, %c0_i32_7 : i32
    scf.if %11 {
      %c0_11 = arith.constant 0 : index
      %c0_12 = arith.constant 0 : index
      %18 = vector.load %arg6[%c0_11, %c0_12] : memref<8x256xf32, #tpu.memory_space<vmem>>, vector<8x256xf32>
      tpu.vector_store %arg6[%c0_11, %c0_12], %8 {strides = array<i32>} : memref<8x256xf32, #tpu.memory_space<vmem>>, vector<8x256xf32>,
    } else {
    }
    %c0_i32_8 = arith.constant 0 : i32
    %12 = arith.cmpi sgt, %arg1, %c0_i32_8 : i32
    %13 = arith.extui %12 : i1 to i32
    %c0_i32_9 = arith.constant 0 : i32
    %14 = arith.cmpi ne, %13, %c0_i32_9 : i32
    scf.if %14 {
      %c0_11 = arith.constant 0 : index
      %c0_12 = arith.constant 0 : index
      %18 = vector.load %arg6[%c0_11, %c0_12] : memref<8x256xf32, #tpu.memory_space<vmem>>, vector<8x256xf32>
      %19 = arith.maximumf %18, %8 : vector<8x256xf32>
      %c0_13 = arith.constant 0 : index
      %c0_14 = arith.constant 0 : index
      %20 = vector.load %arg6[%c0_13, %c0_14] : memref<8x256xf32, #tpu.memory_space<vmem>>, vector<8x256xf32>
      tpu.vector_store %arg6[%c0_13, %c0_14], %19 {strides = array<i32>} : memref<8x256xf32, #tpu.memory_space<vmem>>, vector<8x256xf32>,
    } else {
    }
    %c3_i32 = arith.constant 3 : i32
    %15 = arith.cmpi eq, %arg1, %c3_i32 : i32
    %16 = arith.extui %15 : i1 to i32
    %c0_i32_10 = arith.constant 0 : i32
    %17 = arith.cmpi ne, %16, %c0_i32_10 : i32
    scf.if %17 {
      %c0_11 = arith.constant 0 : index
      %c0_12 = arith.constant 0 : index
      %18 = vector.load %arg6[%c0_11, %c0_12] : memref<8x256xf32, #tpu.memory_space<vmem>>, vector<8x256xf32>
      %19 = arith.truncf %18 : vector<8x256xf32> to vector<8x256xbf16>
      %c0_13 = arith.constant 0 : index
      %c0_14 = arith.constant 0 : index
      %20 = vector.load %arg5[%c0_13, %c0_14] : memref<8x256xbf16, #tpu.memory_space<vmem>>, vector<8x256xbf16>
      tpu.vector_store %arg5[%c0_13, %c0_14], %19 {strides = array<i32>} : memref<8x256xbf16, #tpu.memory_space<vmem>>, vector<8x256xbf16>,
    } else {
    }
    return
  }
  func.func @transform_0(%arg0: i32, %arg1: i32) -> (i32, i32, i32) {
    %c0_i32 = arith.constant 0 : i32
    %c0_i32_0 = arith.constant 0 : i32
    return %arg1, %arg0, %c0_i32 : i32, i32, i32
  }
  func.func @transform_1(%arg0: i32, %arg1: i32) -> (i32, i32) {
    %c0_i32 = arith.constant 0 : i32
    %c0_i32_0 = arith.constant 0 : i32
    %c0_i32_1 = arith.constant 0 : i32
    return %c0_i32, %c0_i32_0 : i32, i32
  }
  func.func @transform_2(%arg0: i32, %arg1: i32) -> (i32, i32) {
    %c0_i32 = arith.constant 0 : i32
    %c0_i32_0 = arith.constant 0 : i32
    %c0_i32_1 = arith.constant 0 : i32
    return %c0_i32, %c0_i32_0 : i32, i32
  }
  func.func @transform_3(%arg0: i32, %arg1: i32) -> (i32, i32) {
    %c0_i32 = arith.constant 0 : i32
    %c0_i32_0 = arith.constant 0 : i32
    return %arg0, %c0_i32 : i32, i32
  }
}

module attributes {stable_mosaic.version = 11 : i64} {
  func.func @_conv_pool_kernel(%arg0: i32, %arg1: i32, %arg2: memref<1x8x2304xbf16, #tpu.memory_space<vmem>>, %arg3: memref<2304x512xbf16, #tpu.memory_space<vmem>>, %arg4: memref<1x512xf32, #tpu.memory_space<vmem>>, %arg5: memref<8x512xbf16, #tpu.memory_space<vmem>>, %arg6: memref<8x512xf32, #tpu.memory_space<vmem>>) attributes {dimension_semantics = [#tpu.dimension_semantics<parallel>, #tpu.dimension_semantics<arbitrary>], iteration_bounds = array<i64: 1, 1>, scalar_prefetch = 0 : i64, scratch_operands = 1 : i64, tpu.core_type = #tpu.core_type<tc>, window_params = [{transform_indices = @transform_0, window_bounds = array<i64: 1, 8, 2304>}, {pipeline_mode = #tpu.pipeline_mode<synchronous>, transform_indices = @transform_1, window_bounds = array<i64: 2304, 512>}, {pipeline_mode = #tpu.pipeline_mode<synchronous>, transform_indices = @transform_2, window_bounds = array<i64: 1, 512>}, {transform_indices = @transform_3, window_bounds = array<i64: 8, 512>}]} {
    %c0 = arith.constant 0 : index
    %c0_0 = arith.constant 0 : index
    %c0_1 = arith.constant 0 : index
    %0 = vector.load %arg2[%c0, %c0_0, %c0_1] : memref<1x8x2304xbf16, #tpu.memory_space<vmem>>, vector<1x8x2304xbf16>
    %1 = vector.shape_cast %0 : vector<1x8x2304xbf16> to vector<8x2304xbf16>
    %c0_2 = arith.constant 0 : index
    %c0_3 = arith.constant 0 : index
    %2 = vector.load %arg3[%c0_2, %c0_3] : memref<2304x512xbf16, #tpu.memory_space<vmem>>, vector<2304x512xbf16>
    %cst = arith.constant dense<0.000000e+00> : vector<8x512xf32>
    %3 = tpu.matmul %1, %2, %cst {dimension_numbers = #tpu.dot_dimension_numbers<[1], [0], [0], [1], [0, 0, 1, 1], [], []>} : vector<8x2304xbf16>, vector<2304x512xbf16>, vector<8x512xf32> -> vector<8x512xf32>
    %c0_4 = arith.constant 0 : index
    %c0_5 = arith.constant 0 : index
    %4 = vector.load %arg4[%c0_4, %c0_5] : memref<1x512xf32, #tpu.memory_space<vmem>>, vector<1x512xf32>
    %5 = vector.broadcast %4 : vector<1x512xf32> to vector<8x512xf32>
    %6 = arith.addf %3, %5 : vector<8x512xf32>
    %cst_6 = arith.constant 0.000000e+00 : f32
    %7 = vector.broadcast %cst_6 : f32 to vector<8x512xf32>
    %8 = arith.maximumf %6, %7 : vector<8x512xf32>
    %c0_i32 = arith.constant 0 : i32
    %9 = arith.cmpi eq, %arg1, %c0_i32 : i32
    %10 = arith.extui %9 : i1 to i32
    %c0_i32_7 = arith.constant 0 : i32
    %11 = arith.cmpi ne, %10, %c0_i32_7 : i32
    scf.if %11 {
      %c0_12 = arith.constant 0 : index
      %c0_13 = arith.constant 0 : index
      %18 = vector.load %arg6[%c0_12, %c0_13] : memref<8x512xf32, #tpu.memory_space<vmem>>, vector<8x512xf32>
      tpu.vector_store %arg6[%c0_12, %c0_13], %8 {strides = array<i32>} : memref<8x512xf32, #tpu.memory_space<vmem>>, vector<8x512xf32>,
    } else {
    }
    %c0_i32_8 = arith.constant 0 : i32
    %12 = arith.cmpi sgt, %arg1, %c0_i32_8 : i32
    %13 = arith.extui %12 : i1 to i32
    %c0_i32_9 = arith.constant 0 : i32
    %14 = arith.cmpi ne, %13, %c0_i32_9 : i32
    scf.if %14 {
      %c0_12 = arith.constant 0 : index
      %c0_13 = arith.constant 0 : index
      %18 = vector.load %arg6[%c0_12, %c0_13] : memref<8x512xf32, #tpu.memory_space<vmem>>, vector<8x512xf32>
      %19 = arith.maximumf %18, %8 : vector<8x512xf32>
      %c0_14 = arith.constant 0 : index
      %c0_15 = arith.constant 0 : index
      %20 = vector.load %arg6[%c0_14, %c0_15] : memref<8x512xf32, #tpu.memory_space<vmem>>, vector<8x512xf32>
      tpu.vector_store %arg6[%c0_14, %c0_15], %19 {strides = array<i32>} : memref<8x512xf32, #tpu.memory_space<vmem>>, vector<8x512xf32>,
    } else {
    }
    %c0_i32_10 = arith.constant 0 : i32
    %15 = arith.cmpi eq, %arg1, %c0_i32_10 : i32
    %16 = arith.extui %15 : i1 to i32
    %c0_i32_11 = arith.constant 0 : i32
    %17 = arith.cmpi ne, %16, %c0_i32_11 : i32
    scf.if %17 {
      %c0_12 = arith.constant 0 : index
      %c0_13 = arith.constant 0 : index
      %18 = vector.load %arg6[%c0_12, %c0_13] : memref<8x512xf32, #tpu.memory_space<vmem>>, vector<8x512xf32>
      %19 = arith.truncf %18 : vector<8x512xf32> to vector<8x512xbf16>
      %c0_14 = arith.constant 0 : index
      %c0_15 = arith.constant 0 : index
      %20 = vector.load %arg5[%c0_14, %c0_15] : memref<8x512xbf16, #tpu.memory_space<vmem>>, vector<8x512xbf16>
      tpu.vector_store %arg5[%c0_14, %c0_15], %19 {strides = array<i32>} : memref<8x512xbf16, #tpu.memory_space<vmem>>, vector<8x512xbf16>,
    } else {
    }
    return
  }
  func.func @transform_0(%arg0: i32, %arg1: i32) -> (i32, i32, i32) {
    %c0_i32 = arith.constant 0 : i32
    %c0_i32_0 = arith.constant 0 : i32
    return %arg1, %arg0, %c0_i32 : i32, i32, i32
  }
  func.func @transform_1(%arg0: i32, %arg1: i32) -> (i32, i32) {
    %c0_i32 = arith.constant 0 : i32
    %c0_i32_0 = arith.constant 0 : i32
    %c0_i32_1 = arith.constant 0 : i32
    return %c0_i32, %c0_i32_0 : i32, i32
  }
  func.func @transform_2(%arg0: i32, %arg1: i32) -> (i32, i32) {
    %c0_i32 = arith.constant 0 : i32
    %c0_i32_0 = arith.constant 0 : i32
    %c0_i32_1 = arith.constant 0 : i32
    return %c0_i32, %c0_i32_0 : i32, i32
  }
  func.func @transform_3(%arg0: i32, %arg1: i32) -> (i32, i32) {
    %c0_i32 = arith.constant 0 : i32
    %c0_i32_0 = arith.constant 0 : i32
    return %arg0, %c0_i32 : i32, i32
  }
}

module attributes {stable_mosaic.version = 11 : i64} {
  func.func @_head_kernel(%arg0: memref<2x1x512xbf16, #tpu.memory_space<vmem>>, %arg1: memref<2x128xbf16, #tpu.memory_space<vmem>>, %arg2: memref<128x256xbf16, #tpu.memory_space<vmem>>, %arg3: memref<1x256xf32, #tpu.memory_space<vmem>>, %arg4: memref<256x128xbf16, #tpu.memory_space<vmem>>, %arg5: memref<1x128xf32, #tpu.memory_space<vmem>>, %arg6: memref<512x256xbf16, #tpu.memory_space<vmem>>, %arg7: memref<128x256xbf16, #tpu.memory_space<vmem>>, %arg8: memref<1x256xf32, #tpu.memory_space<vmem>>, %arg9: memref<256x128xbf16, #tpu.memory_space<vmem>>, %arg10: memref<1x128xf32, #tpu.memory_space<vmem>>, %arg11: memref<128x128xbf16, #tpu.memory_space<vmem>>, %arg12: memref<1x128xf32, #tpu.memory_space<vmem>>, %arg13: memref<2x128xf32, #tpu.memory_space<vmem>>) attributes {dimension_semantics = [], scalar_prefetch = 0 : i64, scratch_operands = 0 : i64, tpu.core_type = #tpu.core_type<tc>} {
    %c0 = arith.constant 0 : index
    %c0_0 = arith.constant 0 : index
    %c0_1 = arith.constant 0 : index
    %0 = vector.load %arg0[%c0, %c0_0, %c0_1] : memref<2x1x512xbf16, #tpu.memory_space<vmem>>, vector<2x1x512xbf16>
    %1 = arith.extf %0 : vector<2x1x512xbf16> to vector<2x1x512xf32>
    %cst = arith.constant dense<0.000000e+00> : vector<2x512xf32>
    %2 = vector.multi_reduction <add>, %1, %cst [1] : vector<2x1x512xf32> to vector<2x512xf32>
    %cst_2 = arith.constant 1.000000e+00 : f32
    %3 = vector.broadcast %cst_2 : f32 to vector<2x512xf32>
    %4 = arith.divf %2, %3 : vector<2x512xf32>
    %5 = arith.truncf %4 : vector<2x512xf32> to vector<2x512xbf16>
    %c0_3 = arith.constant 0 : index
    %c0_4 = arith.constant 0 : index
    %6 = vector.load %arg1[%c0_3, %c0_4] : memref<2x128xbf16, #tpu.memory_space<vmem>>, vector<2x128xbf16>
    %c0_5 = arith.constant 0 : index
    %c0_6 = arith.constant 0 : index
    %7 = vector.load %arg2[%c0_5, %c0_6] : memref<128x256xbf16, #tpu.memory_space<vmem>>, vector<128x256xbf16>
    %cst_7 = arith.constant dense<0.000000e+00> : vector<2x256xf32>
    %8 = tpu.matmul %6, %7, %cst_7 {dimension_numbers = #tpu.dot_dimension_numbers<[1], [0], [0], [1], [0, 0, 1, 1], [], []>} : vector<2x128xbf16>, vector<128x256xbf16>, vector<2x256xf32> -> vector<2x256xf32>
    %c0_8 = arith.constant 0 : index
    %c0_9 = arith.constant 0 : index
    %9 = vector.load %arg3[%c0_8, %c0_9] : memref<1x256xf32, #tpu.memory_space<vmem>>, vector<1x256xf32>
    %10 = vector.broadcast %9 : vector<1x256xf32> to vector<2x256xf32>
    %11 = arith.addf %8, %10 : vector<2x256xf32>
    %cst_10 = arith.constant 0.000000e+00 : f32
    %12 = vector.broadcast %cst_10 : f32 to vector<2x256xf32>
    %13 = arith.maximumf %11, %12 : vector<2x256xf32>
    %14 = arith.truncf %13 : vector<2x256xf32> to vector<2x256xbf16>
    %c0_11 = arith.constant 0 : index
    %c0_12 = arith.constant 0 : index
    %15 = vector.load %arg4[%c0_11, %c0_12] : memref<256x128xbf16, #tpu.memory_space<vmem>>, vector<256x128xbf16>
    %cst_13 = arith.constant dense<0.000000e+00> : vector<2x128xf32>
    %16 = tpu.matmul %14, %15, %cst_13 {dimension_numbers = #tpu.dot_dimension_numbers<[1], [0], [0], [1], [0, 0, 1, 1], [], []>} : vector<2x256xbf16>, vector<256x128xbf16>, vector<2x128xf32> -> vector<2x128xf32>
    %c0_14 = arith.constant 0 : index
    %c0_15 = arith.constant 0 : index
    %17 = vector.load %arg5[%c0_14, %c0_15] : memref<1x128xf32, #tpu.memory_space<vmem>>, vector<1x128xf32>
    %18 = vector.broadcast %17 : vector<1x128xf32> to vector<2x128xf32>
    %19 = arith.addf %16, %18 : vector<2x128xf32>
    %cst_16 = arith.constant 0.000000e+00 : f32
    %20 = vector.broadcast %cst_16 : f32 to vector<2x128xf32>
    %21 = arith.maximumf %19, %20 : vector<2x128xf32>
    %c0_17 = arith.constant 0 : index
    %c0_18 = arith.constant 0 : index
    %22 = vector.load %arg6[%c0_17, %c0_18] : memref<512x256xbf16, #tpu.memory_space<vmem>>, vector<512x256xbf16>
    %cst_19 = arith.constant dense<0.000000e+00> : vector<2x256xf32>
    %23 = tpu.matmul %5, %22, %cst_19 {dimension_numbers = #tpu.dot_dimension_numbers<[1], [0], [0], [1], [0, 0, 1, 1], [], []>} : vector<2x512xbf16>, vector<512x256xbf16>, vector<2x256xf32> -> vector<2x256xf32>
    %24 = arith.truncf %21 : vector<2x128xf32> to vector<2x128xbf16>
    %c0_20 = arith.constant 0 : index
    %c0_21 = arith.constant 0 : index
    %25 = vector.load %arg7[%c0_20, %c0_21] : memref<128x256xbf16, #tpu.memory_space<vmem>>, vector<128x256xbf16>
    %cst_22 = arith.constant dense<0.000000e+00> : vector<2x256xf32>
    %26 = tpu.matmul %24, %25, %cst_22 {dimension_numbers = #tpu.dot_dimension_numbers<[1], [0], [0], [1], [0, 0, 1, 1], [], []>} : vector<2x128xbf16>, vector<128x256xbf16>, vector<2x256xf32> -> vector<2x256xf32>
    %27 = arith.addf %23, %26 : vector<2x256xf32>
    %c0_23 = arith.constant 0 : index
    %c0_24 = arith.constant 0 : index
    %28 = vector.load %arg8[%c0_23, %c0_24] : memref<1x256xf32, #tpu.memory_space<vmem>>, vector<1x256xf32>
    %29 = vector.broadcast %28 : vector<1x256xf32> to vector<2x256xf32>
    %30 = arith.addf %27, %29 : vector<2x256xf32>
    %cst_25 = arith.constant 0.000000e+00 : f32
    %31 = vector.broadcast %cst_25 : f32 to vector<2x256xf32>
    %32 = arith.maximumf %30, %31 : vector<2x256xf32>
    %33 = arith.truncf %32 : vector<2x256xf32> to vector<2x256xbf16>
    %c0_26 = arith.constant 0 : index
    %c0_27 = arith.constant 0 : index
    %34 = vector.load %arg9[%c0_26, %c0_27] : memref<256x128xbf16, #tpu.memory_space<vmem>>, vector<256x128xbf16>
    %cst_28 = arith.constant dense<0.000000e+00> : vector<2x128xf32>
    %35 = tpu.matmul %33, %34, %cst_28 {dimension_numbers = #tpu.dot_dimension_numbers<[1], [0], [0], [1], [0, 0, 1, 1], [], []>} : vector<2x256xbf16>, vector<256x128xbf16>, vector<2x128xf32> -> vector<2x128xf32>
    %c0_29 = arith.constant 0 : index
    %c0_30 = arith.constant 0 : index
    %36 = vector.load %arg10[%c0_29, %c0_30] : memref<1x128xf32, #tpu.memory_space<vmem>>, vector<1x128xf32>
    %37 = vector.broadcast %36 : vector<1x128xf32> to vector<2x128xf32>
    %38 = arith.addf %35, %37 : vector<2x128xf32>
    %cst_31 = arith.constant 0.000000e+00 : f32
    %39 = vector.broadcast %cst_31 : f32 to vector<2x128xf32>
    %40 = arith.maximumf %38, %39 : vector<2x128xf32>
    %41 = arith.truncf %40 : vector<2x128xf32> to vector<2x128xbf16>
    %c0_32 = arith.constant 0 : index
    %c0_33 = arith.constant 0 : index
    %42 = vector.load %arg11[%c0_32, %c0_33] : memref<128x128xbf16, #tpu.memory_space<vmem>>, vector<128x128xbf16>
    %cst_34 = arith.constant dense<0.000000e+00> : vector<2x128xf32>
    %43 = tpu.matmul %41, %42, %cst_34 {dimension_numbers = #tpu.dot_dimension_numbers<[1], [0], [0], [1], [0, 0, 1, 1], [], []>} : vector<2x128xbf16>, vector<128x128xbf16>, vector<2x128xf32> -> vector<2x128xf32>
    %c0_35 = arith.constant 0 : index
    %c0_36 = arith.constant 0 : index
    %44 = vector.load %arg12[%c0_35, %c0_36] : memref<1x128xf32, #tpu.memory_space<vmem>>, vector<1x128xf32>
    %45 = vector.broadcast %44 : vector<1x128xf32> to vector<2x128xf32>
    %46 = arith.addf %43, %45 : vector<2x128xf32>
    %c0_37 = arith.constant 0 : index
    %c0_38 = arith.constant 0 : index
    %47 = vector.load %arg13[%c0_37, %c0_38] : memref<2x128xf32, #tpu.memory_space<vmem>>, vector<2x128xf32>
    tpu.vector_store %arg13[%c0_37, %c0_38], %46 {strides = array<i32>} : memref<2x128xf32, #tpu.memory_space<vmem>>, vector<2x128xf32>,
    return
  }
}

</mosaic_0001>

<bundles_post_ra>
// kernel: hybrid_cnn_forward.5
= control target key start
LH: loop header
LB: loop body
LE: loop exit
PB: predicated region body
PF: predicated region fallthrough
CT: control target
= control target key end

     0   :  { %s1649_s12 = smov 0   ;;  %s1651_s13 = smov 0   ;;  %s2071_s0 = inlined_call_operand.vmem [shape: bf16[9,512,256], index: 0, kind: input, shape index: {}]   ;;  %s2072_s1 = inlined_call_operand.vmem [shape: bf16[256,128], index: 1, kind: input, shape index: {}]   ;;  %s2073_s2 = inlined_call_operand.vmem [shape: f32[1,128], index: 2, kind: input, shape index: {}]   ;;  %s2074_s3 = inlined_call_operand.vmem [shape: bf16[512,128], index: 3, kind: output, shape index: {}]  }
   0x1   :  { %s1653_s14 = smov 0   ;;  %s1655_s15 = smov 0  }
   0x2   :  { %s1657_s16 = smov 0  }
   0x3 LB: > { %s22_s17 = sadd.s32 1, %s1619_s14  ;;  %s25_s18 = sadd.s32 1, %s1623_s15  ;;  %s1627_s16 = sphi %s1657_s16, %s13_s16   ;;  %s1623_s15 = sphi %s1655_s15, %s2102_s15   ;;  %s1619_s14 = sphi %s1653_s14, %s2101_s14   ;;  %s1615_s13 = sphi %s1651_s13, %s2100_s13   ;;  %s1611_s12 = sphi %s1649_s12, %s2099_s12  }
   0x4   : > { %p23_p0 = scmp.ge.s32.totalorder %s22_s17, 9  ;;  %p1137_p1 = scmp.ge.s32.totalorder %s1627_s16, 1 }
   0x5   : > { %p157_p2 = scmp.lt.s32.totalorder %s1627_s16, 19 }
   0x6   : > { %s2104_s17 = smov (%p23_p0, %s22_s17), 0  ;;  %s2106_s18 = smov (!%p23_p0, %s25_s18), %s1623_s15 }
   0x7   : > { %p158_p3 = pnand %p1137_p1, %p157_p2  ;;  %p27_p4 = scmp.ge.s32.totalorder %s2106_s18, 2 }
   0x8   : > { %v1525_v0 = vld [vmem:[%s2072_s1 + $0x40] sm:$0xff] (!%p158_p3)   ;;  %s1138_s21 = sshll.u32 (!%p158_p3), %s1615_s13, 5  ;;  %p187_p5 = scmp.lt.s32.totalorder (!%p158_p3), %s1611_s12, 8  ;;  %v1527_v2 = vld [vmem:[%s2072_s1 + $0x48] sm:$0xff] (!%p158_p3)   ;;  %v1529_v4 = vld [vmem:[%s2072_s1 + $0x50] sm:$0xff] (!%p158_p3)  }
   0x9   : > { %s2108_s18 = smov (%p27_p4, %s2106_s18), 0  ;;  %161 = sbr.rel (%p158_p3) target bundleno = 359 (0x167), region = 32 }
   0xa   : > { %v1526_v1 = vld [vmem:[%s2072_s1] sm:$0xff] (!%p158_p3)   ;;  %1357 = vmatprep.subr.bf16.mxu0 (!%p158_p3), %v1525_v0  ;;  %1469 = vmatprep.subr.bf16.mxu1 (!%p158_p3), %v1525_v0  ;;  %p189_p6 = scmp.lt.s32.totalorder (!%p158_p3), %s1138_s21, 63  ;;  %v1528_v3 = vld [vmem:[%s2072_s1 + $0x8] sm:$0xff] (!%p158_p3)   ;;  %v1530_v5 = vld [vmem:[%s2072_s1 + $0x10] sm:$0xff] (!%p158_p3)   ;;  %p1193_p7 = scmp.ne.s32.totalorder (!%p158_p3), %s1611_s12, 0 }
   0xb   : > { %1358 = vmatpush3.bf16.msra.mxu0 (!%p158_p3), %v1526_v1  ;;  %1477 = vmatpush3.bf16.msra.mxu1 (!%p158_p3), %v1526_v1  ;;  %v1531_v6 = vld [vmem:[%s2072_s1 + $0x58] sm:$0xff] (!%p158_p3)   ;;  %v1533_v8 = vld [vmem:[%s2072_s1 + $0x60] sm:$0xff] (!%p158_p3)   ;;  %v1535_v10 = vld [vmem:[%s2072_s1 + $0x68] sm:$0xff] (!%p158_p3)  }
   0xc   : > { %1359 = vmatprep.subr.bf16.mxu0 (!%p158_p3), %v1527_v2  ;;  %1470 = vmatprep.subr.bf16.mxu1 (!%p158_p3), %v1527_v2  ;;  %v1532_v7 = vld [vmem:[%s2072_s1 + $0x18] sm:$0xff] (!%p158_p3)   ;;  %v1534_v9 = vld [vmem:[%s2072_s1 + $0x20] sm:$0xff] (!%p158_p3)   ;;  %v1536_v13 = vld [vmem:[%s2072_s1 + $0x28] sm:$0xff] (!%p158_p3)  }
   0xd   : > { %v1537_v14 = vld [vmem:[%s2072_s1 + $0x70] sm:$0xff] (!%p158_p3)   ;;  %v1539_v16 = vld [vmem:[%s2072_s1 + $0x78] sm:$0xff] (!%p158_p3)   ;;  %v1779_v50 = vld [vmem:[%s2073_s2] ss:$0 sm:$0xff] (!%p158_p3) }
   0xe   : > { %v1538_v15 = vld [vmem:[%s2072_s1 + $0x30] sm:$0xff] (!%p158_p3)   ;;  %v1540_v17 = vld [vmem:[%s2072_s1 + $0x38] sm:$0xff] (!%p158_p3)  }
   0xf   : > { %1360 = vmatpush3.bf16.msra.mxu0 (!%p158_p3), %v1528_v3  ;;  %1478 = vmatpush3.bf16.msra.mxu1 (!%p158_p3), %v1528_v3 }
  0x10   : > { %s188_s28 = scalar_select %p187_p5, %s1611_s12, 8  ;;  %1361 = vmatprep.subr.bf16.mxu0 %v1529_v4  ;;  %1471 = vmatprep.subr.bf16.mxu1 %v1529_v4 }
  0x11   : > { %s2110_s21 = smov (!%p189_p6, %s1138_s21), 63 }
  0x12   : > { %s1140_s4 = sshll.u32 %s188_s28, 7  ;;  %s1139_s5 = sshll.u32 %s2110_s21, 1 }
  0x13   : > { %s1143_s8 = sshll.u32 %s2110_s21, 2  ;;  %s193_s11 = sadd.s32 %s1140_s4, %s1139_s5  ;;  %1362 = vmatpush3.bf16.msra.mxu0 %v1530_v5  ;;  %1479 = vmatpush3.bf16.msra.mxu1 %v1530_v5 }
  0x14   : > { %s1710_s20 = scalar_lea.vmem %s2074_s3, %s1143_s8  ;;  %s1141_s24 = sshll.u32 %s193_s11, 2  ;;  %1363 = vmatprep.subr.bf16.mxu0 %v1531_v6  ;;  %1472 = vmatprep.subr.bf16.mxu1 %v1531_v6 }
  0x15   : > { %s1721_s28 = scalar_lea.vmem %s2071_s0, %s1141_s24 }
  0x16   : > { %v1543_v11 = vld [vmem:[%s1721_s28 + $0x4] ss:$8 sps:$4 sm:$0xff]   ;;  %v1541_v18 = vld [vmem:[%s1721_s28] ss:$8 sps:$4 sm:$0xff]   ;;  %v1547_v20 = vld [vmem:[%s1721_s28 + $0x14] ss:$8 sps:$4 sm:$0xff]  }
  0x17   : > { %1364 = vmatpush3.bf16.msra.mxu0 %v1532_v7  ;;  %1480 = vmatpush3.bf16.msra.mxu1 %v1532_v7  ;;  %v1546_v12 = vld [vmem:[%s1721_s28 + $0x84] ss:$8 sps:$4 sm:$0xff]   ;;  %v1544_v19 = vld [vmem:[%s1721_s28 + $0x80] ss:$8 sps:$4 sm:$0xff]   ;;  %v1549_v21 = vld [vmem:[%s1721_s28 + $0x94] ss:$8 sps:$4 sm:$0xff]  }
  0x18   : > { %1365 = vmatprep.subr.bf16.mxu0 %v1533_v8  ;;  %1473 = vmatprep.subr.bf16.mxu1 %v1533_v8  ;;  %v1551_v22 = vld [vmem:[%s1721_s28 + $0x10] ss:$8 sps:$4 sm:$0xff]   ;;  %v1553_v24 = vld [vmem:[%s1721_s28 + $0x24] ss:$8 sps:$4 sm:$0xff]   ;;  %v1557_v26 = vld [vmem:[%s1721_s28 + $0x20] ss:$8 sps:$4 sm:$0xff]  }
  0x19   : > { %563 = vmatprep.mubr.bf16.mxu0 %v1543_v11  ;;  %627 = vmatprep.mubr.bf16.mxu1 %v1546_v12  ;;  %v1552_v23 = vld [vmem:[%s1721_s28 + $0x90] ss:$8 sps:$4 sm:$0xff]   ;;  %v1555_v25 = vld [vmem:[%s1721_s28 + $0xa4] ss:$8 sps:$4 sm:$0xff]   ;;  %v1558_v27 = vld [vmem:[%s1721_s28 + $0xa0] ss:$8 sps:$4 sm:$0xff]  }
  0x1a   : > { %v1559_v28 = vld [vmem:[%s1721_s28 + $0x34] ss:$8 sps:$4 sm:$0xff]   ;;  %v1563_v30 = vld [vmem:[%s1721_s28 + $0x30] ss:$8 sps:$4 sm:$0xff]   ;;  %v1565_v32 = vld [vmem:[%s1721_s28 + $0x44] ss:$8 sps:$4 sm:$0xff]  }
  0x1b   : > { %1366 = vmatpush3.bf16.msra.mxu0 %v1534_v9  ;;  %1481 = vmatpush3.bf16.msra.mxu1 %v1534_v9  ;;  %v1561_v29 = vld [vmem:[%s1721_s28 + $0xb4] ss:$8 sps:$4 sm:$0xff]   ;;  %v1564_v31 = vld [vmem:[%s1721_s28 + $0xb0] ss:$8 sps:$4 sm:$0xff]   ;;  %v1567_v33 = vld [vmem:[%s1721_s28 + $0xc4] ss:$8 sps:$4 sm:$0xff]  }
  0x1c   : > { %1367 = vmatprep.subr.bf16.mxu0 %v1535_v10  ;;  %1474 = vmatprep.subr.bf16.mxu1 %v1535_v10  ;;  %v1569_v34 = vld [vmem:[%s1721_s28 + $0x40] ss:$8 sps:$4 sm:$0xff]   ;;  %v1571_v36 = vld [vmem:[%s1721_s28 + $0x54] ss:$8 sps:$4 sm:$0xff]   ;;  %v1575_v38 = vld [vmem:[%s1721_s28 + $0x50] ss:$8 sps:$4 sm:$0xff]  }
  0x1d   : > { %v1570_v35 = vld [vmem:[%s1721_s28 + $0xc0] ss:$8 sps:$4 sm:$0xff]   ;;  %v1573_v37 = vld [vmem:[%s1721_s28 + $0xd4] ss:$8 sps:$4 sm:$0xff]   ;;  %v1576_v39 = vld [vmem:[%s1721_s28 + $0xd0] ss:$8 sps:$4 sm:$0xff]  }
  0x1e   : > { %v1577_v40 = vld [vmem:[%s1721_s28 + $0x64] ss:$8 sps:$4 sm:$0xff]   ;;  %v1581_v42 = vld [vmem:[%s1721_s28 + $0x60] ss:$8 sps:$4 sm:$0xff]   ;;  %v1583_v44 = vld [vmem:[%s1721_s28 + $0x74] ss:$8 sps:$4 sm:$0xff]  }
  0x1f   : > { %1368 = vmatpush3.bf16.msra.mxu0 %v1536_v13  ;;  %1482 = vmatpush3.bf16.msra.mxu1 %v1536_v13  ;;  %v1579_v41 = vld [vmem:[%s1721_s28 + $0xe4] ss:$8 sps:$4 sm:$0xff]   ;;  %v1582_v43 = vld [vmem:[%s1721_s28 + $0xe0] ss:$8 sps:$4 sm:$0xff]   ;;  %v1585_v45 = vld [vmem:[%s1721_s28 + $0xf4] ss:$8 sps:$4 sm:$0xff]  }
  0x20   : > { %1369 = vmatprep.subr.bf16.mxu0 %v1537_v14  ;;  %1475 = vmatprep.subr.bf16.mxu1 %v1537_v14  ;;  %v1587_v46 = vld [vmem:[%s1721_s28 + $0x70] ss:$8 sps:$4 sm:$0xff]  }
  0x21   : > { %v1588_v47 = vld [vmem:[%s1721_s28 + $0xf0] ss:$8 sps:$4 sm:$0xff]  }
  0x23   : > { %1370 = vmatpush3.bf16.msra.mxu0 %v1538_v15  ;;  %1483 = vmatpush3.bf16.msra.mxu1 %v1538_v15 }
  0x24   : > { %1371 = vmatprep.subr.bf16.mxu0 %v1539_v16  ;;  %1476 = vmatprep.subr.bf16.mxu1 %v1539_v16 }
  0x27   : > { %1372 = vmatpush3.bf16.msra.mxu0 %v1540_v17  ;;  %1484 = vmatpush3.bf16.msra.mxu1 %v1540_v17 }
  0x2a   : > { %564 = vmatmul.mubr.bf16.vlgmr.msra.gmra.mrb[0].mxu0 %v1541_v18  ;;  %628 = vmatmul.mubr.bf16.vlgmr.msra.gmra.mrb[0].mxu1 %v1544_v19 }
  0x2b   : > { %571 = vmatprep.mubr.bf16.mxu0 %v1547_v20  ;;  %635 = vmatprep.mubr.bf16.mxu1 %v1549_v21 }
  0x32   : > { %572 = vmatmul.mubr.bf16.gmra.mrb[4].mxu0 %v1551_v22  ;;  %636 = vmatmul.mubr.bf16.gmra.mrb[4].mxu1 %v1552_v23 }
  0x33   : > { %579 = vmatprep.mubr.bf16.mxu0 %v1553_v24  ;;  %643 = vmatprep.mubr.bf16.mxu1 %v1555_v25 }
  0x3a   : > { %580 = vmatmul.mubr.bf16.gmra.mrb[8].mxu0 %v1557_v26  ;;  %644 = vmatmul.mubr.bf16.gmra.mrb[8].mxu1 %v1558_v27 }
  0x3b   : > { %587 = vmatprep.mubr.bf16.mxu0 %v1559_v28  ;;  %651 = vmatprep.mubr.bf16.mxu1 %v1561_v29 }
  0x42   : > { %588 = vmatmul.mubr.bf16.gmra.mrb[12].mxu0 %v1563_v30  ;;  %652 = vmatmul.mubr.bf16.gmra.mrb[12].mxu1 %v1564_v31 }
  0x43   : > { %595 = vmatprep.mubr.bf16.mxu0 %v1565_v32  ;;  %659 = vmatprep.mubr.bf16.mxu1 %v1567_v33 }
  0x4a   : > { %596 = vmatmul.mubr.bf16.gmra.mrb[16].mxu0 %v1569_v34  ;;  %660 = vmatmul.mubr.bf16.gmra.mrb[16].mxu1 %v1570_v35 }
  0x4b   : > { %603 = vmatprep.mubr.bf16.mxu0 %v1571_v36  ;;  %667 = vmatprep.mubr.bf16.mxu1 %v1573_v37 }
  0x52   : > { %604 = vmatmul.mubr.bf16.gmra.mrb[20].mxu0 %v1575_v38  ;;  %668 = vmatmul.mubr.bf16.gmra.mrb[20].mxu1 %v1576_v39 }
  0x53   : > { %611 = vmatprep.mubr.bf16.mxu0 %v1577_v40  ;;  %675 = vmatprep.mubr.bf16.mxu1 %v1579_v41 }
  0x5a   : > { %612 = vmatmul.mubr.bf16.gmra.mrb[24].mxu0 %v1581_v42  ;;  %676 = vmatmul.mubr.bf16.gmra.mrb[24].mxu1 %v1582_v43 }
  0x5b   : > { %619 = vmatprep.mubr.bf16.mxu0 %v1583_v44  ;;  %683 = vmatprep.mubr.bf16.mxu1 %v1585_v45 }
  0x62   : > { %620 = vmatmul.mubr.bf16.gmra.mrb[28].mxu0 %v1587_v46  ;;  %684 = vmatmul.mubr.bf16.gmra.mrb[28].mxu1 %v1588_v47 }
  0xfd   : > { %v1373_v48 = vpop.f32.mrb[0].mxu0  ;;  %v1421_v49 = vpop.f32.mrb[0].mxu1 }
  0xfe   : > { %v1374_v51 = vpop.f32.mrb[1].mxu0  ;;  %v1422_v52 = vpop.f32.mrb[1].mxu1 }
  0xff   : > { %v1375_v53 = vadd.f32 %v1374_v51, %v1373_v48  ;;  %v1423_v54 = vadd.f32 %v1422_v52, %v1421_v49  ;;  %v1376_v55 = vpop.f32.mrb[2].mxu0  ;;  %v1424_v56 = vpop.f32.mrb[2].mxu1 }
 0x100   : > { %v1377_v57 = vpop.f32.mrb[3].mxu0  ;;  %v1425_v58 = vpop.f32.mrb[3].mxu1 }
 0x101   : > { %v1782_v59 = vadd.f32 %v1375_v53, %v1779_v50  ;;  %v1785_v60 = vadd.f32 %v1423_v54, %v1779_v50  ;;  %v1378_v61 = vadd.f32 %v1377_v57, %v1376_v55  ;;  %v1426_v62 = vadd.f32 %v1425_v58, %v1424_v56 }
 0x103   : > { %v692_v63 = vmax.f32 %v1782_v59, 0.0  ;;  %v708_v0 = vmax.f32 %v1785_v60, 0.0  ;;  %v1790_v1 = vadd.f32 %v1378_v61, %v1779_v50  ;;  %v1793_v2 = vadd.f32 %v1426_v62, %v1779_v50 }
 0x105   : > { %v693_v3 = vmax.f32 %v1790_v1, 0.0  ;;  %v709_v4 = vmax.f32 %v1793_v2, 0.0  ;;  %v1379_v5 = vpop.f32.mrb[4].mxu0  ;;  %v1427_v6 = vpop.f32.mrb[4].mxu1  ;;  %728 = vst [vmem:[#allocation2] sm:$0xff] (!%p1193_p7), %v692_v63  ;;  %744 = vst [vmem:[#allocation2 + $0x80] sm:$0xff] (!%p1193_p7), %v708_v0 }
 0x106   : > { %v1380_v7 = vpop.f32.mrb[5].mxu0  ;;  %v1428_v8 = vpop.f32.mrb[5].mxu1 }
 0x107   : > { %v1381_v9 = vadd.f32 %v1380_v7, %v1379_v5  ;;  %v1429_v10 = vadd.f32 %v1428_v8, %v1427_v6  ;;  %v1382_v11 = vpop.f32.mrb[6].mxu0  ;;  %v1430_v12 = vpop.f32.mrb[6].mxu1  ;;  %729 = vst [vmem:[#allocation2 + $0x8] sm:$0xff] (!%p1193_p7), %v693_v3  ;;  %745 = vst [vmem:[#allocation2 + $0x88] sm:$0xff] (!%p1193_p7), %v709_v4 }
 0x108   : > { %v1383_v13 = vpop.f32.mrb[7].mxu0  ;;  %v1431_v14 = vpop.f32.mrb[7].mxu1 }
 0x109   : > { %v1798_v15 = vadd.f32 %v1381_v9, %v1779_v50  ;;  %v1801_v16 = vadd.f32 %v1429_v10, %v1779_v50  ;;  %v1384_v17 = vadd.f32 %v1383_v13, %v1382_v11  ;;  %v1432_v18 = vadd.f32 %v1431_v14, %v1430_v12 }
 0x10b   : > { %v694_v19 = vmax.f32 %v1798_v15, 0.0  ;;  %v710_v20 = vmax.f32 %v1801_v16, 0.0  ;;  %v1806_v21 = vadd.f32 %v1384_v17, %v1779_v50  ;;  %v1809_v22 = vadd.f32 %v1432_v18, %v1779_v50 }
 0x10d   : > { %v695_v23 = vmax.f32 %v1806_v21, 0.0  ;;  %v711_v24 = vmax.f32 %v1809_v22, 0.0  ;;  %v1385_v25 = vpop.f32.mrb[8].mxu0  ;;  %v1433_v26 = vpop.f32.mrb[8].mxu1  ;;  %730 = vst [vmem:[#allocation2 + $0x10] sm:$0xff] (!%p1193_p7), %v694_v19  ;;  %746 = vst [vmem:[#allocation2 + $0x90] sm:$0xff] (!%p1193_p7), %v710_v20 }
 0x10e   : > { %v1386_v27 = vpop.f32.mrb[9].mxu0  ;;  %v1434_v28 = vpop.f32.mrb[9].mxu1 }
 0x10f   : > { %v1387_v29 = vadd.f32 %v1386_v27, %v1385_v25  ;;  %v1435_v30 = vadd.f32 %v1434_v28, %v1433_v26  ;;  %v1388_v31 = vpop.f32.mrb[10].mxu0  ;;  %v1436_v32 = vpop.f32.mrb[10].mxu1  ;;  %731 = vst [vmem:[#allocation2 + $0x18] sm:$0xff] (!%p1193_p7), %v695_v23  ;;  %747 = vst [vmem:[#allocation2 + $0x98] sm:$0xff] (!%p1193_p7), %v711_v24 }
 0x110   : > { %v1389_v33 = vpop.f32.mrb[11].mxu0  ;;  %v1437_v34 = vpop.f32.mrb[11].mxu1 }
 0x111   : > { %v1814_v35 = vadd.f32 %v1387_v29, %v1779_v50  ;;  %v1817_v36 = vadd.f32 %v1435_v30, %v1779_v50  ;;  %v1390_v37 = vadd.f32 %v1389_v33, %v1388_v31  ;;  %v1438_v38 = vadd.f32 %v1437_v34, %v1436_v32 }
 0x113   : > { %v696_v39 = vmax.f32 %v1814_v35, 0.0  ;;  %v1822_v41 = vadd.f32 %v1390_v37, %v1779_v50  ;;  %v1825_v42 = vadd.f32 %v1438_v38, %v1779_v50 }
 0x115   : > { %v697_v43 = vmax.f32 %v1822_v41, 0.0  ;;  %v1391_v45 = vpop.f32.mrb[12].mxu0  ;;  %v1439_v46 = vpop.f32.mrb[12].mxu1  ;;  %732 = vst [vmem:[#allocation2 + $0x20] sm:$0xff] (!%p1193_p7), %v696_v39 }
 0x116   : > { %v1392_v47 = vpop.f32.mrb[13].mxu0  ;;  %v1440_v48 = vpop.f32.mrb[13].mxu1 }
 0x117   : > { %v1393_v49 = vadd.f32 %v1392_v47, %v1391_v45  ;;  %v1441_v51 = vadd.f32 %v1440_v48, %v1439_v46  ;;  %v1394_v52 = vpop.f32.mrb[14].mxu0  ;;  %v1442_v53 = vpop.f32.mrb[14].mxu1  ;;  %733 = vst [vmem:[#allocation2 + $0x28] sm:$0xff] (!%p1193_p7), %v697_v43 }
 0x118   : > { %v1395_v54 = vpop.f32.mrb[15].mxu0  ;;  %v1443_v55 = vpop.f32.mrb[15].mxu1 }
 0x119   : > { %v1830_v56 = vadd.f32 %v1393_v49, %v1779_v50  ;;  %v1833_v57 = vadd.f32 %v1441_v51, %v1779_v50  ;;  %v1396_v58 = vadd.f32 %v1395_v54, %v1394_v52  ;;  %v1444_v61 = vadd.f32 %v1443_v55, %v1442_v53 }
 0x11b   : > { %v698_v62 = vmax.f32 %v1830_v56, 0.0  ;;  %v1838_v6 = vadd.f32 %v1396_v58, %v1779_v50  ;;  %v1841_v7 = vadd.f32 %v1444_v61, %v1779_v50 }
 0x11d   : > { %v699_v8 = vmax.f32 %v1838_v6, 0.0  ;;  %v1397_v10 = vpop.f32.mrb[16].mxu0  ;;  %v1445_v11 = vpop.f32.mrb[16].mxu1  ;;  %734 = vst [vmem:[#allocation2 + $0x30] sm:$0xff] (!%p1193_p7), %v698_v62 }
 0x11e   : > { %v1398_v12 = vpop.f32.mrb[17].mxu0  ;;  %v1446_v13 = vpop.f32.mrb[17].mxu1 }
 0x11f   : > { %v1399_v14 = vadd.f32 %v1398_v12, %v1397_v10  ;;  %v1447_v17 = vadd.f32 %v1446_v13, %v1445_v11  ;;  %v1400_v18 = vpop.f32.mrb[18].mxu0  ;;  %v1448_v25 = vpop.f32.mrb[18].mxu1  ;;  %735 = vst [vmem:[#allocation2 + $0x38] sm:$0xff] (!%p1193_p7), %v699_v8 }
 0x120   : > { %v1401_v26 = vpop.f32.mrb[19].mxu0  ;;  %v1449_v27 = vpop.f32.mrb[19].mxu1 }
 0x121   : > { %v1846_v28 = vadd.f32 %v1399_v14, %v1779_v50  ;;  %v1849_v29 = vadd.f32 %v1447_v17, %v1779_v50  ;;  %v1402_v30 = vadd.f32 %v1401_v26, %v1400_v18  ;;  %v1450_v31 = vadd.f32 %v1449_v27, %v1448_v25 }
 0x123   : > { %v700_v32 = vmax.f32 %v1846_v28, 0.0  ;;  %v1854_v34 = vadd.f32 %v1402_v30, %v1779_v50  ;;  %v1857_v37 = vadd.f32 %v1450_v31, %v1779_v50 }
 0x125   : > { %v701_v38 = vmax.f32 %v1854_v34, 0.0  ;;  %v1403_v46 = vpop.f32.mrb[20].mxu0  ;;  %v1451_v47 = vpop.f32.mrb[20].mxu1  ;;  %736 = vst [vmem:[#allocation2 + $0x40] sm:$0xff] (!%p1193_p7), %v700_v32 }
 0x126   : > { %v1404_v48 = vpop.f32.mrb[21].mxu0  ;;  %v1452_v49 = vpop.f32.mrb[21].mxu1 }
 0x127   : > { %v1405_v51 = vadd.f32 %v1404_v48, %v1403_v46  ;;  %v1453_v52 = vadd.f32 %v1452_v49, %v1451_v47  ;;  %v1406_v53 = vpop.f32.mrb[22].mxu0  ;;  %v1454_v54 = vpop.f32.mrb[22].mxu1  ;;  %737 = vst [vmem:[#allocation2 + $0x48] sm:$0xff] (!%p1193_p7), %v701_v38 }
 0x128   : > { %v1407_v55 = vpop.f32.mrb[23].mxu0  ;;  %v1455_v58 = vpop.f32.mrb[23].mxu1 }
 0x129   : > { %v1862_v61 = vadd.f32 %v1405_v51, %v1779_v50  ;;  %v1865_v10 = vadd.f32 %v1453_v52, %v1779_v50  ;;  %v1408_v11 = vadd.f32 %v1407_v55, %v1406_v53  ;;  %v1456_v12 = vadd.f32 %v1455_v58, %v1454_v54 }
 0x12b   : > { %v702_v13 = vmax.f32 %v1862_v61, 0.0  ;;  %v1870_v17 = vadd.f32 %v1408_v11, %v1779_v50  ;;  %v1873_v18 = vadd.f32 %v1456_v12, %v1779_v50 }
 0x12d   : > { %v703_v25 = vmax.f32 %v1870_v17, 0.0  ;;  %v1409_v27 = vpop.f32.mrb[24].mxu0  ;;  %v1457_v30 = vpop.f32.mrb[24].mxu1  ;;  %738 = vst [vmem:[#allocation2 + $0x50] sm:$0xff] (!%p1193_p7), %v702_v13 }
 0x12e   : > { %v1410_v31 = vpop.f32.mrb[25].mxu0  ;;  %v1458_v46 = vpop.f32.mrb[25].mxu1 }
 0x12f   : > { %v1411_v47 = vadd.f32 %v1410_v31, %v1409_v27  ;;  %v1459_v48 = vadd.f32 %v1458_v46, %v1457_v30  ;;  %v1412_v49 = vpop.f32.mrb[26].mxu0  ;;  %v1460_v51 = vpop.f32.mrb[26].mxu1  ;;  %739 = vst [vmem:[#allocation2 + $0x58] sm:$0xff] (!%p1193_p7), %v703_v25 }
 0x130   : > { %v1413_v52 = vpop.f32.mrb[27].mxu0  ;;  %v1461_v53 = vpop.f32.mrb[27].mxu1 }
 0x131   : > { %v1878_v54 = vadd.f32 %v1411_v47, %v1779_v50  ;;  %v1881_v55 = vadd.f32 %v1459_v48, %v1779_v50  ;;  %v1414_v58 = vadd.f32 %v1413_v52, %v1412_v49  ;;  %v1462_v11 = vadd.f32 %v1461_v53, %v1460_v51 }
 0x133   : > { %v704_v12 = vmax.f32 %v1878_v54, 0.0  ;;  %v1886_v14 = vadd.f32 %v1414_v58, %v1779_v50  ;;  %v1889_v27 = vadd.f32 %v1462_v11, %v1779_v50 }
 0x135   : > { %v705_v30 = vmax.f32 %v1886_v14, 0.0  ;;  %v1415_v46 = vpop.f32.mrb[28].mxu0  ;;  %v1463_v47 = vpop.f32.mrb[28].mxu1  ;;  %740 = vst [vmem:[#allocation2 + $0x60] sm:$0xff] (!%p1193_p7), %v704_v12 }
 0x136   : > { %v1416_v48 = vpop.f32.mrb[29].mxu0  ;;  %v1464_v45 = vpop.f32.mrb[29].mxu1 }
 0x137   : > { %v1417_v49 = vadd.f32 %v1416_v48, %v1415_v46  ;;  %v1465_v51 = vadd.f32 %v1464_v45, %v1463_v47  ;;  %v1418_v52 = vpop.f32.mrb[30].mxu0  ;;  %v1466_v53 = vpop.f32.mrb[30].mxu1  ;;  %727 = sbr.rel (%p1193_p7) target bundleno = 323 (0x143), region = 36  ;;  %741 = vst [vmem:[#allocation2 + $0x68] sm:$0xff] (!%p1193_p7), %v705_v30  ;;  %v2082_v48 = vmax.f32 (!%p1193_p7), %v1857_v37, 0.0 }
 0x138   : > { %v1419_v33 = vpop.f32.mrb[31].mxu0  ;;  %v1467_v26 = vpop.f32.mrb[31].mxu1 }
 0x139   : > { %v1894_v58 = vadd.f32 %v1417_v49, %v1779_v50  ;;  %v1897_v11 = vadd.f32 %v1465_v51, %v1779_v50  ;;  %v1420_v9 = vadd.f32 %v1419_v33, %v1418_v52  ;;  %v1468_v5 = vadd.f32 %v1467_v26, %v1466_v53  ;;  %753 = vst [vmem:[#allocation2 + $0xc8] sm:$0xff] (!%p1193_p7), %v2082_v48 }
 0x13a   : > { %v2080_v33 = vmax.f32 (!%p1193_p7), %v1841_v7, 0.0  ;;  %v2081_v26 = vmax.f32 (!%p1193_p7), %v1849_v29, 0.0  ;;  %v2083_v49 = vmax.f32 (!%p1193_p7), %v1865_v10, 0.0  ;;  %v2084_v51 = vmax.f32 (!%p1193_p7), %v1873_v18, 0.0 }
 0x13b   : > { %v706_v31 = vmax.f32 %v1894_v58, 0.0  ;;  %v2076_v44 = vmax.f32 %v1897_v11, 0.0  ;;  %v1902_v40 = vadd.f32 %v1420_v9, %v1779_v50  ;;  %v1905_v45 = vadd.f32 %v1468_v5, %v1779_v50 }
 0x13c   : > { %v2077_v50 = vmax.f32 (!%p1193_p7), %v1817_v36, 0.0  ;;  %v2078_v5 = vmax.f32 (!%p1193_p7), %v1825_v42, 0.0  ;;  %v2079_v9 = vmax.f32 (!%p1193_p7), %v1833_v57, 0.0  ;;  %751 = vst [vmem:[#allocation2 + $0xb8] sm:$0xff] (!%p1193_p7), %v2080_v33  ;;  %752 = vst [vmem:[#allocation2 + $0xc0] sm:$0xff] (!%p1193_p7), %v2081_v26  ;;  %v2085_v52 = vmax.f32 (!%p1193_p7), %v1881_v55, 0.0 }
 0x13d   : > { %v707_v46 = vmax.f32 %v1902_v40, 0.0  ;;  %v2075_v47 = vmax.f32 %v1905_v45, 0.0  ;;  %742 = vst [vmem:[#allocation2 + $0x70] sm:$0xff] (!%p1193_p7), %v706_v31  ;;  %754 = vst [vmem:[#allocation2 + $0xd0] sm:$0xff] (!%p1193_p7), %v2083_v49  ;;  %v2086_v53 = vmax.f32 (!%p1193_p7), %v1889_v27, 0.0 }
 0x13e   : > { %748 = vst [vmem:[#allocation2 + $0xa0] sm:$0xff] %v2077_v50  ;;  %749 = vst [vmem:[#allocation2 + $0xa8] sm:$0xff] %v2078_v5 }
 0x13f   : > { %743 = vst [vmem:[#allocation2 + $0x78] sm:$0xff] %v707_v46  ;;  %750 = vst [vmem:[#allocation2 + $0xb0] sm:$0xff] %v2079_v9 }
 0x140   : > { %755 = vst [vmem:[#allocation2 + $0xd8] sm:$0xff] %v2084_v51  ;;  %756 = vst [vmem:[#allocation2 + $0xe0] sm:$0xff] %v2085_v52 }
 0x141   : > { %757 = vst [vmem:[#allocation2 + $0xe8] sm:$0xff] %v2086_v53  ;;  %758 = vst [vmem:[#allocation2 + $0xf0] sm:$0xff] %v2076_v44 }
 0x142   : > { %759 = vst [vmem:[#allocation2 + $0xf8] sm:$0xff] %v2075_v47 }
 0x143 PF: > { %p1194_p8 = scmp.le.s32.totalorder %s1611_s12, 0 }
 0x144   : > { %v764_v50 = vld [vmem:[#allocation2] sm:$0xff] (!%p1194_p8)  ;;  %v765_v5 = vld [vmem:[#allocation2 + $0x8] sm:$0xff] (!%p1194_p8)  ;;  %v766_v9 = vld [vmem:[#allocation2 + $0x10] sm:$0xff] (!%p1194_p8)  ;;  %v2087_v40 = vmax.f32 (!%p1194_p8), %v1817_v36, 0.0  ;;  %v2088_v2 = vmax.f32 (!%p1194_p8), %v1825_v42, 0.0  ;;  %v2089_v58 = vmax.f32 (!%p1194_p8), %v1833_v57, 0.0 }
 0x145   : > { %763 = sbr.rel (%p1194_p8) target bundleno = 343 (0x157), region = 40  ;;  %v796_v33 = vmax.f32 (!%p1194_p8), %v764_v50, %v692_v63  ;;  %v797_v26 = vmax.f32 (!%p1194_p8), %v765_v5, %v693_v3  ;;  %v798_v48 = vmax.f32 (!%p1194_p8), %v766_v9, %v694_v19  ;;  %v767_v49 = vld [vmem:[#allocation2 + $0x18] sm:$0xff] (!%p1194_p8)  ;;  %v768_v51 = vld [vmem:[#allocation2 + $0x20] sm:$0xff] (!%p1194_p8)  ;;  %v769_v52 = vld [vmem:[#allocation2 + $0x28] sm:$0xff] (!%p1194_p8)  ;;  %v2090_v16 = vmax.f32 (!%p1194_p8), %v1841_v7, 0.0 }
 0x146   : > { %v799_v53 = vmax.f32 (!%p1194_p8), %v767_v49, %v695_v23  ;;  %v800_v47 = vmax.f32 (!%p1194_p8), %v768_v51, %v696_v39  ;;  %v801_v44 = vmax.f32 (!%p1194_p8), %v769_v52, %v697_v43  ;;  %v770_v59 = vld [vmem:[#allocation2 + $0x30] sm:$0xff] (!%p1194_p8)  ;;  %v771_v63 = vld [vmem:[#allocation2 + $0x38] sm:$0xff] (!%p1194_p8)  ;;  %v772_v50 = vld [vmem:[#allocation2 + $0x40] sm:$0xff] (!%p1194_p8)  ;;  %v2091_v36 = vmax.f32 (!%p1194_p8), %v1849_v29, 0.0 }
 0x147   : > { %828 = vst [vmem:[#allocation2] sm:$0xff] (!%p1194_p8), %v796_v33  ;;  %829 = vst [vmem:[#allocation2 + $0x8] sm:$0xff] (!%p1194_p8), %v797_v26  ;;  %v802_v1 = vmax.f32 (!%p1194_p8), %v770_v59, %v698_v62  ;;  %v803_v3 = vmax.f32 (!%p1194_p8), %v771_v63, %v699_v8  ;;  %v804_v15 = vmax.f32 (!%p1194_p8), %v772_v50, %v700_v32  ;;  %v773_v19 = vld [vmem:[#allocation2 + $0x48] sm:$0xff] (!%p1194_p8)  ;;  %v774_v21 = vld [vmem:[#allocation2 + $0x50] sm:$0xff] (!%p1194_p8)  ;;  %v2092_v9 = vmax.f32 (!%p1194_p8), %v1857_v37, 0.0 }
 0x148   : > { %830 = vst [vmem:[#allocation2 + $0x10] sm:$0xff] (!%p1194_p8), %v798_v48  ;;  %v775_v23 = vld [vmem:[#allocation2 + $0x58] sm:$0xff] (!%p1194_p8)  ;;  %831 = vst [vmem:[#allocation2 + $0x18] sm:$0xff] (!%p1194_p8), %v799_v53  ;;  %v805_v35 = vmax.f32 (!%p1194_p8), %v773_v19, %v701_v38  ;;  %v806_v39 = vmax.f32 (!%p1194_p8), %v774_v21, %v702_v13  ;;  %v776_v43 = vld [vmem:[#allocation2 + $0x60] sm:$0xff] (!%p1194_p8)  ;;  %v2093_v42 = vmax.f32 (!%p1194_p8), %v1865_v10, 0.0  ;;  %v2094_v7 = vmax.f32 (!%p1194_p8), %v1873_v18, 0.0 }
 0x149   : > { %832 = vst [vmem:[#allocation2 + $0x20] sm:$0xff] (!%p1194_p8), %v800_v47  ;;  %833 = vst [vmem:[#allocation2 + $0x28] sm:$0xff] (!%p1194_p8), %v801_v44  ;;  %v807_v41 = vmax.f32 (!%p1194_p8), %v775_v23, %v703_v25  ;;  %v777_v56 = vld [vmem:[#allocation2 + $0x68] sm:$0xff] (!%p1194_p8)  ;;  %v778_v62 = vld [vmem:[#allocation2 + $0x70] sm:$0xff] (!%p1194_p8)  ;;  %v808_v6 = vmax.f32 (!%p1194_p8), %v776_v43, %v704_v12  ;;  %v2095_v52 = vmax.f32 (!%p1194_p8), %v1881_v55, 0.0  ;;  %v2096_v29 = vmax.f32 (!%p1194_p8), %v1889_v27, 0.0 }
 0x14a   : > { %834 = vst [vmem:[#allocation2 + $0x30] sm:$0xff] (!%p1194_p8), %v802_v1  ;;  %835 = vst [vmem:[#allocation2 + $0x38] sm:$0xff] (!%p1194_p8), %v803_v3  ;;  %v809_v44 = vmax.f32 (!%p1194_p8), %v777_v56, %v705_v30  ;;  %v810_v8 = vmax.f32 (!%p1194_p8), %v778_v62, %v706_v31  ;;  %v779_v28 = vld [vmem:[#allocation2 + $0x78] sm:$0xff] (!%p1194_p8)  ;;  %v780_v32 = vld [vmem:[#allocation2 + $0x80] sm:$0xff] (!%p1194_p8)  ;;  %v2097_v10 = vmax.f32 (!%p1194_p8), %v1897_v11, 0.0  ;;  %v2098_v1 = vmax.f32 (!%p1194_p8), %v1905_v45, 0.0 }
 0x14b   : > { %836 = vst [vmem:[#allocation2 + $0x40] sm:$0xff] (!%p1194_p8), %v804_v15  ;;  %v781_v34 = vld [vmem:[#allocation2 + $0x88] sm:$0xff] (!%p1194_p8)  ;;  %837 = vst [vmem:[#allocation2 + $0x48] sm:$0xff] (!%p1194_p8), %v805_v35  ;;  %v811_v38 = vmax.f32 (!%p1194_p8), %v779_v28, %v707_v46  ;;  %v812_v61 = vmax.f32 (!%p1194_p8), %v780_v32, %v708_v0  ;;  %v782_v14 = vld [vmem:[#allocation2 + $0x90] sm:$0xff] (!%p1194_p8) }
 0x14c   : > { %838 = vst [vmem:[#allocation2 + $0x50] sm:$0xff] %v806_v39  ;;  %839 = vst [vmem:[#allocation2 + $0x58] sm:$0xff] %v807_v41  ;;  %v813_v13 = vmax.f32 %v781_v34, %v709_v4  ;;  %v783_v17 = vld [vmem:[#allocation2 + $0x98] sm:$0xff]  ;;  %v784_v25 = vld [vmem:[#allocation2 + $0xa0] sm:$0xff]  ;;  %v814_v54 = vmax.f32 %v782_v14, %v710_v20 }
 0x14d   : > { %840 = vst [vmem:[#allocation2 + $0x60] sm:$0xff] %v808_v6  ;;  %841 = vst [vmem:[#allocation2 + $0x68] sm:$0xff] %v809_v44  ;;  %v815_v12 = vmax.f32 %v783_v17, %v711_v24  ;;  %v816_v30 = vmax.f32 %v784_v25, %v2087_v40  ;;  %v785_v60 = vld [vmem:[#allocation2 + $0xa8] sm:$0xff]  ;;  %v786_v0 = vld [vmem:[#allocation2 + $0xb0] sm:$0xff] }
 0x14e   : > { %842 = vst [vmem:[#allocation2 + $0x70] sm:$0xff] %v810_v8  ;;  %v787_v31 = vld [vmem:[#allocation2 + $0xb8] sm:$0xff]  ;;  %843 = vst [vmem:[#allocation2 + $0x78] sm:$0xff] %v811_v38  ;;  %v817_v4 = vmax.f32 %v785_v60, %v2088_v2  ;;  %v818_v46 = vmax.f32 %v786_v0, %v2089_v58  ;;  %v788_v22 = vld [vmem:[#allocation2 + $0xc0] sm:$0xff] }
 0x14f   : > { %844 = vst [vmem:[#allocation2 + $0x80] sm:$0xff] %v812_v61  ;;  %845 = vst [vmem:[#allocation2 + $0x88] sm:$0xff] %v813_v13  ;;  %v819_v20 = vmax.f32 %v787_v31, %v2090_v16  ;;  %v789_v24 = vld [vmem:[#allocation2 + $0xc8] sm:$0xff]  ;;  %v790_v47 = vld [vmem:[#allocation2 + $0xd0] sm:$0xff]  ;;  %v820_v5 = vmax.f32 %v788_v22, %v2091_v36 }
 0x150   : > { %846 = vst [vmem:[#allocation2 + $0x90] sm:$0xff] %v814_v54  ;;  %847 = vst [vmem:[#allocation2 + $0x98] sm:$0xff] %v815_v12  ;;  %v821_v33 = vmax.f32 %v789_v24, %v2092_v9  ;;  %v822_v26 = vmax.f32 %v790_v47, %v2093_v42  ;;  %v791_v57 = vld [vmem:[#allocation2 + $0xd8] sm:$0xff]  ;;  %v792_v48 = vld [vmem:[#allocation2 + $0xe0] sm:$0xff] }
 0x151   : > { %848 = vst [vmem:[#allocation2 + $0xa0] sm:$0xff] %v816_v30  ;;  %v793_v49 = vld [vmem:[#allocation2 + $0xe8] sm:$0xff]  ;;  %849 = vst [vmem:[#allocation2 + $0xa8] sm:$0xff] %v817_v4  ;;  %v823_v51 = vmax.f32 %v791_v57, %v2094_v7  ;;  %v824_v53 = vmax.f32 %v792_v48, %v2095_v52  ;;  %v794_v37 = vld [vmem:[#allocation2 + $0xf0] sm:$0xff] }
 0x152   : > { %850 = vst [vmem:[#allocation2 + $0xb0] sm:$0xff] %v818_v46  ;;  %851 = vst [vmem:[#allocation2 + $0xb8] sm:$0xff] %v819_v20  ;;  %v825_v59 = vmax.f32 %v793_v49, %v2096_v29  ;;  %v795_v63 = vld [vmem:[#allocation2 + $0xf8] sm:$0xff]  ;;  %v826_v50 = vmax.f32 %v794_v37, %v2097_v10 }
 0x153   : > { %852 = vst [vmem:[#allocation2 + $0xc0] sm:$0xff] %v820_v5  ;;  %853 = vst [vmem:[#allocation2 + $0xc8] sm:$0xff] %v821_v33  ;;  %v827_v3 = vmax.f32 %v795_v63, %v2098_v1 }
 0x154   : > { %854 = vst [vmem:[#allocation2 + $0xd0] sm:$0xff] %v822_v26  ;;  %855 = vst [vmem:[#allocation2 + $0xd8] sm:$0xff] %v823_v51 }
 0x155   : > { %856 = vst [vmem:[#allocation2 + $0xe0] sm:$0xff] %v824_v53  ;;  %857 = vst [vmem:[#allocation2 + $0xe8] sm:$0xff] %v825_v59 }
 0x156   : > { %858 = vst [vmem:[#allocation2 + $0xf0] sm:$0xff] %v826_v50  ;;  %859 = vst [vmem:[#allocation2 + $0xf8] sm:$0xff] %v827_v3 }
 0x157 PF: > { %p1195_p9 = scmp.ne.s32.totalorder %s1611_s12, 8 }
 0x158   : > { %v876_v28 = vld [vmem:[#allocation2 + $0x60] sm:$0xff] (!%p1195_p9)  ;;  %v877_v32 = vld [vmem:[#allocation2 + $0x68] sm:$0xff] (!%p1195_p9)  ;;  %v878_v34 = vld [vmem:[#allocation2 + $0x70] sm:$0xff] (!%p1195_p9) }
 0x159   : > { %863 = sbr.rel (%p1195_p9) target bundleno = 359 (0x167), region = 44  ;;  %v864_v18 = vld [vmem:[#allocation2] sm:$0xff] (!%p1195_p9)  ;;  %v865_v55 = vld [vmem:[#allocation2 + $0x8] sm:$0xff] (!%p1195_p9)  ;;  %v1295_v38 = vpack.c.bf16 (!%p1195_p9), %v877_v32, %v876_v28  ;;  %v879_v61 = vld [vmem:[#allocation2 + $0x78] sm:$0xff] (!%p1195_p9) }
 0x15a   : > { %v866_v27 = vld [vmem:[#allocation2 + $0x10] sm:$0xff] (!%p1195_p9)  ;;  %v1265_v11 = vpack.c.bf16 (!%p1195_p9), %v865_v55, %v864_v18  ;;  %v867_v15 = vld [vmem:[#allocation2 + $0x18] sm:$0xff] (!%p1195_p9)  ;;  %v880_v13 = vld [vmem:[#allocation2 + $0x80] sm:$0xff] (!%p1195_p9)  ;;  %v1300_v17 = vpack.c.bf16 (!%p1195_p9), %v879_v61, %v878_v34 }
 0x15b   : > { %v868_v19 = vld [vmem:[#allocation2 + $0x20] sm:$0xff] (!%p1195_p9)  ;;  %v869_v45 = vld [vmem:[#allocation2 + $0x28] sm:$0xff] (!%p1195_p9)  ;;  %v1270_v21 = vpack.c.bf16 (!%p1195_p9), %v867_v15, %v866_v27  ;;  %v882_v54 = vld [vmem:[#allocation2 + $0x90] sm:$0xff] (!%p1195_p9)  ;;  %1347 = vst [vmem:[%s1710_s20 + $0x30] sm:$0xff] (!%p1195_p9), %v1295_v38  }
 0x15c   : > { %v1275_v23 = vpack.c.bf16 (!%p1195_p9), %v869_v45, %v868_v19  ;;  %v870_v35 = vld [vmem:[#allocation2 + $0x30] sm:$0xff] (!%p1195_p9)  ;;  %v871_v39 = vld [vmem:[#allocation2 + $0x38] sm:$0xff] (!%p1195_p9)  ;;  %1266 = vst [vmem:[%s1710_s20] sm:$0xff] (!%p1195_p9), %v1265_v11   ;;  %v881_v14 = vld [vmem:[#allocation2 + $0x88] sm:$0xff] (!%p1195_p9) }
 0x15d   : > { %v872_v41 = vld [vmem:[#allocation2 + $0x40] sm:$0xff] (!%p1195_p9)  ;;  %v1280_v43 = vpack.c.bf16 (!%p1195_p9), %v871_v39, %v870_v35  ;;  %v873_v56 = vld [vmem:[#allocation2 + $0x48] sm:$0xff] (!%p1195_p9)  ;;  %1342 = vst [vmem:[%s1710_s20 + $0x8] sm:$0xff] (!%p1195_p9), %v1270_v21   ;;  %v1305_v25 = vpack.c.bf16 (!%p1195_p9), %v881_v14, %v880_v13  ;;  %v883_v12 = vld [vmem:[#allocation2 + $0x98] sm:$0xff] (!%p1195_p9) }
 0x15e   : > { %v874_v62 = vld [vmem:[#allocation2 + $0x50] sm:$0xff] (!%p1195_p9)  ;;  %v875_v6 = vld [vmem:[#allocation2 + $0x58] sm:$0xff] (!%p1195_p9)  ;;  %1343 = vst [vmem:[%s1710_s20 + $0x10] sm:$0xff] (!%p1195_p9), %v1275_v23   ;;  %v1285_v44 = vpack.c.bf16 (!%p1195_p9), %v873_v56, %v872_v41  ;;  %v884_v40 = vld [vmem:[#allocation2 + $0xa0] sm:$0xff] (!%p1195_p9)  ;;  %v1310_v30 = vpack.c.bf16 (!%p1195_p9), %v883_v12, %v882_v54 }
 0x15f   : > { %v1290_v8 = vpack.c.bf16 (!%p1195_p9), %v875_v6, %v874_v62  ;;  %1344 = vst [vmem:[%s1710_s20 + $0x18] sm:$0xff] (!%p1195_p9), %v1280_v43   ;;  %v885_v60 = vld [vmem:[#allocation2 + $0xa8] sm:$0xff] (!%p1195_p9)  ;;  %v886_v0 = vld [vmem:[#allocation2 + $0xb0] sm:$0xff] (!%p1195_p9)  ;;  %v887_v31 = vld [vmem:[#allocation2 + $0xb8] sm:$0xff] (!%p1195_p9) }
 0x160   : > { %1345 = vst [vmem:[%s1710_s20 + $0x20] sm:$0xff] %v1285_v44   ;;  %1348 = vst [vmem:[%s1710_s20 + $0x38] sm:$0xff] %v1300_v17   ;;  %v1315_v2 = vpack.c.bf16 %v885_v60, %v884_v40  ;;  %v1320_v4 = vpack.c.bf16 %v887_v31, %v886_v0  ;;  %v888_v58 = vld [vmem:[#allocation2 + $0xc0] sm:$0xff]  ;;  %v889_v46 = vld [vmem:[#allocation2 + $0xc8] sm:$0xff] }
 0x161   : > { %1346 = vst [vmem:[%s1710_s20 + $0x28] sm:$0xff] %v1290_v8   ;;  %1349 = vst [vmem:[%s1710_s20 + $0x40] sm:$0xff] %v1305_v25   ;;  %v890_v16 = vld [vmem:[#allocation2 + $0xd0] sm:$0xff]  ;;  %v1325_v20 = vpack.c.bf16 %v889_v46, %v888_v58  ;;  %v891_v22 = vld [vmem:[#allocation2 + $0xd8] sm:$0xff] }
 0x162   : > { %1350 = vst [vmem:[%s1710_s20 + $0x48] sm:$0xff] %v1310_v30   ;;  %v892_v24 = vld [vmem:[#allocation2 + $0xe0] sm:$0xff]  ;;  %v893_v47 = vld [vmem:[#allocation2 + $0xe8] sm:$0xff]  ;;  %1351 = vst [vmem:[%s1710_s20 + $0x50] sm:$0xff] %v1315_v2   ;;  %v1330_v36 = vpack.c.bf16 %v891_v22, %v890_v16 }
 0x163   : > { %1352 = vst [vmem:[%s1710_s20 + $0x58] sm:$0xff] %v1320_v4   ;;  %v1335_v5 = vpack.c.bf16 %v893_v47, %v892_v24  ;;  %v894_v9 = vld [vmem:[#allocation2 + $0xf0] sm:$0xff]  ;;  %v895_v33 = vld [vmem:[#allocation2 + $0xf8] sm:$0xff]  ;;  %1353 = vst [vmem:[%s1710_s20 + $0x60] sm:$0xff] %v1325_v20  }
 0x164   : > { %v1340_v42 = vpack.c.bf16 %v895_v33, %v894_v9  ;;  %1354 = vst [vmem:[%s1710_s20 + $0x68] sm:$0xff] %v1330_v36  }
 0x165   : > { %1355 = vst [vmem:[%s1710_s20 + $0x70] sm:$0xff] %v1335_v5  }
 0x166   : > { %1356 = vst [vmem:[%s1710_s20 + $0x78] sm:$0xff] %v1340_v42  }
 0x167 PF: > { %s13_s16 = sadd.s32 1, %s1627_s16   ;;  %s2099_s12 = smov %s1619_s14 }
 0x168   : > { %p10_p10 = scmp.ge.s32.totalorder %s13_s16, 20   ;;  %s2100_s13 = smov %s1623_s15 }
 0x169   : > { %s2101_s14 = smov %s2104_s17  ;;  %s2102_s15 = smov %s2108_s18 }
 0x16a   :  { %12 = sbr.rel (!%p10_p10) target bundleno = 3 (0x3), region = 74 }

// kernel: hybrid_cnn_forward.6
= control target key start
LH: loop header
LB: loop body
LE: loop exit
PB: predicated region body
PF: predicated region fallthrough
CT: control target
= control target key end

     0   :  { %s1702_s12 = smov 0   ;;  %s1704_s13 = smov 0   ;;  %s1984_s0 = inlined_call_operand.vmem [shape: bf16[4,32,1152], index: 0, kind: input, shape index: {}]   ;;  %s1985_s1 = inlined_call_operand.vmem [shape: bf16[1152,128], index: 1, kind: input, shape index: {}]   ;;  %s1986_s2 = inlined_call_operand.vmem [shape: f32[1,128], index: 2, kind: input, shape index: {}]   ;;  %s1987_s3 = inlined_call_operand.vmem [shape: bf16[32,128], index: 3, kind: output, shape index: {}]  }
   0x1   :  { %s1706_s14 = smov 0  }
   0x2 LB: > { %s22_s15 = sadd.s32 1, %s1676_s13  ;;  %p1274_p0 = scmp.ge.s32.totalorder %s1680_s14, 1  ;;  %s1680_s14 = sphi %s1706_s14, %s13_s14   ;;  %s1676_s13 = sphi %s1704_s13, %s1989_s13   ;;  %s1672_s12 = sphi %s1702_s12, %s1988_s12  }
   0x3   : > { %p23_p1 = scmp.ge.s32.totalorder %s22_s15, 4  ;;  %p157_p2 = scmp.lt.s32.totalorder %s1680_s14, 5 }
   0x5   : > { %s1991_s15 = smov (%p23_p1, %s22_s15), 0  ;;  %p158_p3 = pnand %p1274_p0, %p157_p2 }
   0x6   : > { %v1560_v0 = vld [vmem:[%s1985_s1 + $0x40] sm:$0xff] (!%p158_p3)   ;;  %v1564_v4 = vld [vmem:[%s1985_s1 + $0x48] sm:$0xff] (!%p158_p3)   ;;  %v1568_v8 = vld [vmem:[%s1985_s1 + $0x50] sm:$0xff] (!%p158_p3)   ;;  %p187_p4 = scmp.lt.s32.totalorder (!%p158_p3), %s1672_s12, 3  ;;  %p1367_p5 = scmp.ne.s32.totalorder (!%p158_p3), %s1672_s12, 0 }
   0x7   : > { %161 = sbr.rel (%p158_p3) target bundleno = 345 (0x159), region = 32  ;;  %v1561_v1 = vld [vmem:[%s1985_s1] sm:$0xff] (!%p158_p3)   ;;  %1393 = vmatprep.subr.bf16.mxu0 (!%p158_p3), %v1560_v0  ;;  %v1565_v5 = vld [vmem:[%s1985_s1 + $0x8] sm:$0xff] (!%p158_p3)   ;;  %v1569_v9 = vld [vmem:[%s1985_s1 + $0x10] sm:$0xff] (!%p158_p3)  }
   0x8   : > { %v1562_v2 = vld [vmem:[%s1985_s1 + $0xc0] sm:$0xff] (!%p158_p3)   ;;  %1394 = vmatpush3.bf16.msra.mxu0 (!%p158_p3), %v1561_v1  ;;  %v1566_v6 = vld [vmem:[%s1985_s1 + $0xc8] sm:$0xff] (!%p158_p3)   ;;  %v1570_v10 = vld [vmem:[%s1985_s1 + $0xd0] sm:$0xff] (!%p158_p3)  }
   0x9   : > { %v1563_v3 = vld [vmem:[%s1985_s1 + $0x80] sm:$0xff] (!%p158_p3)   ;;  %1421 = vmatprep.subr.bf16.mxu1 (!%p158_p3), %v1562_v2  ;;  %1395 = vmatprep.subr.bf16.mxu0 (!%p158_p3), %v1564_v4  ;;  %v1567_v7 = vld [vmem:[%s1985_s1 + $0x88] sm:$0xff] (!%p158_p3)   ;;  %v1571_v11 = vld [vmem:[%s1985_s1 + $0x90] sm:$0xff] (!%p158_p3)  }
   0xa   : > { %1422 = vmatpush3.bf16.msra.mxu1 (!%p158_p3), %v1563_v3  ;;  %v1572_v12 = vld [vmem:[%s1985_s1 + $0x58] sm:$0xff] (!%p158_p3)   ;;  %v1576_v16 = vld [vmem:[%s1985_s1 + $0x60] sm:$0xff] (!%p158_p3)   ;;  %v1580_v20 = vld [vmem:[%s1985_s1 + $0x68] sm:$0xff] (!%p158_p3)  }
   0xb   : > { %1423 = vmatprep.subr.bf16.mxu1 (!%p158_p3), %v1566_v6  ;;  %v1573_v13 = vld [vmem:[%s1985_s1 + $0x18] sm:$0xff] (!%p158_p3)   ;;  %v1577_v17 = vld [vmem:[%s1985_s1 + $0x20] sm:$0xff] (!%p158_p3)   ;;  %v1581_v21 = vld [vmem:[%s1985_s1 + $0x28] sm:$0xff] (!%p158_p3)  }
   0xc   : > { %1396 = vmatpush3.bf16.msra.mxu0 (!%p158_p3), %v1565_v5  ;;  %v1574_v14 = vld [vmem:[%s1985_s1 + $0xd8] sm:$0xff] (!%p158_p3)   ;;  %v1578_v18 = vld [vmem:[%s1985_s1 + $0xe0] sm:$0xff] (!%p158_p3)   ;;  %v1582_v22 = vld [vmem:[%s1985_s1 + $0xe8] sm:$0xff] (!%p158_p3)  }
   0xd   : > { %1397 = vmatprep.subr.bf16.mxu0 (!%p158_p3), %v1568_v8  ;;  %v1575_v15 = vld [vmem:[%s1985_s1 + $0x98] sm:$0xff] (!%p158_p3)   ;;  %v1579_v19 = vld [vmem:[%s1985_s1 + $0xa0] sm:$0xff] (!%p158_p3)   ;;  %v1583_v23 = vld [vmem:[%s1985_s1 + $0xa8] sm:$0xff] (!%p158_p3)  }
   0xe   : > { %1424 = vmatpush3.bf16.msra.mxu1 %v1567_v7  ;;  %s188_s8 = scalar_select %p187_p4, %s1672_s12, 3  ;;  %v1584_v24 = vld [vmem:[%s1985_s1 + $0x70] sm:$0xff]   ;;  %v1588_v28 = vld [vmem:[%s1985_s1 + $0x78] sm:$0xff]   ;;  %v1595_v34 = vld [vmem:[%s1985_s1 + $0x140] sm:$0xff]  }
   0xf   : > { %1425 = vmatprep.subr.bf16.mxu1 %v1570_v10  ;;  %v1585_v25 = vld [vmem:[%s1985_s1 + $0x30] sm:$0xff]   ;;  %v1589_v29 = vld [vmem:[%s1985_s1 + $0x38] sm:$0xff]   ;;  %v1599_v37 = vld [vmem:[%s1985_s1 + $0x100] sm:$0xff]  }
  0x10   : > { %1398 = vmatpush3.bf16.msra.mxu0 %v1569_v9  ;;  %s1535_s21 = smul.u32 144, %s188_s8  ;;  %v1586_v26 = vld [vmem:[%s1985_s1 + $0xf0] sm:$0xff]   ;;  %v1590_v30 = vld [vmem:[%s1985_s1 + $0xf8] sm:$0xff]   ;;  %v1600_v38 = vld [vmem:[%s1985_s1 + $0x1c0] sm:$0xff]  }
  0x11   : > { %1399 = vmatprep.subr.bf16.mxu0 %v1572_v12  ;;  %v1587_v27 = vld [vmem:[%s1985_s1 + $0xb0] sm:$0xff]   ;;  %v1594_v33 = vld [vmem:[%s1985_s1 + $0xb8] sm:$0xff]   ;;  %v1601_v39 = vld [vmem:[%s1985_s1 + $0x180] sm:$0xff]  }
  0x12   : > { %1426 = vmatpush3.bf16.msra.mxu1 %v1571_v11  ;;  %s1814_s5 = scalar_lea.vmem %s1984_s0, %s1535_s21  ;;  %v1602_v40 = vld [vmem:[%s1985_s1 + $0x148] sm:$0xff]   ;;  %v1606_v44 = vld [vmem:[%s1985_s1 + $0x150] sm:$0xff]   ;;  %v1610_v48 = vld [vmem:[%s1985_s1 + $0x158] sm:$0xff]  }
  0x13   : > { %1427 = vmatprep.subr.bf16.mxu1 %v1574_v14  ;;  %v1591_v31 = vld [vmem:[%s1814_s5] ss:$36 sps:$4 sm:$0xff]   ;;  %v1596_v35 = vld [vmem:[%s1814_s5 + $0x8] ss:$36 sps:$4 sm:$0xff]   ;;  %v1607_v45 = vld [vmem:[%s1985_s1 + $0x110] sm:$0xff]  }
  0x14   : > { %1400 = vmatpush3.bf16.msra.mxu0 %v1573_v13  ;;  %v1593_v32 = vld [vmem:[%s1814_s5 + $0x4] ss:$36 sps:$4 sm:$0xff]   ;;  %v1598_v36 = vld [vmem:[%s1814_s5 + $0xc] ss:$36 sps:$4 sm:$0xff]   ;;  %v1611_v49 = vld [vmem:[%s1985_s1 + $0x118] sm:$0xff]  }
  0x15   : > { %1401 = vmatprep.subr.bf16.mxu0 %v1576_v16  ;;  %931 = vmatprep.mubr.bf16.mxu0 %v1593_v32  ;;  %v1603_v41 = vld [vmem:[%s1985_s1 + $0x108] sm:$0xff]   ;;  %v1608_v46 = vld [vmem:[%s1985_s1 + $0x1d0] sm:$0xff]   ;;  %v1612_v50 = vld [vmem:[%s1985_s1 + $0x1d8] sm:$0xff]  }
  0x16   : > { %1428 = vmatpush3.bf16.msra.mxu1 %v1575_v15  ;;  %980 = vmatprep.mubr.bf16.mxu1 %v1598_v36  ;;  %v1604_v42 = vld [vmem:[%s1985_s1 + $0x1c8] sm:$0xff]   ;;  %v1609_v47 = vld [vmem:[%s1985_s1 + $0x190] sm:$0xff]   ;;  %v1613_v51 = vld [vmem:[%s1985_s1 + $0x198] sm:$0xff]  }
  0x17   : > { %1429 = vmatprep.subr.bf16.mxu1 %v1578_v18  ;;  %v1605_v43 = vld [vmem:[%s1985_s1 + $0x188] sm:$0xff]   ;;  %v1614_v52 = vld [vmem:[%s1985_s1 + $0x160] sm:$0xff]   ;;  %v1624_v61 = vld [vmem:[%s1814_s5 + $0x54] ss:$36 sps:$4 sm:$0xff]  }
  0x18   : > { %1402 = vmatpush3.bf16.msra.mxu0 %v1577_v17  ;;  %v1615_v53 = vld [vmem:[%s1985_s1 + $0x120] sm:$0xff]   ;;  %v1618_v56 = vld [vmem:[%s1985_s1 + $0x168] sm:$0xff]   ;;  %v1627_v63 = vld [vmem:[%s1814_s5 + $0x50] ss:$36 sps:$4 sm:$0xff]  }
  0x19   : > { %1403 = vmatprep.subr.bf16.mxu0 %v1580_v20  ;;  %v1616_v54 = vld [vmem:[%s1985_s1 + $0x1e0] sm:$0xff]   ;;  %v1619_v57 = vld [vmem:[%s1814_s5 + $0x4c] ss:$36 sps:$4 sm:$0xff]   ;;  %v1632_v4 = vld [vmem:[%s1985_s1 + $0x178] sm:$0xff]  }
  0x1a   : > { %1430 = vmatpush3.bf16.msra.mxu1 %v1579_v19  ;;  %v1617_v55 = vld [vmem:[%s1985_s1 + $0x1a0] sm:$0xff]   ;;  %v1621_v58 = vld [vmem:[%s1985_s1 + $0x128] sm:$0xff]   ;;  %v1628_v0 = vld [vmem:[%s1985_s1 + $0x170] sm:$0xff]  }
  0x1b   : > { %1431 = vmatprep.subr.bf16.mxu1 %v1582_v22  ;;  %v1622_v59 = vld [vmem:[%s1814_s5 + $0x48] ss:$36 sps:$4 sm:$0xff]   ;;  %v1629_v1 = vld [vmem:[%s1985_s1 + $0x130] sm:$0xff]   ;;  %v1633_v5 = vld [vmem:[%s1985_s1 + $0x138] sm:$0xff]  }
  0x1c   : > { %1404 = vmatpush3.bf16.msra.mxu0 %v1581_v21  ;;  %v1623_v60 = vld [vmem:[%s1985_s1 + $0x1e8] sm:$0xff]   ;;  %v1630_v2 = vld [vmem:[%s1985_s1 + $0x1f0] sm:$0xff]   ;;  %v1634_v6 = vld [vmem:[%s1985_s1 + $0x1f8] sm:$0xff]  }
  0x1d   : > { %1405 = vmatprep.subr.bf16.mxu0 %v1584_v24  ;;  %v1626_v62 = vld [vmem:[%s1985_s1 + $0x1a8] sm:$0xff]   ;;  %v1631_v3 = vld [vmem:[%s1985_s1 + $0x1b0] sm:$0xff]   ;;  %v1638_v9 = vld [vmem:[%s1985_s1 + $0x1b8] sm:$0xff]  }
  0x1e   : > { %1432 = vmatpush3.bf16.msra.mxu1 %v1583_v23  ;;  %v1635_v7 = vld [vmem:[%s1814_s5 + $0x10] ss:$36 sps:$4 sm:$0xff]   ;;  %v1639_v10 = vld [vmem:[%s1985_s1 + $0x200] sm:$0xff]   ;;  %v1640_v11 = vld [vmem:[%s1814_s5 + $0x18] ss:$36 sps:$4 sm:$0xff]  }
  0x1f   : > { %1433 = vmatprep.subr.bf16.mxu1 %v1586_v26  ;;  %v1637_v8 = vld [vmem:[%s1814_s5 + $0x14] ss:$36 sps:$4 sm:$0xff]   ;;  %v1642_v12 = vld [vmem:[%s1814_s5 + $0x1c] ss:$36 sps:$4 sm:$0xff]   ;;  %v1643_v13 = vld [vmem:[%s1985_s1 + $0x208] sm:$0xff]  }
  0x20   : > { %1406 = vmatpush3.bf16.msra.mxu0 %v1585_v25  ;;  %v1644_v14 = vld [vmem:[%s1814_s5 + $0x5c] ss:$36 sps:$4 sm:$0xff]   ;;  %v1647_v16 = vld [vmem:[%s1985_s1 + $0x210] sm:$0xff]   ;;  %v1648_v17 = vld [vmem:[%s1814_s5 + $0x64] ss:$36 sps:$4 sm:$0xff]  }
  0x21   : > { %1407 = vmatprep.subr.bf16.mxu0 %v1588_v28  ;;  %v1646_v15 = vld [vmem:[%s1814_s5 + $0x58] ss:$36 sps:$4 sm:$0xff]   ;;  %v1650_v18 = vld [vmem:[%s1814_s5 + $0x60] ss:$36 sps:$4 sm:$0xff]   ;;  %v1653_v22 = vld [vmem:[%s1985_s1 + $0x228] sm:$0xff]  }
  0x22   : > { %1434 = vmatpush3.bf16.msra.mxu1 %v1587_v27  ;;  %v1651_v19 = vld [vmem:[%s1985_s1 + $0x218] sm:$0xff]   ;;  %v1652_v20 = vld [vmem:[%s1985_s1 + $0x220] sm:$0xff]   ;;  %v1654_v23 = vld [vmem:[%s1985_s1 + $0x230] sm:$0xff]  }
  0x23   : > { %1435 = vmatprep.subr.bf16.mxu1 %v1590_v30  ;;  %v1656_v21 = vld [vmem:[%s1814_s5 + $0x20] ss:$36 sps:$4 sm:$0xff]   ;;  %v1655_v24 = vld [vmem:[%s1985_s1 + $0x238] sm:$0xff]   ;;  %v1657_v25 = vld [vmem:[%s1814_s5 + $0x68] ss:$36 sps:$4 sm:$0xff]  }
  0x24   : > { %1408 = vmatpush3.bf16.msra.mxu0 %v1589_v29  ;;  %v1276_v27 = vld [vmem:[%s1986_s2] ss:$0 sm:$0xff] }
  0x25   : > { %1449 = vmatprep.subr.bf16.mxu0 %v1595_v34 }
  0x26   : > { %1436 = vmatpush3.bf16.msra.mxu1 %v1594_v33 }
  0x27   : > { %932 = vmatmul.mubr.bf16.vlgmr.msra.gmra.mrb[0].mxu0 %v1591_v31  ;;  %1477 = vmatprep.subr.bf16.mxu1 %v1600_v38 }
  0x28   : > { %1450 = vmatpush3.bf16.msra.mxu0 %v1599_v37  ;;  %939 = vmatprep.mubr.bf16.mxu0 %v1619_v57 }
  0x29   : > { %981 = vmatmul.mubr.bf16.vlgmr.msra.gmra.mrb[0].mxu1 %v1596_v35  ;;  %1451 = vmatprep.subr.bf16.mxu0 %v1602_v40 }
  0x2a   : > { %1478 = vmatpush3.bf16.msra.mxu1 %v1601_v39  ;;  %988 = vmatprep.mubr.bf16.mxu1 %v1624_v61 }
  0x2b   : > { %1479 = vmatprep.subr.bf16.mxu1 %v1604_v42 }
  0x2c   : > { %1452 = vmatpush3.bf16.msra.mxu0 %v1603_v41 }
  0x2d   : > { %1453 = vmatprep.subr.bf16.mxu0 %v1606_v44 }
  0x2e   : > { %1480 = vmatpush3.bf16.msra.mxu1 %v1605_v43 }
  0x2f   : > { %1481 = vmatprep.subr.bf16.mxu1 %v1608_v46  ;;  %940 = vmatmul.mubr.bf16.gmra.mrb[4].mxu0 %v1622_v59 }
  0x30   : > { %1454 = vmatpush3.bf16.msra.mxu0 %v1607_v45  ;;  %1029 = vmatprep.mubr.bf16.mxu0 %v1637_v8 }
  0x31   : > { %1455 = vmatprep.subr.bf16.mxu0 %v1610_v48  ;;  %989 = vmatmul.mubr.bf16.gmra.mrb[4].mxu1 %v1627_v63 }
  0x32   : > { %1482 = vmatpush3.bf16.msra.mxu1 %v1609_v47  ;;  %1078 = vmatprep.mubr.bf16.mxu1 %v1642_v12 }
  0x33   : > { %1483 = vmatprep.subr.bf16.mxu1 %v1612_v50 }
  0x34   : > { %1456 = vmatpush3.bf16.msra.mxu0 %v1611_v49 }
  0x35   : > { %1457 = vmatprep.subr.bf16.mxu0 %v1614_v52 }
  0x36   : > { %1484 = vmatpush3.bf16.msra.mxu1 %v1613_v51 }
  0x37   : > { %1485 = vmatprep.subr.bf16.mxu1 %v1616_v54 }
  0x38   : > { %1458 = vmatpush3.bf16.msra.mxu0 %v1615_v53 }
  0x39   : > { %1459 = vmatprep.subr.bf16.mxu0 %v1618_v56 }
  0x3a   : > { %1486 = vmatpush3.bf16.msra.mxu1 %v1617_v55 }
  0x3b   : > { %1487 = vmatprep.subr.bf16.mxu1 %v1623_v60 }
  0x3c   : > { %1460 = vmatpush3.bf16.msra.mxu0 %v1621_v58 }
  0x3d   : > { %1461 = vmatprep.subr.bf16.mxu0 %v1628_v0 }
  0x3e   : > { %1488 = vmatpush3.bf16.msra.mxu1 %v1626_v62 }
  0x3f   : > { %1489 = vmatprep.subr.bf16.mxu1 %v1630_v2 }
  0x40   : > { %1462 = vmatpush3.bf16.msra.mxu0 %v1629_v1 }
  0x41   : > { %1463 = vmatprep.subr.bf16.mxu0 %v1632_v4 }
  0x42   : > { %1490 = vmatpush3.bf16.msra.mxu1 %v1631_v3 }
  0x43   : > { %1491 = vmatprep.subr.bf16.mxu1 %v1634_v6 }
  0x44   : > { %1464 = vmatpush3.bf16.msra.mxu0 %v1633_v5 }
  0x45   : > { %1515 = vmatprep.subr.bf16.mxu0 %v1639_v10 }
  0x46   : > { %1492 = vmatpush3.bf16.msra.mxu1 %v1638_v9 }
  0x47   : > { %1030 = vmatmul.mubr.bf16.vlgmr.msra.gmra.mrb[8].mxu0 %v1635_v7 }
  0x48   : > { %1516 = vmatpush3.bf16.msra.mxu0 %v1639_v10  ;;  %1037 = vmatprep.mubr.bf16.mxu0 %v1644_v14 }
  0x49   : > { %1079 = vmatmul.mubr.bf16.vlgmr.msra.gmra.mrb[8].mxu1 %v1640_v11  ;;  %1517 = vmatprep.subr.bf16.mxu0 %v1643_v13 }
  0x4a   : > { %1086 = vmatprep.mubr.bf16.mxu1 %v1648_v17 }
  0x4c   : > { %1518 = vmatpush3.bf16.msra.mxu0 %v1643_v13 }
  0x4d   : > { %1519 = vmatprep.subr.bf16.mxu0 %v1647_v16 }
  0x4f   : > { %1038 = vmatmul.mubr.bf16.gmra.mrb[12].mxu0 %v1646_v15 }
  0x50   : > { %1520 = vmatpush3.bf16.msra.mxu0 %v1647_v16  ;;  %1531 = vmatprep.mubr.bf16.mxu0 %v1656_v21 }
  0x51   : > { %1087 = vmatmul.mubr.bf16.gmra.mrb[12].mxu1 %v1650_v18  ;;  %1521 = vmatprep.subr.bf16.mxu0 %v1651_v19 }
  0x54   : > { %1522 = vmatpush3.bf16.msra.mxu0 %v1651_v19 }
  0x55   : > { %1523 = vmatprep.subr.bf16.mxu0 %v1652_v20 }
  0x58   : > { %1524 = vmatpush3.bf16.msra.mxu0 %v1652_v20 }
  0x59   : > { %1525 = vmatprep.subr.bf16.mxu0 %v1653_v22 }
  0x5c   : > { %1526 = vmatpush3.bf16.msra.mxu0 %v1653_v22 }
  0x5d   : > { %1527 = vmatprep.subr.bf16.mxu0 %v1654_v23 }
  0x60   : > { %1528 = vmatpush3.bf16.msra.mxu0 %v1654_v23 }
  0x61   : > { %1529 = vmatprep.subr.bf16.mxu0 %v1655_v24 }
  0x64   : > { %1530 = vmatpush3.bf16.msra.mxu0 %v1655_v24 }
  0x67   : > { %1532 = vmatmul.mubr.bf16.vlgmr.msra.gmra.mrb[16].mxu0 %v1657_v25 }
  0xfa   : > { %v1409_v26 = vpop.f32.mrb[0].mxu0 }
  0xfb   : > { %v1410_v28 = vpop.f32.mrb[1].mxu0 }
  0xfc   : > { %v1411_v29 = vadd.f32 %v1410_v28, %v1409_v26  ;;  %v1412_v30 = vpop.f32.mrb[2].mxu0  ;;  %v1437_v31 = vpop.f32.mrb[0].mxu1 }
  0xfd   : > { %v1413_v32 = vpop.f32.mrb[3].mxu0  ;;  %v1438_v35 = vpop.f32.mrb[1].mxu1 }
  0xfe   : > { %v934_v33 = vadd.f32 %v1411_v29, %v1276_v27  ;;  %v1414_v34 = vadd.f32 %v1413_v32, %v1412_v30  ;;  %v1439_v36 = vadd.f32 %v1438_v35, %v1437_v31  ;;  %v1440_v37 = vpop.f32.mrb[2].mxu1 }
  0xff   : > { %v1441_v39 = vpop.f32.mrb[3].mxu1 }
 0x100   : > { %v937_v38 = vadd.f32 %v1414_v34, %v1276_v27  ;;  %v983_v40 = vadd.f32 %v1439_v36, %v934_v33  ;;  %v1442_v41 = vadd.f32 %v1441_v39, %v1440_v37 }
 0x102   : > { %v986_v42 = vadd.f32 %v1442_v41, %v937_v38  ;;  %v1415_v43 = vpop.f32.mrb[4].mxu0 }
 0x103   : > { %v1416_v44 = vpop.f32.mrb[5].mxu0 }
 0x104   : > { %v1417_v45 = vadd.f32 %v1416_v44, %v1415_v43  ;;  %v1418_v46 = vpop.f32.mrb[6].mxu0  ;;  %v1443_v47 = vpop.f32.mrb[4].mxu1 }
 0x105   : > { %v1419_v48 = vpop.f32.mrb[7].mxu0  ;;  %v1444_v51 = vpop.f32.mrb[5].mxu1 }
 0x106   : > { %v942_v49 = vadd.f32 %v1417_v45, %v1276_v27  ;;  %v1420_v50 = vadd.f32 %v1419_v48, %v1418_v46  ;;  %v1445_v52 = vadd.f32 %v1444_v51, %v1443_v47  ;;  %v1446_v53 = vpop.f32.mrb[6].mxu1 }
 0x107   : > { %v1447_v55 = vpop.f32.mrb[7].mxu1 }
 0x108   : > { %v945_v54 = vadd.f32 %v1420_v50, %v1276_v27  ;;  %v991_v56 = vadd.f32 %v1445_v52, %v942_v49  ;;  %v1448_v57 = vadd.f32 %v1447_v55, %v1446_v53 }
 0x10a   : > { %v994_v58 = vadd.f32 %v1448_v57, %v945_v54 }
 0x11a   : > { %v1465_v59 = vpop.f32.mrb[8].mxu0 }
 0x11b   : > { %v1466_v60 = vpop.f32.mrb[9].mxu0 }
 0x11c   : > { %v1467_v61 = vadd.f32 %v1466_v60, %v1465_v59  ;;  %v1468_v62 = vpop.f32.mrb[10].mxu0  ;;  %v1493_v63 = vpop.f32.mrb[8].mxu1 }
 0x11d   : > { %v1469_v0 = vpop.f32.mrb[11].mxu0  ;;  %v1494_v3 = vpop.f32.mrb[9].mxu1 }
 0x11e   : > { %v1032_v1 = vadd.f32 %v1467_v61, %v983_v40  ;;  %v1470_v2 = vadd.f32 %v1469_v0, %v1468_v62  ;;  %v1495_v4 = vadd.f32 %v1494_v3, %v1493_v63  ;;  %v1496_v5 = vpop.f32.mrb[10].mxu1 }
 0x11f   : > { %v1497_v7 = vpop.f32.mrb[11].mxu1 }
 0x120   : > { %v1035_v6 = vadd.f32 %v1470_v2, %v986_v42  ;;  %v1498_v8 = vadd.f32 %v1497_v7, %v1496_v5  ;;  %v1081_v9 = vadd.f32 %v1495_v4, %v1032_v1 }
 0x122   : > { %v1471_v10 = vpop.f32.mrb[12].mxu0  ;;  %v1084_v12 = vadd.f32 %v1498_v8, %v1035_v6 }
 0x123   : > { %v1472_v11 = vpop.f32.mrb[13].mxu0 }
 0x124   : > { %v1473_v13 = vadd.f32 %v1472_v11, %v1471_v10  ;;  %v1474_v14 = vpop.f32.mrb[14].mxu0  ;;  %v1499_v15 = vpop.f32.mrb[12].mxu1 }
 0x125   : > { %v1475_v16 = vpop.f32.mrb[15].mxu0  ;;  %v1500_v19 = vpop.f32.mrb[13].mxu1 }
 0x126   : > { %v1040_v17 = vadd.f32 %v1473_v13, %v991_v56  ;;  %v1476_v18 = vadd.f32 %v1475_v16, %v1474_v14  ;;  %v1501_v20 = vadd.f32 %v1500_v19, %v1499_v15  ;;  %v1502_v21 = vpop.f32.mrb[14].mxu1 }
 0x127   : > { %v1503_v23 = vpop.f32.mrb[15].mxu1 }
 0x128   : > { %v1043_v22 = vadd.f32 %v1476_v18, %v994_v58  ;;  %v1504_v24 = vadd.f32 %v1503_v23, %v1502_v21  ;;  %v1089_v25 = vadd.f32 %v1501_v20, %v1040_v17 }
 0x12a   : > { %v1092_v26 = vadd.f32 %v1504_v24, %v1043_v22 }
 0x13a   : > { %v1533_v27 = vpop.f32.mrb[16].mxu0  ;;  %1151 = sbr.rel (%p1367_p5) target bundleno = 323 (0x143), region = 36 }
 0x13b   : > { %v1138_v28 = vadd.f32 %v1533_v27, %v1089_v25  ;;  %v1129_v29 = vpop.f32.mrb[17].mxu0 }
 0x13c   : > { %v1130_v30 = vadd.f32 %v1129_v29, %v1081_v9  ;;  %v1534_v31 = vpop.f32.mrb[18].mxu0 }
 0x13d   : > { %v1146_v32 = vmax.f32 %v1138_v28, 0.0  ;;  %v1141_v33 = vadd.f32 %v1534_v31, %v1092_v26  ;;  %v1132_v34 = vpop.f32.mrb[19].mxu0 }
 0x13e   : > { %v1144_v35 = vmax.f32 %v1130_v30, 0.0  ;;  %v1133_v36 = vadd.f32 %v1132_v34, %v1084_v12 }
 0x13f   : > { %v1147_v37 = vmax.f32 %v1141_v33, 0.0  ;;  %1154 = vst [vmem:[#allocation2 + $0x10] sm:$0xff] (!%p1367_p5), %v1146_v32 }
 0x140   : > { %v1145_v38 = vmax.f32 %v1133_v36, 0.0  ;;  %1152 = vst [vmem:[#allocation2] sm:$0xff] (!%p1367_p5), %v1144_v35 }
 0x141   : > { %1155 = vst [vmem:[#allocation2 + $0x18] sm:$0xff] %v1147_v37 }
 0x142   : > { %1153 = vst [vmem:[#allocation2 + $0x8] sm:$0xff] %v1145_v38 }
 0x143 PF: > { %p1368_p6 = scmp.le.s32.totalorder %s1672_s12, 0 }
 0x145   : > { %1159 = sbr.rel (%p1368_p6) target bundleno = 334 (0x14e), region = 40 }
 0x148   : > { %v1162_v41 = vld [vmem:[#allocation2 + $0x10] sm:$0xff] (!%p1368_p6) }
 0x149   : > { %v1160_v39 = vld [vmem:[#allocation2] sm:$0xff] (!%p1368_p6)  ;;  %v1161_v40 = vld [vmem:[#allocation2 + $0x8] sm:$0xff] (!%p1368_p6)  ;;  %v1166_v44 = vmax.f32 (!%p1368_p6), %v1162_v41, %v1146_v32 }
 0x14a   : > { %v1164_v42 = vmax.f32 (!%p1368_p6), %v1160_v39, %v1144_v35  ;;  %v1165_v43 = vmax.f32 (!%p1368_p6), %v1161_v40, %v1145_v38  ;;  %v1163_v45 = vld [vmem:[#allocation2 + $0x18] sm:$0xff] (!%p1368_p6) }
 0x14b   : > { %v1167_v46 = vmax.f32 (!%p1368_p6), %v1163_v45, %v1147_v37  ;;  %1170 = vst [vmem:[#allocation2 + $0x10] sm:$0xff] (!%p1368_p6), %v1166_v44 }
 0x14c   : > { %1168 = vst [vmem:[#allocation2] sm:$0xff] %v1164_v42  ;;  %1169 = vst [vmem:[#allocation2 + $0x8] sm:$0xff] %v1165_v43 }
 0x14d   : > { %1171 = vst [vmem:[#allocation2 + $0x18] sm:$0xff] %v1167_v46 }
 0x14e PF: > { %p1369_p7 = scmp.ne.s32.totalorder %s1672_s12, 3 }
 0x150   : > { %1175 = sbr.rel (%p1369_p7) target bundleno = 345 (0x159), region = 44 }
 0x154   : > { %v1178_v49 = vld [vmem:[#allocation2 + $0x10] sm:$0xff] (!%p1369_p7)  ;;  %v1179_v51 = vld [vmem:[#allocation2 + $0x18] sm:$0xff] (!%p1369_p7) }
 0x155   : > { %v1176_v47 = vld [vmem:[#allocation2] sm:$0xff] (!%p1369_p7)  ;;  %v1177_v48 = vld [vmem:[#allocation2 + $0x8] sm:$0xff] (!%p1369_p7)  ;;  %v1390_v52 = vpack.c.bf16 (!%p1369_p7), %v1179_v51, %v1178_v49 }
 0x156   : > { %v1385_v50 = vpack.c.bf16 (!%p1369_p7), %v1177_v48, %v1176_v47 }
 0x157   : > { %1392 = vst [vmem:[%s1987_s3 + $0x8] sm:$0xff] %v1390_v52  }
 0x158   : > { %1386 = vst [vmem:[%s1987_s3] sm:$0xff] %v1385_v50  }
 0x159 PF: > { %s13_s14 = sadd.s32 1, %s1680_s14   ;;  %s1988_s12 = smov %s1676_s13 }
 0x15a   : > { %p10_p8 = scmp.ge.s32.totalorder %s13_s14, 6   ;;  %s1989_s13 = smov %s1991_s15 }
 0x15c   :  { %12 = sbr.rel (!%p10_p8) target bundleno = 2 (0x2), region = 74 }

// kernel: hybrid_cnn_forward.7
= control target key start
LH: loop header
LB: loop body
LE: loop exit
PB: predicated region body
PF: predicated region fallthrough
CT: control target
= control target key end

     0   :  { %s1897_s12 = smov 0   ;;  %s1899_s13 = smov 0   ;;  %s2391_s0 = inlined_call_operand.vmem [shape: bf16[4,8,1152], index: 0, kind: input, shape index: {}]   ;;  %s2392_s1 = inlined_call_operand.vmem [shape: bf16[1152,256], index: 1, kind: input, shape index: {}]   ;;  %s2393_s2 = inlined_call_operand.vmem [shape: f32[1,256], index: 2, kind: input, shape index: {}]   ;;  %s2394_s3 = inlined_call_operand.vmem [shape: bf16[8,256], index: 3, kind: output, shape index: {}]  }
   0x1   :  { %s1901_s14 = smov 0  }
   0x2 LB: > { %s22_s15 = sadd.s32 1, %s1870_s13  ;;  %p1422_p0 = scmp.ge.s32.totalorder %s1874_s14, 1  ;;  %s1874_s14 = sphi %s1901_s14, %s13_s14   ;;  %s1870_s13 = sphi %s1899_s13, %s2396_s13   ;;  %s1866_s12 = sphi %s1897_s12, %s2395_s12  }
   0x3   : > { %p23_p1 = scmp.ge.s32.totalorder %s22_s15, 4  ;;  %p155_p2 = scmp.lt.s32.totalorder %s1874_s14, 5 }
   0x5   : > { %s2398_s15 = smov (%p23_p1, %s22_s15), 0  ;;  %p156_p3 = pnand %p1422_p0, %p155_p2 }
   0x6   : > { %v1627_v0 = vld [vmem:[%s2392_s1 + $0x4] ss:$8 sps:$4 sm:$0xff] (!%p156_p3)   ;;  %v1631_v2 = vld [vmem:[%s2392_s1] ss:$8 sps:$4 sm:$0xff] (!%p156_p3)   ;;  %v1633_v4 = vld [vmem:[%s2392_s1 + $0x14] ss:$8 sps:$4 sm:$0xff] (!%p156_p3)  }
   0x7   : > { %159 = sbr.rel (%p156_p3) target bundleno = 408 (0x198), region = 32  ;;  %v1629_v1 = vld [vmem:[%s2392_s1 + $0x204] ss:$8 sps:$4 sm:$0xff] (!%p156_p3)   ;;  %1111 = vmatprep.subr.bf16.mxu1 (!%p156_p3), %v1627_v0  ;;  %v1632_v3 = vld [vmem:[%s2392_s1 + $0x200] ss:$8 sps:$4 sm:$0xff] (!%p156_p3)   ;;  %p183_p4 = scmp.lt.s32.totalorder (!%p156_p3), %s1866_s12, 3 }
   0x8   : > { %1193 = vmatprep.subr.bf16.mxu0 (!%p156_p3), %v1629_v1  ;;  %1112 = vmatpush1.bf16.msra.mxu1 (!%p156_p3), %v1631_v2  ;;  %v1635_v5 = vld [vmem:[%s2392_s1 + $0x214] ss:$8 sps:$4 sm:$0xff] (!%p156_p3)   ;;  %v1637_v6 = vld [vmem:[%s2392_s1 + $0x10] ss:$8 sps:$4 sm:$0xff] (!%p156_p3)   ;;  %v1639_v8 = vld [vmem:[%s2392_s1 + $0x24] ss:$8 sps:$4 sm:$0xff] (!%p156_p3)  }
   0x9   : > { %1194 = vmatpush1.bf16.msra.mxu0 (!%p156_p3), %v1632_v3  ;;  %1113 = vmatprep.subr.bf16.mxu1 (!%p156_p3), %v1633_v4  ;;  %v1638_v7 = vld [vmem:[%s2392_s1 + $0x210] ss:$8 sps:$4 sm:$0xff] (!%p156_p3)   ;;  %v1641_v9 = vld [vmem:[%s2392_s1 + $0x224] ss:$8 sps:$4 sm:$0xff] (!%p156_p3)   ;;  %v1643_v10 = vld [vmem:[%s2392_s1 + $0x20] ss:$8 sps:$4 sm:$0xff] (!%p156_p3)  }
   0xa   : > { %1195 = vmatprep.subr.bf16.mxu0 (!%p156_p3), %v1635_v5  ;;  %v1644_v11 = vld [vmem:[%s2392_s1 + $0x220] ss:$8 sps:$4 sm:$0xff] (!%p156_p3)   ;;  %v1645_v12 = vld [vmem:[%s2392_s1 + $0x34] ss:$8 sps:$4 sm:$0xff] (!%p156_p3)   ;;  %v1649_v14 = vld [vmem:[%s2392_s1 + $0x30] ss:$8 sps:$4 sm:$0xff] (!%p156_p3)  }
   0xb   : > { %v1647_v13 = vld [vmem:[%s2392_s1 + $0x234] ss:$8 sps:$4 sm:$0xff] (!%p156_p3)   ;;  %v1650_v15 = vld [vmem:[%s2392_s1 + $0x230] ss:$8 sps:$4 sm:$0xff] (!%p156_p3)   ;;  %v1651_v16 = vld [vmem:[%s2392_s1 + $0x44] ss:$8 sps:$4 sm:$0xff] (!%p156_p3)  }
   0xc   : > { %1114 = vmatpush1.bf16.msra.mxu1 (!%p156_p3), %v1637_v6  ;;  %v1653_v17 = vld [vmem:[%s2392_s1 + $0x244] ss:$8 sps:$4 sm:$0xff] (!%p156_p3)   ;;  %v1655_v18 = vld [vmem:[%s2392_s1 + $0x40] ss:$8 sps:$4 sm:$0xff] (!%p156_p3)   ;;  %v1657_v20 = vld [vmem:[%s2392_s1 + $0x54] ss:$8 sps:$4 sm:$0xff] (!%p156_p3)  }
   0xd   : > { %1196 = vmatpush1.bf16.msra.mxu0 (!%p156_p3), %v1638_v7  ;;  %1115 = vmatprep.subr.bf16.mxu1 (!%p156_p3), %v1639_v8  ;;  %v1656_v19 = vld [vmem:[%s2392_s1 + $0x240] ss:$8 sps:$4 sm:$0xff] (!%p156_p3)   ;;  %v1659_v21 = vld [vmem:[%s2392_s1 + $0x254] ss:$8 sps:$4 sm:$0xff] (!%p156_p3)   ;;  %v1661_v22 = vld [vmem:[%s2392_s1 + $0x50] ss:$8 sps:$4 sm:$0xff] (!%p156_p3)  }
   0xe   : > { %1197 = vmatprep.subr.bf16.mxu0 %v1641_v9  ;;  %v1662_v23 = vld [vmem:[%s2392_s1 + $0x250] ss:$8 sps:$4 sm:$0xff]   ;;  %v1663_v24 = vld [vmem:[%s2392_s1 + $0x64] ss:$8 sps:$4 sm:$0xff]   ;;  %v1667_v26 = vld [vmem:[%s2392_s1 + $0x60] ss:$8 sps:$4 sm:$0xff]  }
   0xf   : > { %v1665_v25 = vld [vmem:[%s2392_s1 + $0x264] ss:$8 sps:$4 sm:$0xff]   ;;  %v1668_v27 = vld [vmem:[%s2392_s1 + $0x260] ss:$8 sps:$4 sm:$0xff]   ;;  %v1669_v28 = vld [vmem:[%s2392_s1 + $0x74] ss:$8 sps:$4 sm:$0xff]  }
  0x10   : > { %1116 = vmatpush1.bf16.msra.mxu1 %v1643_v10  ;;  %v1671_v29 = vld [vmem:[%s2392_s1 + $0x274] ss:$8 sps:$4 sm:$0xff]   ;;  %v1673_v30 = vld [vmem:[%s2392_s1 + $0x70] ss:$8 sps:$4 sm:$0xff]   ;;  %v1675_v32 = vld [vmem:[%s2392_s1 + $0x84] ss:$8 sps:$4 sm:$0xff]  }
  0x11   : > { %1198 = vmatpush1.bf16.msra.mxu0 %v1644_v11  ;;  %1117 = vmatprep.subr.bf16.mxu1 %v1645_v12  ;;  %v1674_v31 = vld [vmem:[%s2392_s1 + $0x270] ss:$8 sps:$4 sm:$0xff]   ;;  %v1677_v33 = vld [vmem:[%s2392_s1 + $0x284] ss:$8 sps:$4 sm:$0xff]   ;;  %v1679_v34 = vld [vmem:[%s2392_s1 + $0x80] ss:$8 sps:$4 sm:$0xff]  }
  0x12   : > { %1199 = vmatprep.subr.bf16.mxu0 %v1647_v13  ;;  %v1680_v35 = vld [vmem:[%s2392_s1 + $0x280] ss:$8 sps:$4 sm:$0xff]   ;;  %s184_s19 = scalar_select %p183_p4, %s1866_s12, 3  ;;  %v1681_v36 = vld [vmem:[%s2392_s1 + $0x94] ss:$8 sps:$4 sm:$0xff]  }
  0x13   : > { %v1683_v37 = vld [vmem:[%s2392_s1 + $0x294] ss:$8 sps:$4 sm:$0xff]   ;;  %v1685_v38 = vld [vmem:[%s2392_s1 + $0x90] ss:$8 sps:$4 sm:$0xff]   ;;  %v1687_v40 = vld [vmem:[%s2392_s1 + $0xa4] ss:$8 sps:$4 sm:$0xff]  }
  0x14   : > { %1118 = vmatpush1.bf16.msra.mxu1 %v1649_v14  ;;  %s1601_s26 = smul.u32 36, %s184_s19  ;;  %v1686_v39 = vld [vmem:[%s2392_s1 + $0x290] ss:$8 sps:$4 sm:$0xff]   ;;  %v1689_v41 = vld [vmem:[%s2392_s1 + $0x2a4] ss:$8 sps:$4 sm:$0xff]   ;;  %p1577_p5 = scmp.ne.s32.totalorder %s1866_s12, 0 }
  0x15   : > { %1200 = vmatpush1.bf16.msra.mxu0 %v1650_v15  ;;  %1119 = vmatprep.subr.bf16.mxu1 %v1651_v16  ;;  %v1691_v42 = vld [vmem:[%s2392_s1 + $0xa0] ss:$8 sps:$4 sm:$0xff]   ;;  %v1693_v44 = vld [vmem:[%s2392_s1 + $0xb4] ss:$8 sps:$4 sm:$0xff]   ;;  %v1697_v47 = vld [vmem:[%s2392_s1 + $0xb0] ss:$8 sps:$4 sm:$0xff]  }
  0x16   : > { %1201 = vmatprep.subr.bf16.mxu0 %v1653_v17  ;;  %v1692_v43 = vld [vmem:[%s2392_s1 + $0x2a0] ss:$8 sps:$4 sm:$0xff]   ;;  %s2054_s16 = scalar_lea.vmem %s2391_s0, %s1601_s26  ;;  %v1695_v45 = vld [vmem:[%s2392_s1 + $0x2b4] ss:$8 sps:$4 sm:$0xff]   ;;  %v1698_v49 = vld [vmem:[%s2392_s1 + $0x2b0] ss:$8 sps:$4 sm:$0xff]  }
  0x17   : > { %v198_v46 = vld [vmem:[%s2054_s16] sm:$0xff]  ;;  %v200_v50 = vld [vmem:[%s2054_s16 + $0x10] sm:$0xff] }
  0x18   : > { %1120 = vmatpush1.bf16.msra.mxu1 %v1655_v18  ;;  %v1425_v48 = vcombine.high %v198_v46, %v198_v46  ;;  %v1699_v51 = vld [vmem:[%s2392_s1 + $0xc4] ss:$8 sps:$4 sm:$0xff]   ;;  %v1429_v53 = vcombine.high %v200_v50, %v200_v50  ;;  %v1703_v54 = vld [vmem:[%s2392_s1 + $0xc0] ss:$8 sps:$4 sm:$0xff]   ;;  %v1705_v56 = vld [vmem:[%s2392_s1 + $0xd4] ss:$8 sps:$4 sm:$0xff]   ;;  %v1424_v6 = vcombine.low %v198_v46, %v198_v46  ;;  %v1428_v7 = vcombine.low %v200_v50, %v200_v50 }
  0x19   : > { %1202 = vmatpush1.bf16.msra.mxu0 %v1656_v19  ;;  %1121 = vmatprep.subr.bf16.mxu1 %v1657_v20  ;;  %v1701_v52 = vld [vmem:[%s2392_s1 + $0x2c4] ss:$8 sps:$4 sm:$0xff]   ;;  %v1704_v55 = vld [vmem:[%s2392_s1 + $0x2c0] ss:$8 sps:$4 sm:$0xff]   ;;  %v1707_v57 = vld [vmem:[%s2392_s1 + $0x2d4] ss:$8 sps:$4 sm:$0xff]  }
  0x1a   : > { %1203 = vmatprep.subr.bf16.mxu0 %v1659_v21  ;;  %1143 = vmatprep.mubr.bf16.mxu1 %v1425_v48  ;;  %v1709_v58 = vld [vmem:[%s2392_s1 + $0xd0] ss:$8 sps:$4 sm:$0xff]   ;;  %v1711_v60 = vld [vmem:[%s2392_s1 + $0xe4] ss:$8 sps:$4 sm:$0xff]   ;;  %v1715_v62 = vld [vmem:[%s2392_s1 + $0xe0] ss:$8 sps:$4 sm:$0xff]  }
  0x1b   : > { %1225 = vmatprep.mubr.bf16.mxu0 %v1429_v53  ;;  %v1710_v59 = vld [vmem:[%s2392_s1 + $0x2d0] ss:$8 sps:$4 sm:$0xff]   ;;  %v1713_v61 = vld [vmem:[%s2392_s1 + $0x2e4] ss:$8 sps:$4 sm:$0xff]   ;;  %v1716_v63 = vld [vmem:[%s2392_s1 + $0x2e0] ss:$8 sps:$4 sm:$0xff]  }
  0x1c   : > { %1122 = vmatpush1.bf16.msra.mxu1 %v1661_v22  ;;  %v1717_v0 = vld [vmem:[%s2392_s1 + $0xf4] ss:$8 sps:$4 sm:$0xff]   ;;  %v1721_v2 = vld [vmem:[%s2392_s1 + $0xf0] ss:$8 sps:$4 sm:$0xff]   ;;  %v1727_v4 = vld [vmem:[%s2392_s1 + $0x104] ss:$8 sps:$4 sm:$0xff]  }
  0x1d   : > { %1204 = vmatpush1.bf16.msra.mxu0 %v1662_v23  ;;  %1123 = vmatprep.subr.bf16.mxu1 %v1663_v24  ;;  %v1719_v1 = vld [vmem:[%s2392_s1 + $0x2f4] ss:$8 sps:$4 sm:$0xff]   ;;  %v1722_v3 = vld [vmem:[%s2392_s1 + $0x2f0] ss:$8 sps:$4 sm:$0xff]   ;;  %v1732_v5 = vld [vmem:[%s2392_s1 + $0x304] ss:$8 sps:$4 sm:$0xff]  }
  0x1e   : > { %1205 = vmatprep.subr.bf16.mxu0 %v1665_v25  ;;  %v1725_v8 = vld [vmem:[%s2392_s1 + $0x100] ss:$8 sps:$4 sm:$0xff]   ;;  %v1735_v10 = vld [vmem:[%s2392_s1 + $0x114] ss:$8 sps:$4 sm:$0xff]   ;;  %v1733_v12 = vld [vmem:[%s2392_s1 + $0x110] ss:$8 sps:$4 sm:$0xff]  }
  0x1f   : > { %v1730_v9 = vld [vmem:[%s2392_s1 + $0x300] ss:$8 sps:$4 sm:$0xff]   ;;  %v1738_v11 = vld [vmem:[%s2392_s1 + $0x314] ss:$8 sps:$4 sm:$0xff]   ;;  %v1736_v13 = vld [vmem:[%s2392_s1 + $0x310] ss:$8 sps:$4 sm:$0xff]  }
  0x20   : > { %1124 = vmatpush1.bf16.msra.mxu1 %v1667_v26  ;;  %v1741_v14 = vld [vmem:[%s2392_s1 + $0x124] ss:$8 sps:$4 sm:$0xff]   ;;  %v1739_v16 = vld [vmem:[%s2392_s1 + $0x120] ss:$8 sps:$4 sm:$0xff]   ;;  %v1747_v18 = vld [vmem:[%s2392_s1 + $0x134] ss:$8 sps:$4 sm:$0xff]  }
  0x21   : > { %1206 = vmatpush1.bf16.msra.mxu0 %v1668_v27  ;;  %1125 = vmatprep.subr.bf16.mxu1 %v1669_v28  ;;  %v1744_v15 = vld [vmem:[%s2392_s1 + $0x324] ss:$8 sps:$4 sm:$0xff]   ;;  %v1742_v17 = vld [vmem:[%s2392_s1 + $0x320] ss:$8 sps:$4 sm:$0xff]   ;;  %v1750_v19 = vld [vmem:[%s2392_s1 + $0x334] ss:$8 sps:$4 sm:$0xff]  }
  0x22   : > { %1207 = vmatprep.subr.bf16.mxu0 %v1671_v29  ;;  %v1745_v20 = vld [vmem:[%s2392_s1 + $0x130] ss:$8 sps:$4 sm:$0xff]   ;;  %v1753_v22 = vld [vmem:[%s2392_s1 + $0x144] ss:$8 sps:$4 sm:$0xff]   ;;  %v1751_v24 = vld [vmem:[%s2392_s1 + $0x140] ss:$8 sps:$4 sm:$0xff]  }
  0x23   : > { %v1748_v21 = vld [vmem:[%s2392_s1 + $0x330] ss:$8 sps:$4 sm:$0xff]   ;;  %v1756_v23 = vld [vmem:[%s2392_s1 + $0x344] ss:$8 sps:$4 sm:$0xff]   ;;  %v1754_v25 = vld [vmem:[%s2392_s1 + $0x340] ss:$8 sps:$4 sm:$0xff]  }
  0x24   : > { %1126 = vmatpush1.bf16.msra.mxu1 %v1673_v30  ;;  %v1759_v26 = vld [vmem:[%s2392_s1 + $0x154] ss:$8 sps:$4 sm:$0xff]   ;;  %v1757_v28 = vld [vmem:[%s2392_s1 + $0x150] ss:$8 sps:$4 sm:$0xff]   ;;  %v1765_v30 = vld [vmem:[%s2392_s1 + $0x164] ss:$8 sps:$4 sm:$0xff]  }
  0x25   : > { %1208 = vmatpush1.bf16.msra.mxu0 %v1674_v31  ;;  %1127 = vmatprep.subr.bf16.mxu1 %v1675_v32  ;;  %v1762_v27 = vld [vmem:[%s2392_s1 + $0x354] ss:$8 sps:$4 sm:$0xff]   ;;  %v1760_v29 = vld [vmem:[%s2392_s1 + $0x350] ss:$8 sps:$4 sm:$0xff]   ;;  %v1768_v31 = vld [vmem:[%s2392_s1 + $0x364] ss:$8 sps:$4 sm:$0xff]  }
  0x26   : > { %1209 = vmatprep.subr.bf16.mxu0 %v1677_v33  ;;  %v2197_v32 = vld [vmem:[%s2054_s16 + $0x8] sm:$0xff]  ;;  %v2200_v33 = vld [vmem:[%s2054_s16 + $0x18] sm:$0xff] }
  0x27   : > { %v1783_v46 = vld [vmem:[%s2392_s1 + $0x194] ss:$8 sps:$4 sm:$0xff]   ;;  %v1781_v48 = vld [vmem:[%s2392_s1 + $0x190] ss:$8 sps:$4 sm:$0xff]   ;;  %v1789_v50 = vld [vmem:[%s2392_s1 + $0x1a4] ss:$8 sps:$4 sm:$0xff]  }
  0x28   : > { %1128 = vmatpush1.bf16.msra.mxu1 %v1679_v34  ;;  %v1763_v34 = vld [vmem:[%s2392_s1 + $0x160] ss:$8 sps:$4 sm:$0xff]  }
  0x29   : > { %1210 = vmatpush1.bf16.msra.mxu0 %v1680_v35  ;;  %1129 = vmatprep.subr.bf16.mxu1 %v1681_v36  ;;  %v1766_v35 = vld [vmem:[%s2392_s1 + $0x360] ss:$8 sps:$4 sm:$0xff]   ;;  %v1427_v36 = vcombine.high %v2197_v32, %v2197_v32 }
  0x2a   : > { %1211 = vmatprep.subr.bf16.mxu0 %v1683_v37  ;;  %v1431_v37 = vcombine.high %v2200_v33, %v2200_v33  ;;  %v1790_v53 = vld [vmem:[%s2392_s1 + $0x3a0] ss:$8 sps:$4 sm:$0xff]  }
  0x2c   : > { %1130 = vmatpush1.bf16.msra.mxu1 %v1685_v38  ;;  %v1771_v38 = vld [vmem:[%s2392_s1 + $0x174] ss:$8 sps:$4 sm:$0xff]  }
  0x2d   : > { %1212 = vmatpush1.bf16.msra.mxu0 %v1686_v39  ;;  %1131 = vmatprep.subr.bf16.mxu1 %v1687_v40  ;;  %v1774_v39 = vld [vmem:[%s2392_s1 + $0x374] ss:$8 sps:$4 sm:$0xff]   ;;  %v1769_v40 = vld [vmem:[%s2392_s1 + $0x170] ss:$8 sps:$4 sm:$0xff]  }
  0x2e   : > { %1213 = vmatprep.subr.bf16.mxu0 %v1689_v41  ;;  %v1772_v41 = vld [vmem:[%s2392_s1 + $0x370] ss:$8 sps:$4 sm:$0xff]  }
  0x30   : > { %1132 = vmatpush1.bf16.msra.mxu1 %v1691_v42  ;;  %v1777_v42 = vld [vmem:[%s2392_s1 + $0x184] ss:$8 sps:$4 sm:$0xff]  }
  0x31   : > { %1214 = vmatpush1.bf16.msra.mxu0 %v1692_v43  ;;  %1133 = vmatprep.subr.bf16.mxu1 %v1693_v44  ;;  %v1780_v43 = vld [vmem:[%s2392_s1 + $0x384] ss:$8 sps:$4 sm:$0xff]   ;;  %v1775_v44 = vld [vmem:[%s2392_s1 + $0x180] ss:$8 sps:$4 sm:$0xff]  }
  0x32   : > { %1215 = vmatprep.subr.bf16.mxu0 %v1695_v45  ;;  %v1778_v45 = vld [vmem:[%s2392_s1 + $0x380] ss:$8 sps:$4 sm:$0xff]  }
  0x34   : > { %1134 = vmatpush1.bf16.msra.mxu1 %v1697_v47  ;;  %v1786_v47 = vld [vmem:[%s2392_s1 + $0x394] ss:$8 sps:$4 sm:$0xff]  }
  0x35   : > { %1216 = vmatpush1.bf16.msra.mxu0 %v1698_v49  ;;  %1135 = vmatprep.subr.bf16.mxu1 %v1699_v51  ;;  %v1784_v49 = vld [vmem:[%s2392_s1 + $0x390] ss:$8 sps:$4 sm:$0xff]   ;;  %v1792_v51 = vld [vmem:[%s2392_s1 + $0x3a4] ss:$8 sps:$4 sm:$0xff]  }
  0x36   : > { %1217 = vmatprep.subr.bf16.mxu0 %v1701_v52  ;;  %v1787_v52 = vld [vmem:[%s2392_s1 + $0x1a0] ss:$8 sps:$4 sm:$0xff]  }
  0x38   : > { %1136 = vmatpush1.bf16.msra.mxu1 %v1703_v54  ;;  %v1795_v54 = vld [vmem:[%s2392_s1 + $0x1b4] ss:$8 sps:$4 sm:$0xff]  }
  0x39   : > { %1218 = vmatpush1.bf16.msra.mxu0 %v1704_v55  ;;  %1137 = vmatprep.subr.bf16.mxu1 %v1705_v56  ;;  %v1798_v55 = vld [vmem:[%s2392_s1 + $0x3b4] ss:$8 sps:$4 sm:$0xff]   ;;  %v1793_v56 = vld [vmem:[%s2392_s1 + $0x1b0] ss:$8 sps:$4 sm:$0xff]  }
  0x3a   : > { %1219 = vmatprep.subr.bf16.mxu0 %v1707_v57  ;;  %v1796_v57 = vld [vmem:[%s2392_s1 + $0x3b0] ss:$8 sps:$4 sm:$0xff]  }
  0x3c   : > { %1138 = vmatpush1.bf16.msra.mxu1 %v1709_v58  ;;  %v1801_v58 = vld [vmem:[%s2392_s1 + $0x1c4] ss:$8 sps:$4 sm:$0xff]  }
  0x3d   : > { %1220 = vmatpush1.bf16.msra.mxu0 %v1710_v59  ;;  %1139 = vmatprep.subr.bf16.mxu1 %v1711_v60  ;;  %v1804_v59 = vld [vmem:[%s2392_s1 + $0x3c4] ss:$8 sps:$4 sm:$0xff]   ;;  %v1799_v60 = vld [vmem:[%s2392_s1 + $0x1c0] ss:$8 sps:$4 sm:$0xff]  }
  0x3e   : > { %1221 = vmatprep.subr.bf16.mxu0 %v1713_v61  ;;  %v1802_v61 = vld [vmem:[%s2392_s1 + $0x3c0] ss:$8 sps:$4 sm:$0xff]  }
  0x40   : > { %1140 = vmatpush1.bf16.msra.mxu1 %v1715_v62  ;;  %v1807_v62 = vld [vmem:[%s2392_s1 + $0x1d4] ss:$8 sps:$4 sm:$0xff]  }
  0x41   : > { %1222 = vmatpush1.bf16.msra.mxu0 %v1716_v63  ;;  %1141 = vmatprep.subr.bf16.mxu1 %v1717_v0  ;;  %v1810_v63 = vld [vmem:[%s2392_s1 + $0x3d4] ss:$8 sps:$4 sm:$0xff]   ;;  %v1805_v0 = vld [vmem:[%s2392_s1 + $0x1d0] ss:$8 sps:$4 sm:$0xff]  }
  0x42   : > { %1223 = vmatprep.subr.bf16.mxu0 %v1719_v1  ;;  %v1808_v1 = vld [vmem:[%s2392_s1 + $0x3d0] ss:$8 sps:$4 sm:$0xff]  }
  0x44   : > { %1142 = vmatpush1.bf16.msra.mxu1 %v1721_v2  ;;  %v1813_v2 = vld [vmem:[%s2392_s1 + $0x1e4] ss:$8 sps:$4 sm:$0xff]  }
  0x45   : > { %1224 = vmatpush1.bf16.msra.mxu0 %v1722_v3  ;;  %1152 = vmatprep.subr.bf16.mxu1 %v1727_v4  ;;  %v1816_v3 = vld [vmem:[%s2392_s1 + $0x3e4] ss:$8 sps:$4 sm:$0xff]   ;;  %v1811_v4 = vld [vmem:[%s2392_s1 + $0x1e0] ss:$8 sps:$4 sm:$0xff]  }
  0x46   : > { %1234 = vmatprep.subr.bf16.mxu0 %v1732_v5  ;;  %v1814_v5 = vld [vmem:[%s2392_s1 + $0x3e0] ss:$8 sps:$4 sm:$0xff]  }
  0x47   : > { %1144 = vmatmul.mubr.bf16.vlgmr.msra.gmra.mrb[0].mxu1 %v1424_v6  ;;  %v1819_v6 = vld [vmem:[%s2392_s1 + $0x1f4] ss:$8 sps:$4 sm:$0xff]  }
  0x48   : > { %1226 = vmatmul.mubr.bf16.vlgmr.msra.gmra.mrb[0].mxu0 %v1428_v7  ;;  %1153 = vmatpush1.bf16.msra.mxu1 %v1725_v8  ;;  %v1822_v7 = vld [vmem:[%s2392_s1 + $0x3f4] ss:$8 sps:$4 sm:$0xff]   ;;  %v1817_v8 = vld [vmem:[%s2392_s1 + $0x1f0] ss:$8 sps:$4 sm:$0xff]  }
  0x49   : > { %1235 = vmatpush1.bf16.msra.mxu0 %v1730_v9  ;;  %1154 = vmatprep.subr.bf16.mxu1 %v1735_v10  ;;  %v1820_v9 = vld [vmem:[%s2392_s1 + $0x3f0] ss:$8 sps:$4 sm:$0xff]   ;;  %v1829_v10 = vld [vmem:[%s2392_s1 + $0x404] ss:$8 sps:$4 sm:$0xff]  }
  0x4a   : > { %1236 = vmatprep.subr.bf16.mxu0 %v1738_v11  ;;  %1184 = vmatprep.mubr.bf16.mxu1 %v1427_v36  ;;  %v1426_v11 = vcombine.low %v2197_v32, %v2197_v32 }
  0x4b   : > { %1266 = vmatprep.mubr.bf16.mxu0 %v1431_v37  ;;  %v347_v37 = vld [vmem:[%s2393_s2] sm:$0x3] }
  0x4c   : > { %1155 = vmatpush1.bf16.msra.mxu1 %v1733_v12  ;;  %v1430_v12 = vcombine.low %v2200_v33, %v2200_v33 }
  0x4d   : > { %1237 = vmatpush1.bf16.msra.mxu0 %v1736_v13  ;;  %1156 = vmatprep.subr.bf16.mxu1 %v1741_v14  ;;  %v1827_v13 = vld [vmem:[%s2392_s1 + $0x400] ss:$8 sps:$4 sm:$0xff]   ;;  %v1832_v14 = vld [vmem:[%s2392_s1 + $0x414] ss:$8 sps:$4 sm:$0xff]  }
  0x4e   : > { %1238 = vmatprep.subr.bf16.mxu0 %v1744_v15  ;;  %v1830_v15 = vld [vmem:[%s2392_s1 + $0x410] ss:$8 sps:$4 sm:$0xff]  }
  0x50   : > { %1157 = vmatpush1.bf16.msra.mxu1 %v1739_v16  ;;  %v1876_v16 = vmov 0  }
  0x51   : > { %1239 = vmatpush1.bf16.msra.mxu0 %v1742_v17  ;;  %1158 = vmatprep.subr.bf16.mxu1 %v1747_v18  ;;  %v1835_v17 = vld [vmem:[%s2392_s1 + $0x424] ss:$8 sps:$4 sm:$0xff]   ;;  %v1833_v18 = vld [vmem:[%s2392_s1 + $0x420] ss:$8 sps:$4 sm:$0xff]  }
  0x52   : > { %1240 = vmatprep.subr.bf16.mxu0 %v1750_v19  ;;  %v1838_v19 = vld [vmem:[%s2392_s1 + $0x434] ss:$8 sps:$4 sm:$0xff]  }
  0x54   : > { %1159 = vmatpush1.bf16.msra.mxu1 %v1745_v20  ;;  %v1836_v20 = vld [vmem:[%s2392_s1 + $0x430] ss:$8 sps:$4 sm:$0xff]  }
  0x55   : > { %1241 = vmatpush1.bf16.msra.mxu0 %v1748_v21  ;;  %1160 = vmatprep.subr.bf16.mxu1 %v1753_v22  ;;  %v1841_v21 = vld [vmem:[%s2392_s1 + $0x444] ss:$8 sps:$4 sm:$0xff]   ;;  %v1839_v22 = vld [vmem:[%s2392_s1 + $0x440] ss:$8 sps:$4 sm:$0xff]  }
  0x56   : > { %1242 = vmatprep.subr.bf16.mxu0 %v1756_v23  ;;  %v1844_v23 = vld [vmem:[%s2392_s1 + $0x454] ss:$8 sps:$4 sm:$0xff]  }
  0x58   : > { %1161 = vmatpush1.bf16.msra.mxu1 %v1751_v24  ;;  %v1842_v24 = vld [vmem:[%s2392_s1 + $0x450] ss:$8 sps:$4 sm:$0xff]  }
  0x59   : > { %1243 = vmatpush1.bf16.msra.mxu0 %v1754_v25  ;;  %1162 = vmatprep.subr.bf16.mxu1 %v1759_v26  ;;  %v1847_v25 = vld [vmem:[%s2392_s1 + $0x464] ss:$8 sps:$4 sm:$0xff]   ;;  %v1845_v26 = vld [vmem:[%s2392_s1 + $0x460] ss:$8 sps:$4 sm:$0xff]  }
  0x5a   : > { %1244 = vmatprep.subr.bf16.mxu0 %v1762_v27  ;;  %v1850_v27 = vld [vmem:[%s2392_s1 + $0x474] ss:$8 sps:$4 sm:$0xff]  }
  0x5c   : > { %1163 = vmatpush1.bf16.msra.mxu1 %v1757_v28  ;;  %v1848_v28 = vld [vmem:[%s2392_s1 + $0x470] ss:$8 sps:$4 sm:$0xff]  }
  0x5d   : > { %1245 = vmatpush1.bf16.msra.mxu0 %v1760_v29  ;;  %1164 = vmatprep.subr.bf16.mxu1 %v1765_v30  ;;  %v1851_v29 = vld [vmem:[%s2054_s16 + $0x20] ss:$0 sps:$4 sm:$0xff]  }
  0x5e   : > { %1246 = vmatprep.subr.bf16.mxu0 %v1768_v31 }
  0x60   : > { %1165 = vmatpush1.bf16.msra.mxu1 %v1763_v34  ;;  %v349_v34 = vlaneseq }
  0x61   : > { %1247 = vmatpush1.bf16.msra.mxu0 %v1766_v35  ;;  %1166 = vmatprep.subr.bf16.mxu1 %v1771_v38 }
  0x62   : > { %1248 = vmatprep.subr.bf16.mxu0 %v1774_v39  ;;  %v350_v35 = vshrl.u32 %v349_v34, 7 }
  0x64   : > { %1167 = vmatpush1.bf16.msra.mxu1 %v1769_v40  ;;  %v351_v36 = vsub.s32 0, %v350_v35  ;;  %v355_v38 = vsub.s32 1, %v350_v35 }
  0x65   : > { %1249 = vmatpush1.bf16.msra.mxu0 %v1772_v41  ;;  %1168 = vmatprep.subr.bf16.mxu1 %v1777_v42 }
  0x66   : > { %1250 = vmatprep.subr.bf16.mxu0 %v1780_v43  ;;  %v352_v39 = vrot.slane %v347_v37, %v351_v36  ;;  %v356_v40 = vrot.slane %v347_v37, %v355_v38 }
  0x68   : > { %1169 = vmatpush1.bf16.msra.mxu1 %v1775_v44 }
  0x69   : > { %1251 = vmatpush1.bf16.msra.mxu0 %v1778_v45  ;;  %1170 = vmatprep.subr.bf16.mxu1 %v1783_v46 }
  0x6a   : > { %1252 = vmatprep.subr.bf16.mxu0 %v1786_v47 }
  0x6c   : > { %1171 = vmatpush1.bf16.msra.mxu1 %v1781_v48 }
  0x6d   : > { %1253 = vmatpush1.bf16.msra.mxu0 %v1784_v49  ;;  %1172 = vmatprep.subr.bf16.mxu1 %v1789_v50 }
  0x6e   : > { %1254 = vmatprep.subr.bf16.mxu0 %v1792_v51 }
  0x70   : > { %1173 = vmatpush1.bf16.msra.mxu1 %v1787_v52 }
  0x71   : > { %1255 = vmatpush1.bf16.msra.mxu0 %v1790_v53  ;;  %1174 = vmatprep.subr.bf16.mxu1 %v1795_v54 }
  0x72   : > { %1256 = vmatprep.subr.bf16.mxu0 %v1798_v55 }
  0x74   : > { %1175 = vmatpush1.bf16.msra.mxu1 %v1793_v56 }
  0x75   : > { %1257 = vmatpush1.bf16.msra.mxu0 %v1796_v57  ;;  %1176 = vmatprep.subr.bf16.mxu1 %v1801_v58 }
  0x76   : > { %1258 = vmatprep.subr.bf16.mxu0 %v1804_v59 }
  0x78   : > { %1177 = vmatpush1.bf16.msra.mxu1 %v1799_v60 }
  0x79   : > { %1259 = vmatpush1.bf16.msra.mxu0 %v1802_v61  ;;  %1178 = vmatprep.subr.bf16.mxu1 %v1807_v62 }
  0x7a   : > { %1260 = vmatprep.subr.bf16.mxu0 %v1810_v63 }
  0x7c   : > { %1179 = vmatpush1.bf16.msra.mxu1 %v1805_v0 }
  0x7d   : > { %1261 = vmatpush1.bf16.msra.mxu0 %v1808_v1  ;;  %1180 = vmatprep.subr.bf16.mxu1 %v1813_v2 }
  0x7e   : > { %1262 = vmatprep.subr.bf16.mxu0 %v1816_v3 }
  0x80   : > { %1181 = vmatpush1.bf16.msra.mxu1 %v1811_v4 }
  0x81   : > { %1263 = vmatpush1.bf16.msra.mxu0 %v1814_v5  ;;  %1182 = vmatprep.subr.bf16.mxu1 %v1819_v6 }
  0x82   : > { %1264 = vmatprep.subr.bf16.mxu0 %v1822_v7 }
  0x84   : > { %1183 = vmatpush1.bf16.msra.mxu1 %v1817_v8 }
  0x85   : > { %1265 = vmatpush1.bf16.msra.mxu0 %v1820_v9 }
  0x86   : > { %1275 = vmatprep.subr.bf16.mxu0 %v1829_v10 }
  0x87   : > { %1185 = vmatmul.mubr.bf16.vlgmr.msra.gmra.mrb[0].mxu1 %v1426_v11 }
  0x88   : > { %1267 = vmatmul.mubr.bf16.vlgmr.msra.gmra.mrb[0].mxu0 %v1430_v12 }
  0x89   : > { %1276 = vmatpush1.bf16.msra.mxu0 %v1827_v13  ;;  %1307 = vmatprep.mubr.bf16.mxu0 %v1876_v16 }
  0x8a   : > { %1277 = vmatprep.subr.bf16.mxu0 %v1832_v14 }
  0x8d   : > { %1278 = vmatpush1.bf16.msra.mxu0 %v1830_v15 }
  0x8e   : > { %1279 = vmatprep.subr.bf16.mxu0 %v1835_v17 }
  0x91   : > { %1280 = vmatpush1.bf16.msra.mxu0 %v1833_v18 }
  0x92   : > { %1281 = vmatprep.subr.bf16.mxu0 %v1838_v19 }
  0x95   : > { %1282 = vmatpush1.bf16.msra.mxu0 %v1836_v20 }
  0x96   : > { %1283 = vmatprep.subr.bf16.mxu0 %v1841_v21 }
  0x99   : > { %1284 = vmatpush1.bf16.msra.mxu0 %v1839_v22 }
  0x9a   : > { %1285 = vmatprep.subr.bf16.mxu0 %v1844_v23 }
  0x9d   : > { %1286 = vmatpush1.bf16.msra.mxu0 %v1842_v24 }
  0x9e   : > { %1287 = vmatprep.subr.bf16.mxu0 %v1847_v25 }
  0xa1   : > { %1288 = vmatpush1.bf16.msra.mxu0 %v1845_v26 }
  0xa2   : > { %1289 = vmatprep.subr.bf16.mxu0 %v1850_v27 }
  0xa5   : > { %1290 = vmatpush1.bf16.msra.mxu0 %v1848_v28 }
  0xa8   : > { %1308 = vmatmul.mubr.bf16.vlgmr.msra.gmra.mrb[0].mxu0 %v1851_v29 }
 0x15a   : > { %v1186_v30 = vpop.f32.mrb[0].mxu1 }
 0x15b   : > { %v1188_v31 = vpop.f32.mrb[1].mxu1  ;;  %v1585_v41 = vadd.f32 %v1186_v30, %v352_v39 }
 0x15c   : > { %v1190_v32 = vpop.f32.mrb[2].mxu1  ;;  %v1587_v42 = vadd.f32 %v1188_v31, %v356_v40 }
 0x15d   : > { %v1191_v33 = vpop.f32.mrb[3].mxu1 }
 0x179   : > { %1321 = sbr.rel (%p1577_p5) target bundleno = 386 (0x182), region = 36 }
 0x17b   : > { %v1309_v43 = vpop.f32.mrb[0].mxu0 }
 0x17c   : > { %v1586_v44 = vadd.f32 %v1585_v41, %v1309_v43  ;;  %v1311_v45 = vpop.f32.mrb[1].mxu0 }
 0x17d   : > { %v1588_v46 = vadd.f32 %v1587_v42, %v1311_v45  ;;  %v1313_v47 = vpop.f32.mrb[2].mxu0 }
 0x17e   : > { %v1316_v48 = vmax.f32 %v1586_v44, 0.0  ;;  %v1314_v49 = vpop.f32.mrb[3].mxu0 }
 0x17f   : > { %v1317_v50 = vmax.f32 %v1588_v46, 0.0 }
 0x180   : > { %1322 = vst [vmem:[#allocation2] sm:$0xff] %v1316_v48 }
 0x181   : > { %1323 = vst [vmem:[#allocation2 + $0x8] sm:$0xff] %v1317_v50 }
 0x182 PF: > { %p1578_p6 = scmp.le.s32.totalorder %s1866_s12, 0 }
 0x184   : > { %1327 = sbr.rel (%p1578_p6) target bundleno = 397 (0x18d), region = 40 }
 0x188   : > { %v1329_v52 = vld [vmem:[#allocation2 + $0x8] sm:$0xff] (!%p1578_p6) }
 0x189   : > { %v1328_v51 = vld [vmem:[#allocation2] sm:$0xff] (!%p1578_p6)  ;;  %v1331_v54 = vmax.f32 (!%p1578_p6), %v1329_v52, %v1317_v50 }
 0x18a   : > { %v1330_v53 = vmax.f32 (!%p1578_p6), %v1328_v51, %v1316_v48 }
 0x18b   : > { %1333 = vst [vmem:[#allocation2 + $0x8] sm:$0xff] %v1331_v54 }
 0x18c   : > { %1332 = vst [vmem:[#allocation2] sm:$0xff] %v1330_v53 }
 0x18d PF: > { %p1579_p7 = scmp.ne.s32.totalorder %s1866_s12, 3 }
 0x18f   : > { %1337 = sbr.rel (%p1579_p7) target bundleno = 408 (0x198), region = 44 }
 0x193   : > { %v1338_v55 = vld [vmem:[#allocation2] sm:$0xff] (!%p1579_p7) }
 0x194   : > { %v1339_v56 = vld [vmem:[#allocation2 + $0x8] sm:$0xff] (!%p1579_p7) }
 0x195   : > { %v1584_v57 = vpack.c.bf16 (!%p1579_p7), %v1339_v56, %v1338_v55 }
 0x197   : > { %1348 = vst [vmem:[%s2394_s3] sm:$0xff] %v1584_v57 }
 0x198 PF: > { %s13_s14 = sadd.s32 1, %s1874_s14   ;;  %s2395_s12 = smov %s1870_s13 }
 0x199   : > { %p10_p8 = scmp.ge.s32.totalorder %s13_s14, 6   ;;  %s2396_s13 = smov %s2398_s15 }
 0x19b   :  { %12 = sbr.rel (!%p10_p8) target bundleno = 2 (0x2), region = 74 }

// kernel: hybrid_cnn_forward.9
= control target key start
LH: loop header
LB: loop body
LE: loop exit
PB: predicated region body
PF: predicated region fallthrough
CT: control target
= control target key end

     0   :  { %v1818_v2 = vmov 0   ;;  %s2366_s0 = inlined_call_operand.vmem [shape: bf16[2,1,512], index: 0, kind: input, shape index: {}]   ;;  %s2367_s1 = inlined_call_operand.vmem [shape: bf16[2,128], index: 1, kind: input, shape index: {}]   ;;  %s2368_s2 = inlined_call_operand.vmem [shape: bf16[128,256], index: 2, kind: input, shape index: {}]   ;;  %s2369_s3 = inlined_call_operand.vmem [shape: f32[1,256], index: 3, kind: input, shape index: {}]   ;;  %s2370_s4 = inlined_call_operand.vmem [shape: bf16[256,128], index: 4, kind: input, shape index: {}]   ;;  %s2371_s5 = inlined_call_operand.vmem [shape: f32[1,128], index: 5, kind: input, shape index: {}]   ;;  %s2372_s6 = inlined_call_operand.vmem [shape: bf16[512,256], index: 6, kind: input, shape index: {}]   ;;  %s2373_s7 = inlined_call_operand.vmem [shape: bf16[128,256], index: 7, kind: input, shape index: {}]   ;;  %s2374_s8 = inlined_call_operand.vmem [shape: f32[1,256], index: 8, kind: input, shape index: {}]   ;;  %s2375_s9 = inlined_call_operand.vmem [shape: bf16[256,128], index: 9, kind: input, shape index: {}]   ;;  %s2376_s10 = inlined_call_operand.vmem [shape: f32[1,128], index: 10, kind: input, shape index: {}]   ;;  %s2377_s11 = inlined_call_operand.vmem [shape: bf16[128,128], index: 11, kind: input, shape index: {}]   ;;  %s2378_s12 = inlined_call_operand.vmem [shape: f32[1,128], index: 12, kind: input, shape index: {}]   ;;  %s2379_s13 = inlined_call_operand.hbm [shape: f32[2,128], index: 13, kind: output, shape index: {}]  }
   0x1   :  { %v1610_v0 = vld [vmem:[%s2368_s2 + $0x4] ss:$8 sps:$4 sm:$0xff]   ;;  %v1612_v1 = vld [vmem:[%s2368_s2] ss:$8 sps:$4 sm:$0xff]   ;;  %243 = vmatprep.mubr.bf16.mxu0 %v1818_v2  ;;  %v1613_v3 = vld [vmem:[%s2368_s2 + $0x14] ss:$8 sps:$4 sm:$0xff]  }
   0x2   :  { %211 = vmatprep.subr.bf16.mxu0 %v1610_v0  ;;  %v1615_v4 = vld [vmem:[%s2368_s2 + $0x10] ss:$8 sps:$4 sm:$0xff]   ;;  %v1616_v5 = vld [vmem:[%s2368_s2 + $0x24] ss:$8 sps:$4 sm:$0xff]   ;;  %v1618_v6 = vld [vmem:[%s2368_s2 + $0x20] ss:$8 sps:$4 sm:$0xff]  }
   0x3   :  { %212 = vmatpush1.bf16.msra.mxu0 %v1612_v1  ;;  %v1619_v7 = vld [vmem:[%s2368_s2 + $0x34] ss:$8 sps:$4 sm:$0xff]   ;;  %v1621_v8 = vld [vmem:[%s2368_s2 + $0x30] ss:$8 sps:$4 sm:$0xff]   ;;  %v1622_v9 = vld [vmem:[%s2368_s2 + $0x44] ss:$8 sps:$4 sm:$0xff]  }
   0x4   :  { %213 = vmatprep.subr.bf16.mxu0 %v1613_v3  ;;  %v1634_v10 = vld [vmem:[%s2370_s4 + $0x40] sm:$0xff]   ;;  %v1636_v13 = vld [vmem:[%s2370_s4 + $0x48] sm:$0xff]   ;;  %v1638_v15 = vld [vmem:[%s2370_s4 + $0x50] sm:$0xff]  }
   0x5   :  { %v1635_v11 = vld [vmem:[%s2370_s4] sm:$0xff]   ;;  %1533 = vmatprep.subr.bf16.mxu1 %v1634_v10  ;;  %v1637_v14 = vld [vmem:[%s2370_s4 + $0x8] sm:$0xff]   ;;  %v1625_v16 = vld [vmem:[%s2368_s2 + $0x54] ss:$8 sps:$4 sm:$0xff]  }
   0x6   :  { %v1624_v12 = vld [vmem:[%s2368_s2 + $0x40] ss:$8 sps:$4 sm:$0xff]   ;;  %1534 = vmatpush3.bf16.msra.mxu1 %v1635_v11  ;;  %v1627_v17 = vld [vmem:[%s2368_s2 + $0x50] ss:$8 sps:$4 sm:$0xff]   ;;  %v1628_v20 = vld [vmem:[%s2368_s2 + $0x64] ss:$8 sps:$4 sm:$0xff]  }
   0x7   :  { %214 = vmatpush1.bf16.msra.mxu0 %v1615_v4  ;;  %1535 = vmatprep.subr.bf16.mxu1 %v1636_v13  ;;  %v1639_v18 = vld [vmem:[%s2370_s4 + $0x10] sm:$0xff]   ;;  %v1640_v19 = vld [vmem:[%s2370_s4 + $0x58] sm:$0xff]   ;;  %v1630_v21 = vld [vmem:[%s2368_s2 + $0x60] ss:$8 sps:$4 sm:$0xff]  }
   0x8   :  { %215 = vmatprep.subr.bf16.mxu0 %v1616_v5  ;;  %v1631_v22 = vld [vmem:[%s2368_s2 + $0x74] ss:$8 sps:$4 sm:$0xff]   ;;  %v1642_v24 = vld [vmem:[%s2370_s4 + $0x60] sm:$0xff]   ;;  %v1633_v26 = vld [vmem:[%s2368_s2 + $0x70] ss:$8 sps:$4 sm:$0xff]  }
   0x9   :  { %v1641_v23 = vld [vmem:[%s2370_s4 + $0x18] sm:$0xff]   ;;  %v1643_v25 = vld [vmem:[%s2370_s4 + $0x20] sm:$0xff]   ;;  %v1644_v27 = vld [vmem:[%s2370_s4 + $0x68] sm:$0xff]  }
   0xa   :  { %1536 = vmatpush3.bf16.msra.mxu1 %v1637_v14  ;;  %v1645_v28 = vld [vmem:[%s2370_s4 + $0x28] sm:$0xff]   ;;  %v102_v29 = vld [vmem:[%s2367_s1] sm:$0x1] }
   0xb   :  { %216 = vmatpush1.bf16.msra.mxu0 %v1618_v6  ;;  %1537 = vmatprep.subr.bf16.mxu1 %v1638_v15 }
   0xc   :  { %217 = vmatprep.subr.bf16.mxu0 %v1619_v7 }
   0xe   :  { %1538 = vmatpush3.bf16.msra.mxu1 %v1639_v18 }
   0xf   :  { %218 = vmatpush1.bf16.msra.mxu0 %v1621_v8  ;;  %1539 = vmatprep.subr.bf16.mxu1 %v1640_v19 }
  0x10   :  { %219 = vmatprep.subr.bf16.mxu0 %v1622_v9 }
  0x12   :  { %1540 = vmatpush3.bf16.msra.mxu1 %v1641_v23 }
  0x13   :  { %220 = vmatpush1.bf16.msra.mxu0 %v1624_v12  ;;  %1541 = vmatprep.subr.bf16.mxu1 %v1642_v24 }
  0x14   :  { %221 = vmatprep.subr.bf16.mxu0 %v1625_v16 }
  0x16   :  { %1542 = vmatpush3.bf16.msra.mxu1 %v1643_v25 }
  0x17   :  { %222 = vmatpush1.bf16.msra.mxu0 %v1627_v17  ;;  %1543 = vmatprep.subr.bf16.mxu1 %v1644_v27 }
  0x18   :  { %223 = vmatprep.subr.bf16.mxu0 %v1628_v20 }
  0x1a   :  { %1544 = vmatpush3.bf16.msra.mxu1 %v1645_v28 }
  0x1b   :  { %224 = vmatpush1.bf16.msra.mxu0 %v1630_v21 }
  0x1c   :  { %225 = vmatprep.subr.bf16.mxu0 %v1631_v22 }
  0x1f   :  { %226 = vmatpush1.bf16.msra.mxu0 %v1633_v26 }
  0x22   :  { %244 = vmatmul.mubr.bf16.vlgmr.msra.gmra.mrb[0].mxu0 %v102_v29 }
  0x23   :  { %625 = vmatprep.mubr.bf16.mxu0 %v1818_v2 }
  0x24   :  { %18 = vsyncpa [#allocation3], 0  ;;  %v1646_v30 = vld [vmem:[%s2370_s4 + $0x70] sm:$0xff]   ;;  %v1648_v32 = vld [vmem:[%s2370_s4 + $0x78] sm:$0xff]   ;;  %v54_v47 = vlaneseq  ;;  %vm651_vm0 = vcmask 1041409   ;;  %vm1820_vm1 = vmmov 0  }
  0x25   :  { %v1647_v31 = vld [vmem:[%s2370_s4 + $0x30] sm:$0xff]   ;;  %1545 = vmatprep.subr.bf16.mxu1 %v1646_v30  ;;  %v1649_v33 = vld [vmem:[%s2370_s4 + $0x38] sm:$0xff]   ;;  %v1652_v34 = vld [vmem:[%s2372_s6 + $0x4] ss:$8 sps:$4 sm:$0xff]  }
  0x26   :  { %1546 = vmatpush3.bf16.msra.mxu1 %v1647_v31  ;;  %v1674_v35 = vld [vmem:[%s2373_s7] ss:$8 sps:$4 sm:$0xff]   ;;  %v1676_v36 = vld [vmem:[%s2373_s7 + $0x4] ss:$8 sps:$4 sm:$0xff]   ;;  %v1680_v37 = vld [vmem:[%s2373_s7 + $0x10] ss:$8 sps:$4 sm:$0xff]  }
  0x27   :  { %1547 = vmatprep.subr.bf16.mxu1 %v1648_v32  ;;  %593 = vmatprep.subr.bf16.mxu0 %v1676_v36  ;;  %v1682_v38 = vld [vmem:[%s2373_s7 + $0x14] ss:$8 sps:$4 sm:$0xff]   ;;  %v1686_v39 = vld [vmem:[%s2373_s7 + $0x20] ss:$8 sps:$4 sm:$0xff]   ;;  %v1688_v40 = vld [vmem:[%s2373_s7 + $0x24] ss:$8 sps:$4 sm:$0xff]  }
  0x28   :  { %594 = vmatpush1.bf16.msra.mxu0 %v1674_v35  ;;  %v1692_v41 = vld [vmem:[%s2373_s7 + $0x30] ss:$8 sps:$4 sm:$0xff]   ;;  %v1694_v42 = vld [vmem:[%s2373_s7 + $0x34] ss:$8 sps:$4 sm:$0xff]   ;;  %v1698_v43 = vld [vmem:[%s2373_s7 + $0x40] ss:$8 sps:$4 sm:$0xff]  }
  0x29   :  { %595 = vmatprep.subr.bf16.mxu0 %v1682_v38  ;;  %v1700_v44 = vld [vmem:[%s2373_s7 + $0x44] ss:$8 sps:$4 sm:$0xff]   ;;  %v1704_v45 = vld [vmem:[%s2373_s7 + $0x50] ss:$8 sps:$4 sm:$0xff]   ;;  %v1706_v46 = vld [vmem:[%s2373_s7 + $0x54] ss:$8 sps:$4 sm:$0xff]  }
  0x2a   :  { %1548 = vmatpush3.bf16.msra.mxu1 %v1649_v33  ;;  %v2030_v48 = vshrl.u32 %v54_v47, 7  ;;  %v119_v50 = vld [vmem:[%s2369_s3] sm:$0x3]  ;;  %v1655_v1 = vld [vmem:[%s2372_s6 + $0x14] ss:$8 sps:$4 sm:$0xff]  }
  0x2b   :  { %987 = vmatprep.subr.bf16.mxu1 %v1652_v34  ;;  %v1650_v63 = vld [vmem:[%s2372_s6] ss:$8 sps:$4 sm:$0xff]   ;;  %v1653_v2 = vld [vmem:[%s2372_s6 + $0x10] ss:$8 sps:$4 sm:$0xff]   ;;  %v1658_v3 = vld [vmem:[%s2372_s6 + $0x24] ss:$8 sps:$4 sm:$0xff]  }
  0x2c   :  { %596 = vmatpush1.bf16.msra.mxu0 %v1680_v37  ;;  %v2033_v49 = vsub.s32 0, %v2030_v48  ;;  %v127_v51 = vsub.s32 1, %v2030_v48  ;;  %v1656_v4 = vld [vmem:[%s2372_s6 + $0x20] ss:$8 sps:$4 sm:$0xff]   ;;  %v1661_v5 = vld [vmem:[%s2372_s6 + $0x34] ss:$8 sps:$4 sm:$0xff]  }
  0x2d   :  { %597 = vmatprep.subr.bf16.mxu0 %v1688_v40  ;;  %v1659_v6 = vld [vmem:[%s2372_s6 + $0x30] ss:$8 sps:$4 sm:$0xff]   ;;  %v1664_v7 = vld [vmem:[%s2372_s6 + $0x44] ss:$8 sps:$4 sm:$0xff]   ;;  %v1662_v8 = vld [vmem:[%s2372_s6 + $0x40] ss:$8 sps:$4 sm:$0xff]  }
  0x2e   :  { %v124_v52 = vrot.slane %v119_v50, %v2033_v49  ;;  %v128_v53 = vrot.slane %v119_v50, %v127_v51  ;;  %v1667_v9 = vld [vmem:[%s2372_s6 + $0x54] ss:$8 sps:$4 sm:$0xff]   ;;  %v1665_v10 = vld [vmem:[%s2372_s6 + $0x50] ss:$8 sps:$4 sm:$0xff]   ;;  %v1670_v11 = vld [vmem:[%s2372_s6 + $0x64] ss:$8 sps:$4 sm:$0xff]  }
  0x2f   :  { %v1668_v12 = vld [vmem:[%s2372_s6 + $0x60] ss:$8 sps:$4 sm:$0xff]   ;;  %v1673_v13 = vld [vmem:[%s2372_s6 + $0x74] ss:$8 sps:$4 sm:$0xff]   ;;  %v1671_v14 = vld [vmem:[%s2372_s6 + $0x70] ss:$8 sps:$4 sm:$0xff]  }
  0x30   :  { %598 = vmatpush1.bf16.msra.mxu0 %v1686_v39  ;;  %v1679_v15 = vld [vmem:[%s2372_s6 + $0x84] ss:$8 sps:$4 sm:$0xff]   ;;  %v1677_v16 = vld [vmem:[%s2372_s6 + $0x80] ss:$8 sps:$4 sm:$0xff]   ;;  %v1685_v17 = vld [vmem:[%s2372_s6 + $0x94] ss:$8 sps:$4 sm:$0xff]  }
  0x31   :  { %599 = vmatprep.subr.bf16.mxu0 %v1694_v42  ;;  %v1683_v18 = vld [vmem:[%s2372_s6 + $0x90] ss:$8 sps:$4 sm:$0xff]   ;;  %v1691_v19 = vld [vmem:[%s2372_s6 + $0xa4] ss:$8 sps:$4 sm:$0xff]   ;;  %v1689_v20 = vld [vmem:[%s2372_s6 + $0xa0] ss:$8 sps:$4 sm:$0xff]  }
  0x32   :  { %v1697_v21 = vld [vmem:[%s2372_s6 + $0xb4] ss:$8 sps:$4 sm:$0xff]   ;;  %v1695_v22 = vld [vmem:[%s2372_s6 + $0xb0] ss:$8 sps:$4 sm:$0xff]   ;;  %v1703_v23 = vld [vmem:[%s2372_s6 + $0xc4] ss:$8 sps:$4 sm:$0xff]  }
  0x33   :  { %v1701_v24 = vld [vmem:[%s2372_s6 + $0xc0] ss:$8 sps:$4 sm:$0xff]   ;;  %v1709_v25 = vld [vmem:[%s2372_s6 + $0xd4] ss:$8 sps:$4 sm:$0xff]   ;;  %v1707_v26 = vld [vmem:[%s2372_s6 + $0xd0] ss:$8 sps:$4 sm:$0xff]  }
  0x34   :  { %600 = vmatpush1.bf16.msra.mxu0 %v1692_v41  ;;  %v1530_v27 = vld [vmem:[%s2366_s0] sm:$0xff]   ;;  %v60_v29 = vsub.s32 2, %v2030_v48  ;;  %v1721_v47 = vld [vmem:[%s2372_s6 + $0xf4] ss:$8 sps:$4 sm:$0xff]  }
  0x35   :  { %601 = vmatprep.subr.bf16.mxu0 %v1700_v44  ;;  %v2126_v28 = vunpack.c.h.bf16 %v1530_v27  ;;  %v2129_v30 = vunpack.c.l.bf16 %v1530_v27  ;;  %v1712_v32 = vld [vmem:[%s2373_s7 + $0x64] ss:$8 sps:$4 sm:$0xff]   ;;  %v1710_v34 = vld [vmem:[%s2373_s7 + $0x60] ss:$8 sps:$4 sm:$0xff]  }
  0x36   :  { %v1715_v35 = vld [vmem:[%s2372_s6 + $0xe4] ss:$8 sps:$4 sm:$0xff]   ;;  %v1713_v38 = vld [vmem:[%s2372_s6 + $0xe0] ss:$8 sps:$4 sm:$0xff]  }
  0x37   :  { %v77_v31 = vrot.slane %v2126_v28, %v60_v29  ;;  %v73_v33 = vrot.slane %v2126_v28, %v2033_v49  ;;  %v61_v36 = vrot.slane %v2129_v30, %v60_v29  ;;  %v57_v39 = vrot.slane %v2129_v30, %v2033_v49  ;;  %v1742_v27 = vld [vmem:[%s2372_s6 + $0x164] ss:$8 sps:$4 sm:$0xff]   ;;  %v1740_v29 = vld [vmem:[%s2372_s6 + $0x160] ss:$8 sps:$4 sm:$0xff]  }
  0x38   :  { %602 = vmatpush1.bf16.msra.mxu0 %v1698_v43  ;;  %v1718_v43 = vld [vmem:[%s2373_s7 + $0x74] ss:$8 sps:$4 sm:$0xff]  }
  0x39   :  { %603 = vmatprep.subr.bf16.mxu0 %v1706_v46  ;;  %v99_v37 = vpack.c.bf16 %v77_v31, %v77_v31  ;;  %v98_v40 = vpack.c.bf16 %v73_v33, %v73_v33  ;;  %v95_v41 = vpack.c.bf16 %v61_v36, %v61_v36  ;;  %v94_v44 = vpack.c.bf16 %v57_v39, %v57_v39  ;;  %v1716_v46 = vld [vmem:[%s2373_s7 + $0x70] ss:$8 sps:$4 sm:$0xff]   ;;  %v1745_v31 = vld [vmem:[%s2372_s6 + $0x174] ss:$8 sps:$4 sm:$0xff]   ;;  %v1748_v33 = vld [vmem:[%s2372_s6 + $0x184] ss:$8 sps:$4 sm:$0xff]  }
  0x3a   :  { %v1749_v36 = vld [vmem:[%s2372_s6 + $0x190] ss:$8 sps:$4 sm:$0xff]   ;;  %v64_v39 = vsub.s32 4, %v2030_v48 }
  0x3b   :  { %v647_v42 = vunpack.c.l.b16 %v99_v37  ;;  %v643_v50 = vunpack.c.l.b16 %v95_v41  ;;  %v1754_v37 = vld [vmem:[%s2372_s6 + $0x1a4] ss:$8 sps:$4 sm:$0xff]   ;;  %v1755_v41 = vld [vmem:[%s2372_s6 + $0x1b0] ss:$8 sps:$4 sm:$0xff]  }
  0x3c   :  { %604 = vmatpush1.bf16.msra.mxu0 %v1704_v45  ;;  %v646_v45 = vunpack.c.l.b16 %v98_v40  ;;  %v1757_v40 = vld [vmem:[%s2372_s6 + $0x1b4] ss:$8 sps:$4 sm:$0xff]  }
  0x3d   :  { %605 = vmatprep.subr.bf16.mxu0 %v1712_v32  ;;  %v1743_v32 = vld [vmem:[%s2372_s6 + $0x170] ss:$8 sps:$4 sm:$0xff]  }
  0x40   :  { %606 = vmatpush1.bf16.msra.mxu0 %v1710_v34  ;;  %v1746_v34 = vld [vmem:[%s2372_s6 + $0x180] ss:$8 sps:$4 sm:$0xff]  }
  0x41   :  { %607 = vmatprep.subr.bf16.mxu0 %v1718_v43  ;;  %v1760_v43 = vld [vmem:[%s2372_s6 + $0x1c4] ss:$8 sps:$4 sm:$0xff]  }
  0x44   :  { %608 = vmatpush1.bf16.msra.mxu0 %v1716_v46 }
  0xf5   :  { %v245_v54 = vpop.f32.mrb[0].mxu0 }
  0xf6   :  { %v246_v55 = vadd.f32 %v245_v54, %v124_v52  ;;  %v247_v56 = vpop.f32.mrb[1].mxu0  ;;  %v653_v52 = vrot.slane %v647_v42, 7  ;;  %v642_v54 = vunpack.c.l.b16 %v94_v44  ;;  %v81_v42 = vrot.slane %v2126_v28, %v64_v39  ;;  %v1758_v44 = vld [vmem:[%s2372_s6 + $0x1c0] ss:$8 sps:$4 sm:$0xff]  }
  0xf7   :  { %v248_v57 = vadd.f32 %v247_v56, %v128_v53  ;;  %v249_v58 = vpop.f32.mrb[2].mxu0  ;;  %v1719_v53 = vld [vmem:[%s2372_s6 + $0xf0] ss:$8 sps:$4 sm:$0xff]  }
  0xf8   :  { %v252_v59 = vmax.f32 %v246_v55, 0.0  ;;  %v250_v60 = vpop.f32.mrb[3].mxu0  ;;  %v650_v55 = vrot.slane %v646_v45, 7  ;;  %v654_v56 = vsel %vm651_vm0, %v653_v52, %v643_v50  ;;  %v1724_v58 = vld [vmem:[%s2372_s6 + $0x104] ss:$8 sps:$4 sm:$0xff]   ;;  %v65_v45 = vrot.slane %v2129_v30, %v64_v39 }
  0xf9   :  { %v253_v61 = vmax.f32 %v248_v57, 0.0  ;;  %v660_v57 = vpack.c.b16 %v654_v56, %v654_v56  ;;  %1028 = vmatprep.subr.bf16.mxu0 %v1724_v58  ;;  %v100_v46 = vpack.c.bf16 %v81_v42, %v81_v42  ;;  %v1769_v56 = vld [vmem:[%s2372_s6 + $0x1f4] ss:$8 sps:$4 sm:$0xff]  }
  0xfa   :  { %v254_v0 = vpack.c.bf16 %v252_v59, %v252_v59  ;;  %v652_v59 = vsel %vm651_vm0, %v650_v55, %v642_v54  ;;  %v96_v50 = vpack.c.bf16 %v65_v45, %v65_v45 }
  0xfb   :  { %v255_v62 = vpack.c.bf16 %v253_v61, %v253_v61  ;;  %v659_v60 = vpack.c.b16 %v652_v59, %v652_v59  ;;  %v68_v61 = vsub.s32 6, %v2030_v48  ;;  %v648_v52 = vunpack.c.l.b16 %v100_v46  ;;  %v1793_v48 = vld [vmem:[%s2377_s11 + $0x38] sm:$0xff]   ;;  %v1503_v46 = vld [vmem:[%s2376_s10] ss:$0 sm:$0xff] }
  0xfc   :  { %v644_v54 = vunpack.c.l.b16 %v96_v50 }
  0xfd   :  { %423 = vmatprep.mubr.bf16.mxu1 %v255_v62  ;;  %v85_v62 = vrot.slane %v2126_v28, %v68_v61  ;;  %v1761_v28 = vld [vmem:[%s2372_s6 + $0x1d0] ss:$8 sps:$4 sm:$0xff]   ;;  %v655_v55 = vrot.slane %v648_v52, 7 }
  0xfe   :  { %424 = vmatmul.mubr.bf16.vlgmr.msra.gmra.mrb[0].mxu1 %v254_v0 }
  0xff   :  { %988 = vmatpush1.bf16.msra.mxu1 %v1650_v63  ;;  %1019 = vmatprep.mubr.bf16.mxu1 %v660_v57  ;;  %v69_v63 = vrot.slane %v2129_v30, %v68_v61  ;;  %v101_v0 = vpack.c.bf16 %v85_v62, %v85_v62  ;;  %v1764_v30 = vld [vmem:[%s2372_s6 + $0x1e0] ss:$8 sps:$4 sm:$0xff]   ;;  %v1767_v57 = vld [vmem:[%s2372_s6 + $0x1f0] ss:$8 sps:$4 sm:$0xff]   ;;  %v656_v58 = vsel %vm651_vm0, %v655_v55, %v644_v54 }
 0x100   :  { %989 = vmatprep.subr.bf16.mxu1 %v1655_v1  ;;  %v661_v59 = vpack.c.b16 %v656_v58, %v656_v58  ;;  %v1520_v55 = vld [vmem:[%s2378_s12] ss:$0 sm:$0xff] }
 0x101   :  { %v97_v1 = vpack.c.bf16 %v69_v63, %v69_v63  ;;  %v1770_v63 = vld [vmem:[%s2375_s9 + $0x40] sm:$0xff]  }
 0x103   :  { %990 = vmatpush1.bf16.msra.mxu1 %v1653_v2  ;;  %v649_v2 = vunpack.c.l.b16 %v101_v0  ;;  %v1771_v0 = vld [vmem:[%s2375_s9] sm:$0xff]  }
 0x104   :  { %991 = vmatprep.subr.bf16.mxu1 %v1658_v3 }
 0x107   :  { %992 = vmatpush1.bf16.msra.mxu1 %v1656_v4  ;;  %v645_v4 = vunpack.c.l.b16 %v97_v1  ;;  %v1772_v1 = vld [vmem:[%s2375_s9 + $0x48] sm:$0xff]  }
 0x108   :  { %993 = vmatprep.subr.bf16.mxu1 %v1661_v5  ;;  %v657_v5 = vrot.slane %v649_v2, 7 }
 0x10b   :  { %994 = vmatpush1.bf16.msra.mxu1 %v1659_v6  ;;  %v1406_v6 = vld [vmem:[%s2371_s5] ss:$0 sm:$0xff] }
 0x10c   :  { %995 = vmatprep.subr.bf16.mxu1 %v1664_v7 }
 0x10f   :  { %996 = vmatpush1.bf16.msra.mxu1 %v1662_v8 }
 0x110   :  { %997 = vmatprep.subr.bf16.mxu1 %v1667_v9 }
 0x113   :  { %998 = vmatpush1.bf16.msra.mxu1 %v1665_v10 }
 0x114   :  { %999 = vmatprep.subr.bf16.mxu1 %v1670_v11 }
 0x117   :  { %1000 = vmatpush1.bf16.msra.mxu1 %v1668_v12  ;;  %v658_v12 = vsel %vm651_vm0, %v657_v5, %v645_v4  ;;  %v1774_v4 = vld [vmem:[%s2375_s9 + $0x50] sm:$0xff]  }
 0x118   :  { %1001 = vmatprep.subr.bf16.mxu1 %v1673_v13  ;;  %v1775_v5 = vld [vmem:[%s2375_s9 + $0x10] sm:$0xff]  }
 0x11b   :  { %1002 = vmatpush1.bf16.msra.mxu1 %v1671_v14  ;;  %v1722_v14 = vld [vmem:[%s2372_s6 + $0x100] ss:$8 sps:$4 sm:$0xff]  }
 0x11c   :  { %1003 = vmatprep.subr.bf16.mxu1 %v1679_v15  ;;  %v662_v15 = vpack.c.b16 %v658_v12, %v658_v12  ;;  %v1782_v12 = vld [vmem:[%s2375_s9 + $0x70] sm:$0xff]  }
 0x11f   :  { %1004 = vmatpush1.bf16.msra.mxu1 %v1677_v16 }
 0x120   :  { %1005 = vmatprep.subr.bf16.mxu1 %v1685_v17  ;;  %v1727_v17 = vld [vmem:[%s2372_s6 + $0x114] ss:$8 sps:$4 sm:$0xff]  }
 0x123   :  { %1006 = vmatpush1.bf16.msra.mxu1 %v1683_v18  ;;  %v1725_v18 = vld [vmem:[%s2372_s6 + $0x110] ss:$8 sps:$4 sm:$0xff]  }
 0x124   :  { %1007 = vmatprep.subr.bf16.mxu1 %v1691_v19  ;;  %v1730_v19 = vld [vmem:[%s2372_s6 + $0x124] ss:$8 sps:$4 sm:$0xff]  }
 0x127   :  { %1008 = vmatpush1.bf16.msra.mxu1 %v1689_v20  ;;  %v1728_v20 = vld [vmem:[%s2372_s6 + $0x120] ss:$8 sps:$4 sm:$0xff]  }
 0x128   :  { %1009 = vmatprep.subr.bf16.mxu1 %v1697_v21  ;;  %v1733_v21 = vld [vmem:[%s2372_s6 + $0x134] ss:$8 sps:$4 sm:$0xff]  }
 0x12b   :  { %1010 = vmatpush1.bf16.msra.mxu1 %v1695_v22  ;;  %v1731_v22 = vld [vmem:[%s2372_s6 + $0x130] ss:$8 sps:$4 sm:$0xff]  }
 0x12c   :  { %1011 = vmatprep.subr.bf16.mxu1 %v1703_v23  ;;  %v1736_v23 = vld [vmem:[%s2372_s6 + $0x144] ss:$8 sps:$4 sm:$0xff]  }
 0x12f   :  { %1012 = vmatpush1.bf16.msra.mxu1 %v1701_v24  ;;  %v1734_v24 = vld [vmem:[%s2372_s6 + $0x140] ss:$8 sps:$4 sm:$0xff]  }
 0x130   :  { %1013 = vmatprep.subr.bf16.mxu1 %v1709_v25  ;;  %v1739_v25 = vld [vmem:[%s2372_s6 + $0x154] ss:$8 sps:$4 sm:$0xff]  }
 0x133   :  { %1014 = vmatpush1.bf16.msra.mxu1 %v1707_v26  ;;  %v1737_v26 = vld [vmem:[%s2372_s6 + $0x150] ss:$8 sps:$4 sm:$0xff]  }
 0x134   :  { %1015 = vmatprep.subr.bf16.mxu1 %v1715_v35  ;;  %v1751_v35 = vld [vmem:[%s2372_s6 + $0x194] ss:$8 sps:$4 sm:$0xff]  }
 0x137   :  { %1016 = vmatpush1.bf16.msra.mxu1 %v1713_v38  ;;  %v1752_v38 = vld [vmem:[%s2372_s6 + $0x1a0] ss:$8 sps:$4 sm:$0xff]  }
 0x138   :  { %1017 = vmatprep.subr.bf16.mxu1 %v1721_v47  ;;  %v1763_v47 = vld [vmem:[%s2372_s6 + $0x1d4] ss:$8 sps:$4 sm:$0xff]  }
 0x13b   :  { %1018 = vmatpush1.bf16.msra.mxu1 %v1719_v53  ;;  %v1766_v53 = vld [vmem:[%s2372_s6 + $0x1e4] ss:$8 sps:$4 sm:$0xff]  }
 0x13c   :  { %1555 = vmatprep.subr.bf16.mxu1 %v1770_v63 }
 0x13e   :  { %1020 = vmatmul.mubr.bf16.vlgmr.msra.gmra.mrb[4].mxu1 %v659_v60 }
 0x13f   :  { %1556 = vmatpush3.bf16.msra.mxu1 %v1771_v0 }
 0x140   :  { %1557 = vmatprep.subr.bf16.mxu1 %v1772_v1 }
 0x1d1   :  { %v1549_v3 = vpop.f32.mrb[0].mxu1 }
 0x1d2   :  { %v1550_v7 = vpop.f32.mrb[1].mxu1 }
 0x1d3   :  { %v1551_v8 = vadd.f32 %v1550_v7, %v1549_v3  ;;  %v1552_v9 = vpop.f32.mrb[2].mxu1  ;;  %v1773_v3 = vld [vmem:[%s2375_s9 + $0x8] sm:$0xff]   ;;  %v1777_v7 = vld [vmem:[%s2375_s9 + $0x18] sm:$0xff]  }
 0x1d4   :  { %v1553_v10 = vpop.f32.mrb[3].mxu1  ;;  %1558 = vmatpush3.bf16.msra.mxu1 %v1773_v3  ;;  %v1779_v9 = vld [vmem:[%s2375_s9 + $0x20] sm:$0xff]  }
 0x1d5   :  { %v426_v11 = vadd.f32 %v1551_v8, %v1406_v6  ;;  %1559 = vmatprep.subr.bf16.mxu1 %v1774_v4  ;;  %v1776_v6 = vld [vmem:[%s2375_s9 + $0x58] sm:$0xff]   ;;  %v1778_v8 = vld [vmem:[%s2375_s9 + $0x60] sm:$0xff]   ;;  %v1780_v10 = vld [vmem:[%s2375_s9 + $0x68] sm:$0xff]  }
 0x1d7   :  { %v431_v13 = vmax.f32 %v426_v11, 0.0  ;;  %v1781_v11 = vld [vmem:[%s2375_s9 + $0x28] sm:$0xff]  }
 0x1d8   :  { %1560 = vmatpush3.bf16.msra.mxu1 %v1775_v5 }
 0x1d9   :  { %v496_v16 = vpack.c.bf16 %v431_v13, %v431_v13  ;;  %1561 = vmatprep.subr.bf16.mxu1 %v1776_v6  ;;  %v1783_v13 = vld [vmem:[%s2375_s9 + $0x30] sm:$0xff]  }
 0x1db   :  { %626 = vmatmul.mubr.bf16.vlgmr.msra.gmra.mrb[4].mxu0 %v496_v16  ;;  %v1786_v16 = vld [vmem:[%s2377_s11] sm:$0xff]  }
 0x1dc   :  { %1029 = vmatpush1.bf16.msra.mxu0 %v1722_v14  ;;  %1060 = vmatprep.mubr.bf16.mxu0 %v662_v15  ;;  %v1784_v14 = vld [vmem:[%s2375_s9 + $0x78] sm:$0xff]  }
 0x1dd   :  { %1030 = vmatprep.subr.bf16.mxu0 %v1727_v17  ;;  %1562 = vmatpush3.bf16.msra.mxu1 %v1777_v7  ;;  %v1785_v15 = vld [vmem:[%s2375_s9 + $0x38] sm:$0xff]   ;;  %v1819_v17 = vmov 0.0  }
 0x1de   :  { %1563 = vmatprep.subr.bf16.mxu1 %v1778_v8 }
 0x1e0   :  { %1031 = vmatpush1.bf16.msra.mxu0 %v1725_v18  ;;  %v1787_v18 = vld [vmem:[%s2377_s11 + $0x8] sm:$0xff]  }
 0x1e1   :  { %1032 = vmatprep.subr.bf16.mxu0 %v1730_v19  ;;  %1564 = vmatpush3.bf16.msra.mxu1 %v1779_v9  ;;  %v1788_v19 = vld [vmem:[%s2377_s11 + $0x10] sm:$0xff]  }
 0x1e2   :  { %1565 = vmatprep.subr.bf16.mxu1 %v1780_v10 }
 0x1e4   :  { %1033 = vmatpush1.bf16.msra.mxu0 %v1728_v20  ;;  %v1789_v20 = vld [vmem:[%s2377_s11 + $0x18] sm:$0xff]  }
 0x1e5   :  { %1034 = vmatprep.subr.bf16.mxu0 %v1733_v21  ;;  %1566 = vmatpush3.bf16.msra.mxu1 %v1781_v11  ;;  %v1790_v21 = vld [vmem:[%s2377_s11 + $0x20] sm:$0xff]  }
 0x1e6   :  { %1567 = vmatprep.subr.bf16.mxu1 %v1782_v12 }
 0x1e8   :  { %1035 = vmatpush1.bf16.msra.mxu0 %v1731_v22  ;;  %v1791_v22 = vld [vmem:[%s2377_s11 + $0x28] sm:$0xff]  }
 0x1e9   :  { %1036 = vmatprep.subr.bf16.mxu0 %v1736_v23  ;;  %1568 = vmatpush3.bf16.msra.mxu1 %v1783_v13 }
 0x1ea   :  { %1569 = vmatprep.subr.bf16.mxu1 %v1784_v14 }
 0x1ec   :  { %1037 = vmatpush1.bf16.msra.mxu0 %v1734_v24 }
 0x1ed   :  { %1038 = vmatprep.subr.bf16.mxu0 %v1739_v25  ;;  %1570 = vmatpush3.bf16.msra.mxu1 %v1785_v15 }
 0x1f0   :  { %1039 = vmatpush1.bf16.msra.mxu0 %v1737_v26 }
 0x1f1   :  { %1040 = vmatprep.subr.bf16.mxu0 %v1742_v27 }
 0x1f4   :  { %1041 = vmatpush1.bf16.msra.mxu0 %v1740_v29 }
 0x1f5   :  { %1042 = vmatprep.subr.bf16.mxu0 %v1745_v31  ;;  %v1069_v31 = vld [vmem:[%s2374_s8] sm:$0x3] }
 0x1f8   :  { %1043 = vmatpush1.bf16.msra.mxu0 %v1743_v32  ;;  %v1074_v32 = vrot.slane %v1069_v31, %v2033_v49  ;;  %v1792_v49 = vld [vmem:[%s2377_s11 + $0x30] sm:$0xff]   ;;  %s1821_s11 = smov [#allocation2]  }
 0x1f9   :  { %1044 = vmatprep.subr.bf16.mxu0 %v1748_v33  ;;  %s1382_s14 = sshll.u32 %s1821_s11, 4  ;;  %s1383_s14 = int_to_ptr.vmem [resolvable:$true] %s1382_s14 }
 0x1fa   :  { %s1794_s10 = scalar_lea.vmem %s1383_s14, 32  ;;  %p1799_p1 = scmp.lt.s32.totalorder %s1383_s14, %s1383_s14 }
 0x1fb   :  { %p1795_p0 = scmp.ne.s32.totalorder %s1383_s14, %s1794_s10  ;;  %p1800_p2 = scmp.lt.s32.totalorder %s1794_s10, %s1794_s10 }
 0x1fc   :  { %1045 = vmatpush1.bf16.msra.mxu0 %v1746_v34  ;;  %v1078_v34 = vrot.slane %v1069_v31, %v127_v51 }
 0x1fd   :  { %1046 = vmatprep.subr.bf16.mxu0 %v1751_v35  ;;  %p1801_p3 = por %p1800_p2, %p1799_p1 }
 0x1ff   :  { %p1802_p4 = pnand %p1801_p3, %p1795_p0 }
 0x200   :  { %1047 = vmatpush1.bf16.msra.mxu0 %v1749_v36 }
 0x201   :  { %1048 = vmatprep.subr.bf16.mxu0 %v1754_v37 }
 0x204   :  { %1049 = vmatpush1.bf16.msra.mxu0 %v1752_v38 }
 0x205   :  { %1050 = vmatprep.subr.bf16.mxu0 %v1757_v40 }
 0x208   :  { %1051 = vmatpush1.bf16.msra.mxu0 %v1755_v41 }
 0x209   :  { %1052 = vmatprep.subr.bf16.mxu0 %v1760_v43 }
 0x20c   :  { %1053 = vmatpush1.bf16.msra.mxu0 %v1758_v44 }
 0x20d   :  { %1054 = vmatprep.subr.bf16.mxu0 %v1763_v47 }
 0x210   :  { %1055 = vmatpush1.bf16.msra.mxu0 %v1761_v28 }
 0x211   :  { %1056 = vmatprep.subr.bf16.mxu0 %v1766_v53  ;;  %v1021_v60 = vpop.f32.mrb[4].mxu1 }
 0x212   :  { %v1023_v61 = vpop.f32.mrb[5].mxu1 }
 0x213   :  { %v1025_v62 = vpop.f32.mrb[6].mxu1 }
 0x214   :  { %1057 = vmatpush1.bf16.msra.mxu0 %v1764_v30  ;;  %v1026_v2 = vpop.f32.mrb[7].mxu1 }
 0x215   :  { %1058 = vmatprep.subr.bf16.mxu0 %v1769_v56 }
 0x218   :  { %1059 = vmatpush1.bf16.msra.mxu0 %v1767_v57 }
 0x219   :  { %1586 = vmatprep.subr.bf16.mxu0 %v1819_v17 }
 0x21b   :  { %1061 = vmatmul.mubr.bf16.vlgmr.msra.gmra.mrb[8].mxu0 %v661_v59 }
 0x21c   :  { %1587 = vmatpush3.bf16.msra.mxu0 %v1786_v16  ;;  %1602 = vmatprep.mubr.msk.bf16.mxu0 %vm1820_vm1, %v1819_v17 }
 0x21d   :  { %1588 = vmatprep.subr.bf16.mxu0 %v1819_v17 }
 0x220   :  { %1589 = vmatpush3.bf16.msra.mxu0 %v1787_v18 }
 0x221   :  { %1590 = vmatprep.subr.bf16.mxu0 %v1819_v17 }
 0x224   :  { %1591 = vmatpush3.bf16.msra.mxu0 %v1788_v19 }
 0x225   :  { %1592 = vmatprep.subr.bf16.mxu0 %v1819_v17 }
 0x228   :  { %1593 = vmatpush3.bf16.msra.mxu0 %v1789_v20 }
 0x229   :  { %1594 = vmatprep.subr.bf16.mxu0 %v1819_v17 }
 0x22c   :  { %1595 = vmatpush3.bf16.msra.mxu0 %v1790_v21 }
 0x22d   :  { %1596 = vmatprep.subr.bf16.mxu0 %v1819_v17 }
 0x230   :  { %1597 = vmatpush3.bf16.msra.mxu0 %v1791_v22 }
 0x231   :  { %1598 = vmatprep.subr.bf16.mxu0 %v1819_v17 }
 0x234   :  { %1599 = vmatpush3.bf16.msra.mxu0 %v1792_v49 }
 0x235   :  { %1600 = vmatprep.subr.bf16.mxu0 %v1819_v17 }
 0x238   :  { %1601 = vmatpush3.bf16.msra.mxu0 %v1793_v48 }
 0x2ae   :  { %v627_v23 = vpop.f32.mrb[4].mxu0 }
 0x2af   :  { %v1022_v24 = vadd.f32 %v1021_v60, %v627_v23  ;;  %v629_v25 = vpop.f32.mrb[5].mxu0 }
 0x2b0   :  { %v1024_v26 = vadd.f32 %v1023_v61, %v629_v25  ;;  %v631_v27 = vpop.f32.mrb[6].mxu0 }
 0x2b1   :  { %v632_v29 = vpop.f32.mrb[7].mxu0 }
 0x2ee   :  { %v1062_v33 = vpop.f32.mrb[8].mxu0 }
 0x2ef   :  { %v1063_v35 = vadd.f32 %v1062_v33, %v1022_v24  ;;  %v1064_v36 = vpop.f32.mrb[9].mxu0 }
 0x2f0   :  { %v1065_v37 = vadd.f32 %v1064_v36, %v1024_v26  ;;  %v1066_v38 = vpop.f32.mrb[10].mxu0 }
 0x2f1   :  { %v1081_v39 = vadd.f32 %v1074_v32, %v1063_v35  ;;  %v1067_v40 = vpop.f32.mrb[11].mxu0 }
 0x2f2   :  { %v1082_v41 = vadd.f32 %v1078_v34, %v1065_v37 }
 0x2f3   :  { %v1083_v42 = vmax.f32 %v1081_v39, 0.0 }
 0x2f4   :  { %v1084_v43 = vmax.f32 %v1082_v41, 0.0 }
 0x2f5   :  { %v1085_v45 = vpack.c.bf16 %v1083_v42, %v1083_v42 }
 0x2f6   :  { %v1086_v44 = vpack.c.bf16 %v1084_v43, %v1084_v43 }
 0x2f8   :  { %1254 = vmatprep.mubr.bf16.mxu1 %v1086_v44 }
 0x2f9   :  { %1255 = vmatmul.mubr.bf16.vlgmr.msra.gmra.mrb[8].mxu1 %v1085_v45 }
 0x3cc   :  { %v1571_v51 = vpop.f32.mrb[8].mxu1 }
 0x3cd   :  { %v1572_v47 = vpop.f32.mrb[9].mxu1 }
 0x3ce   :  { %v1573_v28 = vadd.f32 %v1572_v47, %v1571_v51  ;;  %v1574_v50 = vpop.f32.mrb[10].mxu1 }
 0x3cf   :  { %v1575_v52 = vpop.f32.mrb[11].mxu1 }
 0x3d0   :  { %v1257_v53 = vadd.f32 %v1573_v28, %v1503_v46 }
 0x3d2   :  { %v1262_v30 = vmax.f32 %v1257_v53, 0.0 }
 0x3d4   :  { %v1263_v54 = vpack.c.bf16 %v1262_v30, %v1262_v30 }
 0x3d6   :  { %1603 = vmatmul.mubr.bf16.vlgmr.msra.gmra.mrb[12].mxu0 %v1263_v54 }
 0x4a9   :  { %v1369_v56 = vpop.f32.mrb[12].mxu0 }
 0x4aa   :  { %v1370_v57 = vadd.f32 %v1520_v55, %v1369_v56  ;;  %v1604_v58 = vpop.f32.mrb[13].mxu0 }
 0x4ab   :  { %v1372_v59 = vpop.f32.mrb[14].mxu0 }
 0x4ac   :  { %1375 = vst [vmem:[#allocation2] sm:$0x3] %v1370_v57  ;;  %v1605_v60 = vpop.f32.mrb[15].mxu0 }
 0x4ad   :  { %1805 = shalt.err (!%p1802_p4)
}
 0x4ae   :  { %s1806_s12 = scalar_lea.hbm %s2379_s13, 32 }
 0x4af   :  { %p1807_p5 = scmp.ne.s32.totalorder %s2379_s13, %s1806_s12  ;;  %p1810_p6 = scmp.lt.u32.totalorder %s1806_s12, %s2379_s13 }
 0x4b1   :  { %p1812_p7 = pnand %p1810_p6, %p1807_p5 }
 0x4b3   :  { %1815 = shalt.err (!%p1812_p7)
}
 0x4b4   :  { %1385 = dma.vmem_to_hbm [thread:$0]  %s1383_s14, 32, %s2379_s13, [#allocation3]  }
 0x4b5   :  { %1816 = dma.done.wait [#allocation3], 32  }
 0x4b6   :  { %1817 = vsyncadd [#allocation3], 4294967264 }
 0x4b7   :  { %1389 = vsyncpa [#allocation3], 1 }

// kernel: hybrid_cnn_forward.8
= control target key start
LH: loop header
LB: loop body
LE: loop exit
PB: predicated region body
PF: predicated region fallthrough
CT: control target
= control target key end

     0   :  { %s7739_s1 = inlined_call_operand.vmem [shape: bf16[2304,512], index: 1, kind: input, shape index: {}]   ;;  %s7740_s0 = inlined_call_operand.vmem [shape: bf16[1,8,2304], index: 0, kind: input, shape index: {}]   ;;  %s7741_s2 = inlined_call_operand.vmem [shape: f32[1,512], index: 2, kind: input, shape index: {}]   ;;  %s7742_s3 = inlined_call_operand.vmem [shape: bf16[8,512], index: 3, kind: output, shape index: {}]  }
   0x1   :  { %v5025_v0 = vld [vmem:[%s7739_s1 + $0x4] ss:$16 sps:$4 sm:$0xff]   ;;  %v5027_v1 = vld [vmem:[%s7739_s1 + $0xc] ss:$16 sps:$4 sm:$0xff]   ;;  %v5029_v2 = vld [vmem:[%s7739_s1] ss:$16 sps:$4 sm:$0xff]  }
   0x2   :  { %3564 = vmatprep.subr.bf16.mxu0 %v5025_v0  ;;  %v5030_v3 = vld [vmem:[%s7739_s1 + $0x8] ss:$16 sps:$4 sm:$0xff]   ;;  %3933 = vmatprep.subr.bf16.mxu1 %v5027_v1  ;;  %v5031_v4 = vld [vmem:[%s7739_s1 + $0x24] ss:$16 sps:$4 sm:$0xff]   ;;  %v5033_v5 = vld [vmem:[%s7739_s1 + $0x2c] ss:$16 sps:$4 sm:$0xff]  }
   0x3   :  { %3565 = vmatpush1.bf16.msra.mxu0 %v5029_v2  ;;  %3934 = vmatpush1.bf16.msra.mxu1 %v5030_v3  ;;  %v5035_v6 = vld [vmem:[%s7739_s1 + $0x20] ss:$16 sps:$4 sm:$0xff]   ;;  %v5036_v7 = vld [vmem:[%s7739_s1 + $0x28] ss:$16 sps:$4 sm:$0xff]   ;;  %v5037_v8 = vld [vmem:[%s7739_s1 + $0x44] ss:$16 sps:$4 sm:$0xff]  }
   0x4   :  { %3566 = vmatprep.subr.bf16.mxu0 %v5031_v4  ;;  %3935 = vmatprep.subr.bf16.mxu1 %v5033_v5  ;;  %v5039_v9 = vld [vmem:[%s7739_s1 + $0x4c] ss:$16 sps:$4 sm:$0xff]   ;;  %v5041_v10 = vld [vmem:[%s7739_s1 + $0x40] ss:$16 sps:$4 sm:$0xff]   ;;  %v5042_v11 = vld [vmem:[%s7739_s1 + $0x48] ss:$16 sps:$4 sm:$0xff]  }
   0x5   :  { %v5043_v12 = vld [vmem:[%s7739_s1 + $0x64] ss:$16 sps:$4 sm:$0xff]   ;;  %v5045_v13 = vld [vmem:[%s7739_s1 + $0x6c] ss:$16 sps:$4 sm:$0xff]   ;;  %v5047_v14 = vld [vmem:[%s7739_s1 + $0x60] ss:$16 sps:$4 sm:$0xff]  }
   0x6   :  { %v5048_v15 = vld [vmem:[%s7739_s1 + $0x68] ss:$16 sps:$4 sm:$0xff]   ;;  %v5049_v16 = vld [vmem:[%s7739_s1 + $0x84] ss:$16 sps:$4 sm:$0xff]   ;;  %v5051_v17 = vld [vmem:[%s7739_s1 + $0x8c] ss:$16 sps:$4 sm:$0xff]  }
   0x7   :  { %3567 = vmatpush1.bf16.msra.mxu0 %v5035_v6  ;;  %3936 = vmatpush1.bf16.msra.mxu1 %v5036_v7  ;;  %v5053_v18 = vld [vmem:[%s7739_s1 + $0x80] ss:$16 sps:$4 sm:$0xff]   ;;  %v5054_v19 = vld [vmem:[%s7739_s1 + $0x88] ss:$16 sps:$4 sm:$0xff]   ;;  %v5055_v20 = vld [vmem:[%s7739_s1 + $0xa4] ss:$16 sps:$4 sm:$0xff]  }
   0x8   :  { %3568 = vmatprep.subr.bf16.mxu0 %v5037_v8  ;;  %3937 = vmatprep.subr.bf16.mxu1 %v5039_v9  ;;  %v5057_v21 = vld [vmem:[%s7739_s1 + $0xac] ss:$16 sps:$4 sm:$0xff]   ;;  %v5059_v22 = vld [vmem:[%s7739_s1 + $0xa0] ss:$16 sps:$4 sm:$0xff]   ;;  %v5060_v23 = vld [vmem:[%s7739_s1 + $0xa8] ss:$16 sps:$4 sm:$0xff]  }
   0x9   :  { %v5061_v24 = vld [vmem:[%s7739_s1 + $0xc4] ss:$16 sps:$4 sm:$0xff]   ;;  %v5063_v25 = vld [vmem:[%s7739_s1 + $0xcc] ss:$16 sps:$4 sm:$0xff]   ;;  %v5065_v26 = vld [vmem:[%s7739_s1 + $0xc0] ss:$16 sps:$4 sm:$0xff]  }
   0xa   :  { %v5066_v27 = vld [vmem:[%s7739_s1 + $0xc8] ss:$16 sps:$4 sm:$0xff]   ;;  %v5067_v28 = vld [vmem:[%s7739_s1 + $0xe4] ss:$16 sps:$4 sm:$0xff]   ;;  %v5069_v29 = vld [vmem:[%s7739_s1 + $0xec] ss:$16 sps:$4 sm:$0xff]  }
   0xb   :  { %3569 = vmatpush1.bf16.msra.mxu0 %v5041_v10  ;;  %3938 = vmatpush1.bf16.msra.mxu1 %v5042_v11  ;;  %v5071_v30 = vld [vmem:[%s7739_s1 + $0xe0] ss:$16 sps:$4 sm:$0xff]   ;;  %v5072_v31 = vld [vmem:[%s7739_s1 + $0xe8] ss:$16 sps:$4 sm:$0xff]   ;;  %v5073_v32 = vld [vmem:[%s7739_s1 + $0x104] ss:$16 sps:$4 sm:$0xff]  }
   0xc   :  { %3570 = vmatprep.subr.bf16.mxu0 %v5043_v12  ;;  %3939 = vmatprep.subr.bf16.mxu1 %v5045_v13  ;;  %v5075_v33 = vld [vmem:[%s7739_s1 + $0x10c] ss:$16 sps:$4 sm:$0xff]   ;;  %v5077_v34 = vld [vmem:[%s7739_s1 + $0x100] ss:$16 sps:$4 sm:$0xff]   ;;  %v5078_v35 = vld [vmem:[%s7739_s1 + $0x108] ss:$16 sps:$4 sm:$0xff]  }
   0xd   :  { %v5079_v36 = vld [vmem:[%s7739_s1 + $0x124] ss:$16 sps:$4 sm:$0xff]   ;;  %v5081_v37 = vld [vmem:[%s7739_s1 + $0x12c] ss:$16 sps:$4 sm:$0xff]   ;;  %v5083_v38 = vld [vmem:[%s7739_s1 + $0x120] ss:$16 sps:$4 sm:$0xff]  }
   0xe   :  { %v5084_v39 = vld [vmem:[%s7739_s1 + $0x128] ss:$16 sps:$4 sm:$0xff]   ;;  %v5085_v40 = vld [vmem:[%s7739_s1 + $0x144] ss:$16 sps:$4 sm:$0xff]   ;;  %v5087_v41 = vld [vmem:[%s7739_s1 + $0x14c] ss:$16 sps:$4 sm:$0xff]  }
   0xf   :  { %3571 = vmatpush1.bf16.msra.mxu0 %v5047_v14  ;;  %3940 = vmatpush1.bf16.msra.mxu1 %v5048_v15  ;;  %v5089_v42 = vld [vmem:[%s7739_s1 + $0x140] ss:$16 sps:$4 sm:$0xff]   ;;  %v5090_v43 = vld [vmem:[%s7739_s1 + $0x148] ss:$16 sps:$4 sm:$0xff]   ;;  %v5091_v44 = vld [vmem:[%s7739_s1 + $0x164] ss:$16 sps:$4 sm:$0xff]  }
  0x10   :  { %3572 = vmatprep.subr.bf16.mxu0 %v5049_v16  ;;  %3941 = vmatprep.subr.bf16.mxu1 %v5051_v17  ;;  %v5093_v45 = vld [vmem:[%s7739_s1 + $0x16c] ss:$16 sps:$4 sm:$0xff]   ;;  %v14_v46 = vld [vmem:[%s7740_s0] sm:$0xff]  ;;  %v5096_v49 = vld [vmem:[%s7739_s1 + $0x168] ss:$16 sps:$4 sm:$0xff]  }
  0x11   :  { %v5095_v47 = vld [vmem:[%s7739_s1 + $0x160] ss:$16 sps:$4 sm:$0xff]   ;;  %v4360_v48 = vcombine.high %v14_v46, %v14_v46  ;;  %v5097_v50 = vld [vmem:[%s7739_s1 + $0x184] ss:$16 sps:$4 sm:$0xff]   ;;  %v5099_v51 = vld [vmem:[%s7739_s1 + $0x18c] ss:$16 sps:$4 sm:$0xff]   ;;  %v4359_v4 = vcombine.low %v14_v46, %v14_v46 }
  0x12   :  { %v5101_v52 = vld [vmem:[%s7739_s1 + $0x180] ss:$16 sps:$4 sm:$0xff]   ;;  %v5102_v53 = vld [vmem:[%s7739_s1 + $0x188] ss:$16 sps:$4 sm:$0xff]   ;;  %v5103_v54 = vld [vmem:[%s7739_s1 + $0x1a4] ss:$16 sps:$4 sm:$0xff]  }
  0x13   :  { %3573 = vmatpush1.bf16.msra.mxu0 %v5053_v18  ;;  %3942 = vmatpush1.bf16.msra.mxu1 %v5054_v19  ;;  %v5105_v55 = vld [vmem:[%s7739_s1 + $0x1ac] ss:$16 sps:$4 sm:$0xff]   ;;  %v5107_v56 = vld [vmem:[%s7739_s1 + $0x1a0] ss:$16 sps:$4 sm:$0xff]   ;;  %v5108_v57 = vld [vmem:[%s7739_s1 + $0x1a8] ss:$16 sps:$4 sm:$0xff]  }
  0x14   :  { %3574 = vmatprep.subr.bf16.mxu0 %v5055_v20  ;;  %3943 = vmatprep.subr.bf16.mxu1 %v5057_v21  ;;  %v5109_v58 = vld [vmem:[%s7739_s1 + $0x1c4] ss:$16 sps:$4 sm:$0xff]   ;;  %v5111_v59 = vld [vmem:[%s7739_s1 + $0x1cc] ss:$16 sps:$4 sm:$0xff]   ;;  %v5113_v60 = vld [vmem:[%s7739_s1 + $0x1c0] ss:$16 sps:$4 sm:$0xff]  }
  0x15   :  { %3596 = vmatprep.mubr.bf16.mxu0 %v4360_v48  ;;  %3965 = vmatprep.mubr.bf16.mxu1 %v4360_v48  ;;  %v5114_v61 = vld [vmem:[%s7739_s1 + $0x1c8] ss:$16 sps:$4 sm:$0xff]   ;;  %v5115_v62 = vld [vmem:[%s7739_s1 + $0x1e4] ss:$16 sps:$4 sm:$0xff]   ;;  %v5117_v63 = vld [vmem:[%s7739_s1 + $0x1ec] ss:$16 sps:$4 sm:$0xff]  }
  0x16   :  { %v5119_v0 = vld [vmem:[%s7739_s1 + $0x1e0] ss:$16 sps:$4 sm:$0xff]   ;;  %v5120_v1 = vld [vmem:[%s7739_s1 + $0x1e8] ss:$16 sps:$4 sm:$0xff]   ;;  %v5125_v2 = vld [vmem:[%s7739_s1 + $0x204] ss:$16 sps:$4 sm:$0xff]  }
  0x17   :  { %3575 = vmatpush1.bf16.msra.mxu0 %v5059_v22  ;;  %3944 = vmatpush1.bf16.msra.mxu1 %v5060_v23  ;;  %v5128_v3 = vld [vmem:[%s7739_s1 + $0x20c] ss:$16 sps:$4 sm:$0xff]   ;;  %v5123_v5 = vld [vmem:[%s7739_s1 + $0x200] ss:$16 sps:$4 sm:$0xff]   ;;  %v5126_v6 = vld [vmem:[%s7739_s1 + $0x208] ss:$16 sps:$4 sm:$0xff]  }
  0x18   :  { %3576 = vmatprep.subr.bf16.mxu0 %v5061_v24  ;;  %3945 = vmatprep.subr.bf16.mxu1 %v5063_v25  ;;  %v5131_v7 = vld [vmem:[%s7739_s1 + $0x224] ss:$16 sps:$4 sm:$0xff]   ;;  %v5134_v8 = vld [vmem:[%s7739_s1 + $0x22c] ss:$16 sps:$4 sm:$0xff]   ;;  %v5129_v9 = vld [vmem:[%s7739_s1 + $0x220] ss:$16 sps:$4 sm:$0xff]  }
  0x19   :  { %v5132_v10 = vld [vmem:[%s7739_s1 + $0x228] ss:$16 sps:$4 sm:$0xff]   ;;  %v5137_v11 = vld [vmem:[%s7739_s1 + $0x244] ss:$16 sps:$4 sm:$0xff]   ;;  %v5140_v12 = vld [vmem:[%s7739_s1 + $0x24c] ss:$16 sps:$4 sm:$0xff]  }
  0x1a   :  { %v5135_v13 = vld [vmem:[%s7739_s1 + $0x240] ss:$16 sps:$4 sm:$0xff]   ;;  %v5138_v14 = vld [vmem:[%s7739_s1 + $0x248] ss:$16 sps:$4 sm:$0xff]   ;;  %v5143_v15 = vld [vmem:[%s7739_s1 + $0x264] ss:$16 sps:$4 sm:$0xff]  }
  0x1b   :  { %3577 = vmatpush1.bf16.msra.mxu0 %v5065_v26  ;;  %3946 = vmatpush1.bf16.msra.mxu1 %v5066_v27  ;;  %v5146_v16 = vld [vmem:[%s7739_s1 + $0x26c] ss:$16 sps:$4 sm:$0xff]   ;;  %v5141_v17 = vld [vmem:[%s7739_s1 + $0x260] ss:$16 sps:$4 sm:$0xff]   ;;  %v5144_v18 = vld [vmem:[%s7739_s1 + $0x268] ss:$16 sps:$4 sm:$0xff]  }
  0x1c   :  { %3578 = vmatprep.subr.bf16.mxu0 %v5067_v28  ;;  %3947 = vmatprep.subr.bf16.mxu1 %v5069_v29  ;;  %v5149_v19 = vld [vmem:[%s7739_s1 + $0x284] ss:$16 sps:$4 sm:$0xff]   ;;  %v5152_v20 = vld [vmem:[%s7739_s1 + $0x28c] ss:$16 sps:$4 sm:$0xff]   ;;  %v5147_v21 = vld [vmem:[%s7739_s1 + $0x280] ss:$16 sps:$4 sm:$0xff]  }
  0x1d   :  { %v5150_v22 = vld [vmem:[%s7739_s1 + $0x288] ss:$16 sps:$4 sm:$0xff]   ;;  %v5155_v23 = vld [vmem:[%s7739_s1 + $0x2a4] ss:$16 sps:$4 sm:$0xff]   ;;  %v5158_v24 = vld [vmem:[%s7739_s1 + $0x2ac] ss:$16 sps:$4 sm:$0xff]  }
  0x1e   :  { %v5153_v25 = vld [vmem:[%s7739_s1 + $0x2a0] ss:$16 sps:$4 sm:$0xff]   ;;  %v5156_v26 = vld [vmem:[%s7739_s1 + $0x2a8] ss:$16 sps:$4 sm:$0xff]   ;;  %v5161_v27 = vld [vmem:[%s7739_s1 + $0x2c4] ss:$16 sps:$4 sm:$0xff]  }
  0x1f   :  { %3579 = vmatpush1.bf16.msra.mxu0 %v5071_v30  ;;  %3948 = vmatpush1.bf16.msra.mxu1 %v5072_v31  ;;  %v5164_v28 = vld [vmem:[%s7739_s1 + $0x2cc] ss:$16 sps:$4 sm:$0xff]   ;;  %v5159_v31 = vld [vmem:[%s7739_s1 + $0x2c0] ss:$16 sps:$4 sm:$0xff]   ;;  %v5186_v48 = vld [vmem:[%s7739_s1 + $0x348] ss:$16 sps:$4 sm:$0xff]  }
  0x20   :  { %3580 = vmatprep.subr.bf16.mxu0 %v5073_v32  ;;  %3949 = vmatprep.subr.bf16.mxu1 %v5075_v33  ;;  %v6203_v29 = vld [vmem:[%s7740_s0 + $0x8] sm:$0xff]  ;;  %v5167_v33 = vld [vmem:[%s7739_s1 + $0x2e4] ss:$16 sps:$4 sm:$0xff]  }
  0x21   :  { %v4362_v30 = vcombine.high %v6203_v29, %v6203_v29  ;;  %v5162_v32 = vld [vmem:[%s7739_s1 + $0x2c8] ss:$16 sps:$4 sm:$0xff]   ;;  %v5188_v46 = vld [vmem:[%s7739_s1 + $0x34c] ss:$16 sps:$4 sm:$0xff]  }
  0x23   :  { %3581 = vmatpush1.bf16.msra.mxu0 %v5077_v34  ;;  %3950 = vmatpush1.bf16.msra.mxu1 %v5078_v35  ;;  %v5170_v34 = vld [vmem:[%s7739_s1 + $0x2ec] ss:$16 sps:$4 sm:$0xff]   ;;  %v5165_v35 = vld [vmem:[%s7739_s1 + $0x2e0] ss:$16 sps:$4 sm:$0xff]  }
  0x24   :  { %3582 = vmatprep.subr.bf16.mxu0 %v5079_v36  ;;  %3951 = vmatprep.subr.bf16.mxu1 %v5081_v37  ;;  %v5168_v36 = vld [vmem:[%s7739_s1 + $0x2e8] ss:$16 sps:$4 sm:$0xff]   ;;  %v5173_v37 = vld [vmem:[%s7739_s1 + $0x304] ss:$16 sps:$4 sm:$0xff]  }
  0x27   :  { %3583 = vmatpush1.bf16.msra.mxu0 %v5083_v38  ;;  %3952 = vmatpush1.bf16.msra.mxu1 %v5084_v39  ;;  %v5176_v38 = vld [vmem:[%s7739_s1 + $0x30c] ss:$16 sps:$4 sm:$0xff]   ;;  %v5171_v39 = vld [vmem:[%s7739_s1 + $0x300] ss:$16 sps:$4 sm:$0xff]  }
  0x28   :  { %3584 = vmatprep.subr.bf16.mxu0 %v5085_v40  ;;  %3953 = vmatprep.subr.bf16.mxu1 %v5087_v41  ;;  %v5174_v40 = vld [vmem:[%s7739_s1 + $0x308] ss:$16 sps:$4 sm:$0xff]   ;;  %v5179_v41 = vld [vmem:[%s7739_s1 + $0x324] ss:$16 sps:$4 sm:$0xff]  }
  0x2b   :  { %3585 = vmatpush1.bf16.msra.mxu0 %v5089_v42  ;;  %3954 = vmatpush1.bf16.msra.mxu1 %v5090_v43  ;;  %v5182_v42 = vld [vmem:[%s7739_s1 + $0x32c] ss:$16 sps:$4 sm:$0xff]   ;;  %v5177_v43 = vld [vmem:[%s7739_s1 + $0x320] ss:$16 sps:$4 sm:$0xff]  }
  0x2c   :  { %3586 = vmatprep.subr.bf16.mxu0 %v5091_v44  ;;  %3955 = vmatprep.subr.bf16.mxu1 %v5093_v45  ;;  %v5180_v44 = vld [vmem:[%s7739_s1 + $0x328] ss:$16 sps:$4 sm:$0xff]   ;;  %v5185_v45 = vld [vmem:[%s7739_s1 + $0x344] ss:$16 sps:$4 sm:$0xff]  }
  0x2f   :  { %3587 = vmatpush1.bf16.msra.mxu0 %v5095_v47  ;;  %3956 = vmatpush1.bf16.msra.mxu1 %v5096_v49  ;;  %v5183_v47 = vld [vmem:[%s7739_s1 + $0x340] ss:$16 sps:$4 sm:$0xff]   ;;  %v5191_v49 = vld [vmem:[%s7739_s1 + $0x364] ss:$16 sps:$4 sm:$0xff]  }
  0x30   :  { %3588 = vmatprep.subr.bf16.mxu0 %v5097_v50  ;;  %3957 = vmatprep.subr.bf16.mxu1 %v5099_v51  ;;  %v5194_v50 = vld [vmem:[%s7739_s1 + $0x36c] ss:$16 sps:$4 sm:$0xff]   ;;  %v5189_v51 = vld [vmem:[%s7739_s1 + $0x360] ss:$16 sps:$4 sm:$0xff]  }
  0x33   :  { %3589 = vmatpush1.bf16.msra.mxu0 %v5101_v52  ;;  %3958 = vmatpush1.bf16.msra.mxu1 %v5102_v53  ;;  %v5192_v52 = vld [vmem:[%s7739_s1 + $0x368] ss:$16 sps:$4 sm:$0xff]   ;;  %v5197_v53 = vld [vmem:[%s7739_s1 + $0x384] ss:$16 sps:$4 sm:$0xff]  }
  0x34   :  { %3590 = vmatprep.subr.bf16.mxu0 %v5103_v54  ;;  %3959 = vmatprep.subr.bf16.mxu1 %v5105_v55  ;;  %v5200_v54 = vld [vmem:[%s7739_s1 + $0x38c] ss:$16 sps:$4 sm:$0xff]   ;;  %v5195_v55 = vld [vmem:[%s7739_s1 + $0x380] ss:$16 sps:$4 sm:$0xff]  }
  0x37   :  { %3591 = vmatpush1.bf16.msra.mxu0 %v5107_v56  ;;  %3960 = vmatpush1.bf16.msra.mxu1 %v5108_v57  ;;  %v5198_v56 = vld [vmem:[%s7739_s1 + $0x388] ss:$16 sps:$4 sm:$0xff]   ;;  %v5203_v57 = vld [vmem:[%s7739_s1 + $0x3a4] ss:$16 sps:$4 sm:$0xff]  }
  0x38   :  { %3592 = vmatprep.subr.bf16.mxu0 %v5109_v58  ;;  %3961 = vmatprep.subr.bf16.mxu1 %v5111_v59  ;;  %v5206_v58 = vld [vmem:[%s7739_s1 + $0x3ac] ss:$16 sps:$4 sm:$0xff]   ;;  %v5201_v59 = vld [vmem:[%s7739_s1 + $0x3a0] ss:$16 sps:$4 sm:$0xff]  }
  0x3b   :  { %3593 = vmatpush1.bf16.msra.mxu0 %v5113_v60  ;;  %3962 = vmatpush1.bf16.msra.mxu1 %v5114_v61  ;;  %v5204_v60 = vld [vmem:[%s7739_s1 + $0x3a8] ss:$16 sps:$4 sm:$0xff]   ;;  %v5209_v61 = vld [vmem:[%s7739_s1 + $0x3c4] ss:$16 sps:$4 sm:$0xff]  }
  0x3c   :  { %3594 = vmatprep.subr.bf16.mxu0 %v5115_v62  ;;  %3963 = vmatprep.subr.bf16.mxu1 %v5117_v63  ;;  %v5212_v62 = vld [vmem:[%s7739_s1 + $0x3cc] ss:$16 sps:$4 sm:$0xff]   ;;  %v5207_v63 = vld [vmem:[%s7739_s1 + $0x3c0] ss:$16 sps:$4 sm:$0xff]  }
  0x3f   :  { %3595 = vmatpush1.bf16.msra.mxu0 %v5119_v0  ;;  %3964 = vmatpush1.bf16.msra.mxu1 %v5120_v1  ;;  %v5210_v0 = vld [vmem:[%s7739_s1 + $0x3c8] ss:$16 sps:$4 sm:$0xff]   ;;  %v5215_v1 = vld [vmem:[%s7739_s1 + $0x3e4] ss:$16 sps:$4 sm:$0xff]  }
  0x40   :  { %3605 = vmatprep.subr.bf16.mxu0 %v5125_v2  ;;  %3974 = vmatprep.subr.bf16.mxu1 %v5128_v3  ;;  %v5218_v2 = vld [vmem:[%s7739_s1 + $0x3ec] ss:$16 sps:$4 sm:$0xff]   ;;  %v5213_v3 = vld [vmem:[%s7739_s1 + $0x3e0] ss:$16 sps:$4 sm:$0xff]  }
  0x42   :  { %3597 = vmatmul.mubr.bf16.vlgmr.msra.gmra.mrb[0].mxu0 %v4359_v4  ;;  %3966 = vmatmul.mubr.bf16.vlgmr.msra.gmra.mrb[0].mxu1 %v4359_v4  ;;  %v5216_v4 = vld [vmem:[%s7739_s1 + $0x3e8] ss:$16 sps:$4 sm:$0xff]  }
  0x43   :  { %3606 = vmatpush1.bf16.msra.mxu0 %v5123_v5  ;;  %3975 = vmatpush1.bf16.msra.mxu1 %v5126_v6  ;;  %v5223_v5 = vld [vmem:[%s7739_s1 + $0x404] ss:$16 sps:$4 sm:$0xff]   ;;  %v5226_v6 = vld [vmem:[%s7739_s1 + $0x40c] ss:$16 sps:$4 sm:$0xff]  }
  0x44   :  { %3607 = vmatprep.subr.bf16.mxu0 %v5131_v7  ;;  %3976 = vmatprep.subr.bf16.mxu1 %v5134_v8  ;;  %v4361_v7 = vcombine.low %v6203_v29, %v6203_v29  ;;  %v5221_v8 = vld [vmem:[%s7739_s1 + $0x400] ss:$16 sps:$4 sm:$0xff]   ;;  %v5256_v29 = vld [vmem:[%s7739_s1 + $0x4ac] ss:$16 sps:$4 sm:$0xff]  }
  0x45   :  { %3637 = vmatprep.mubr.bf16.mxu0 %v4362_v30  ;;  %4006 = vmatprep.mubr.bf16.mxu1 %v4362_v30  ;;  %v5251_v30 = vld [vmem:[%s7739_s1 + $0x4a0] ss:$16 sps:$4 sm:$0xff]  }
  0x47   :  { %3608 = vmatpush1.bf16.msra.mxu0 %v5129_v9  ;;  %3977 = vmatpush1.bf16.msra.mxu1 %v5132_v10  ;;  %v5224_v9 = vld [vmem:[%s7739_s1 + $0x408] ss:$16 sps:$4 sm:$0xff]   ;;  %v5229_v10 = vld [vmem:[%s7739_s1 + $0x424] ss:$16 sps:$4 sm:$0xff]  }
  0x48   :  { %3609 = vmatprep.subr.bf16.mxu0 %v5137_v11  ;;  %3978 = vmatprep.subr.bf16.mxu1 %v5140_v12  ;;  %v6341_v11 = vld [vmem:[%s7740_s0 + $0x10] sm:$0xff]  ;;  %v5232_v12 = vld [vmem:[%s7739_s1 + $0x42c] ss:$16 sps:$4 sm:$0xff]  }
  0x4b   :  { %3610 = vmatpush1.bf16.msra.mxu0 %v5135_v13  ;;  %3979 = vmatpush1.bf16.msra.mxu1 %v5138_v14  ;;  %v4364_v13 = vcombine.high %v6341_v11, %v6341_v11  ;;  %v5227_v14 = vld [vmem:[%s7739_s1 + $0x420] ss:$16 sps:$4 sm:$0xff]  }
  0x4c   :  { %3611 = vmatprep.subr.bf16.mxu0 %v5143_v15  ;;  %3980 = vmatprep.subr.bf16.mxu1 %v5146_v16  ;;  %v5230_v15 = vld [vmem:[%s7739_s1 + $0x428] ss:$16 sps:$4 sm:$0xff]   ;;  %v5235_v16 = vld [vmem:[%s7739_s1 + $0x444] ss:$16 sps:$4 sm:$0xff]  }
  0x4f   :  { %3612 = vmatpush1.bf16.msra.mxu0 %v5141_v17  ;;  %3981 = vmatpush1.bf16.msra.mxu1 %v5144_v18  ;;  %v5238_v17 = vld [vmem:[%s7739_s1 + $0x44c] ss:$16 sps:$4 sm:$0xff]   ;;  %v5233_v18 = vld [vmem:[%s7739_s1 + $0x440] ss:$16 sps:$4 sm:$0xff]  }
  0x50   :  { %3613 = vmatprep.subr.bf16.mxu0 %v5149_v19  ;;  %3982 = vmatprep.subr.bf16.mxu1 %v5152_v20  ;;  %v5236_v19 = vld [vmem:[%s7739_s1 + $0x448] ss:$16 sps:$4 sm:$0xff]   ;;  %v5241_v20 = vld [vmem:[%s7739_s1 + $0x464] ss:$16 sps:$4 sm:$0xff]  }
  0x53   :  { %3614 = vmatpush1.bf16.msra.mxu0 %v5147_v21  ;;  %3983 = vmatpush1.bf16.msra.mxu1 %v5150_v22  ;;  %v5244_v21 = vld [vmem:[%s7739_s1 + $0x46c] ss:$16 sps:$4 sm:$0xff]   ;;  %v5239_v22 = vld [vmem:[%s7739_s1 + $0x460] ss:$16 sps:$4 sm:$0xff]  }
  0x54   :  { %3615 = vmatprep.subr.bf16.mxu0 %v5155_v23  ;;  %3984 = vmatprep.subr.bf16.mxu1 %v5158_v24  ;;  %v5242_v23 = vld [vmem:[%s7739_s1 + $0x468] ss:$16 sps:$4 sm:$0xff]   ;;  %v5247_v24 = vld [vmem:[%s7739_s1 + $0x484] ss:$16 sps:$4 sm:$0xff]  }
  0x57   :  { %3616 = vmatpush1.bf16.msra.mxu0 %v5153_v25  ;;  %3985 = vmatpush1.bf16.msra.mxu1 %v5156_v26  ;;  %v5250_v25 = vld [vmem:[%s7739_s1 + $0x48c] ss:$16 sps:$4 sm:$0xff]   ;;  %v5245_v26 = vld [vmem:[%s7739_s1 + $0x480] ss:$16 sps:$4 sm:$0xff]  }
  0x58   :  { %3617 = vmatprep.subr.bf16.mxu0 %v5161_v27  ;;  %3986 = vmatprep.subr.bf16.mxu1 %v5164_v28  ;;  %v5248_v27 = vld [vmem:[%s7739_s1 + $0x488] ss:$16 sps:$4 sm:$0xff]   ;;  %v5253_v28 = vld [vmem:[%s7739_s1 + $0x4a4] ss:$16 sps:$4 sm:$0xff]  }
  0x5b   :  { %3618 = vmatpush1.bf16.msra.mxu0 %v5159_v31  ;;  %3987 = vmatpush1.bf16.msra.mxu1 %v5162_v32  ;;  %v5254_v31 = vld [vmem:[%s7739_s1 + $0x4a8] ss:$16 sps:$4 sm:$0xff]   ;;  %v5259_v32 = vld [vmem:[%s7739_s1 + $0x4c4] ss:$16 sps:$4 sm:$0xff]  }
  0x5c   :  { %3619 = vmatprep.subr.bf16.mxu0 %v5167_v33  ;;  %3988 = vmatprep.subr.bf16.mxu1 %v5170_v34  ;;  %v5262_v33 = vld [vmem:[%s7739_s1 + $0x4cc] ss:$16 sps:$4 sm:$0xff]   ;;  %v5257_v34 = vld [vmem:[%s7739_s1 + $0x4c0] ss:$16 sps:$4 sm:$0xff]  }
  0x5f   :  { %3620 = vmatpush1.bf16.msra.mxu0 %v5165_v35  ;;  %3989 = vmatpush1.bf16.msra.mxu1 %v5168_v36  ;;  %v5260_v35 = vld [vmem:[%s7739_s1 + $0x4c8] ss:$16 sps:$4 sm:$0xff]   ;;  %v5265_v36 = vld [vmem:[%s7739_s1 + $0x4e4] ss:$16 sps:$4 sm:$0xff]  }
  0x60   :  { %3621 = vmatprep.subr.bf16.mxu0 %v5173_v37  ;;  %3990 = vmatprep.subr.bf16.mxu1 %v5176_v38  ;;  %v5268_v37 = vld [vmem:[%s7739_s1 + $0x4ec] ss:$16 sps:$4 sm:$0xff]   ;;  %v5263_v38 = vld [vmem:[%s7739_s1 + $0x4e0] ss:$16 sps:$4 sm:$0xff]  }
  0x63   :  { %3622 = vmatpush1.bf16.msra.mxu0 %v5171_v39  ;;  %3991 = vmatpush1.bf16.msra.mxu1 %v5174_v40  ;;  %v5266_v39 = vld [vmem:[%s7739_s1 + $0x4e8] ss:$16 sps:$4 sm:$0xff]   ;;  %v5271_v40 = vld [vmem:[%s7739_s1 + $0x504] ss:$16 sps:$4 sm:$0xff]  }
  0x64   :  { %3623 = vmatprep.subr.bf16.mxu0 %v5179_v41  ;;  %3992 = vmatprep.subr.bf16.mxu1 %v5182_v42  ;;  %v5274_v41 = vld [vmem:[%s7739_s1 + $0x50c] ss:$16 sps:$4 sm:$0xff]   ;;  %v5269_v42 = vld [vmem:[%s7739_s1 + $0x500] ss:$16 sps:$4 sm:$0xff]  }
  0x67   :  { %3624 = vmatpush1.bf16.msra.mxu0 %v5177_v43  ;;  %3993 = vmatpush1.bf16.msra.mxu1 %v5180_v44  ;;  %v5272_v43 = vld [vmem:[%s7739_s1 + $0x508] ss:$16 sps:$4 sm:$0xff]   ;;  %v5277_v44 = vld [vmem:[%s7739_s1 + $0x524] ss:$16 sps:$4 sm:$0xff]  }
  0x68   :  { %3625 = vmatprep.subr.bf16.mxu0 %v5185_v45  ;;  %3994 = vmatprep.subr.bf16.mxu1 %v5188_v46  ;;  %v5280_v45 = vld [vmem:[%s7739_s1 + $0x52c] ss:$16 sps:$4 sm:$0xff]   ;;  %v5275_v46 = vld [vmem:[%s7739_s1 + $0x520] ss:$16 sps:$4 sm:$0xff]  }
  0x6b   :  { %3626 = vmatpush1.bf16.msra.mxu0 %v5183_v47  ;;  %3995 = vmatpush1.bf16.msra.mxu1 %v5186_v48  ;;  %v5278_v47 = vld [vmem:[%s7739_s1 + $0x528] ss:$16 sps:$4 sm:$0xff]   ;;  %v5283_v48 = vld [vmem:[%s7739_s1 + $0x544] ss:$16 sps:$4 sm:$0xff]  }
  0x6c   :  { %3627 = vmatprep.subr.bf16.mxu0 %v5191_v49  ;;  %3996 = vmatprep.subr.bf16.mxu1 %v5194_v50  ;;  %v5286_v49 = vld [vmem:[%s7739_s1 + $0x54c] ss:$16 sps:$4 sm:$0xff]   ;;  %v5281_v50 = vld [vmem:[%s7739_s1 + $0x540] ss:$16 sps:$4 sm:$0xff]  }
  0x6f   :  { %3628 = vmatpush1.bf16.msra.mxu0 %v5189_v51  ;;  %3997 = vmatpush1.bf16.msra.mxu1 %v5192_v52  ;;  %v5284_v51 = vld [vmem:[%s7739_s1 + $0x548] ss:$16 sps:$4 sm:$0xff]   ;;  %v5289_v52 = vld [vmem:[%s7739_s1 + $0x564] ss:$16 sps:$4 sm:$0xff]  }
  0x70   :  { %3629 = vmatprep.subr.bf16.mxu0 %v5197_v53  ;;  %3998 = vmatprep.subr.bf16.mxu1 %v5200_v54  ;;  %v5292_v53 = vld [vmem:[%s7739_s1 + $0x56c] ss:$16 sps:$4 sm:$0xff]   ;;  %v5287_v54 = vld [vmem:[%s7739_s1 + $0x560] ss:$16 sps:$4 sm:$0xff]  }
  0x73   :  { %3630 = vmatpush1.bf16.msra.mxu0 %v5195_v55  ;;  %3999 = vmatpush1.bf16.msra.mxu1 %v5198_v56  ;;  %v5290_v55 = vld [vmem:[%s7739_s1 + $0x568] ss:$16 sps:$4 sm:$0xff]   ;;  %v5295_v56 = vld [vmem:[%s7739_s1 + $0x584] ss:$16 sps:$4 sm:$0xff]  }
  0x74   :  { %3631 = vmatprep.subr.bf16.mxu0 %v5203_v57  ;;  %4000 = vmatprep.subr.bf16.mxu1 %v5206_v58  ;;  %v5298_v57 = vld [vmem:[%s7739_s1 + $0x58c] ss:$16 sps:$4 sm:$0xff]   ;;  %v5293_v58 = vld [vmem:[%s7739_s1 + $0x580] ss:$16 sps:$4 sm:$0xff]  }
  0x77   :  { %3632 = vmatpush1.bf16.msra.mxu0 %v5201_v59  ;;  %4001 = vmatpush1.bf16.msra.mxu1 %v5204_v60  ;;  %v5296_v59 = vld [vmem:[%s7739_s1 + $0x588] ss:$16 sps:$4 sm:$0xff]   ;;  %v5301_v60 = vld [vmem:[%s7739_s1 + $0x5a4] ss:$16 sps:$4 sm:$0xff]  }
  0x78   :  { %3633 = vmatprep.subr.bf16.mxu0 %v5209_v61  ;;  %4002 = vmatprep.subr.bf16.mxu1 %v5212_v62  ;;  %v5304_v61 = vld [vmem:[%s7739_s1 + $0x5ac] ss:$16 sps:$4 sm:$0xff]   ;;  %v5299_v62 = vld [vmem:[%s7739_s1 + $0x5a0] ss:$16 sps:$4 sm:$0xff]  }
  0x7b   :  { %3634 = vmatpush1.bf16.msra.mxu0 %v5207_v63  ;;  %4003 = vmatpush1.bf16.msra.mxu1 %v5210_v0  ;;  %v5302_v63 = vld [vmem:[%s7739_s1 + $0x5a8] ss:$16 sps:$4 sm:$0xff]   ;;  %v5307_v0 = vld [vmem:[%s7739_s1 + $0x5c4] ss:$16 sps:$4 sm:$0xff]  }
  0x7c   :  { %3635 = vmatprep.subr.bf16.mxu0 %v5215_v1  ;;  %4004 = vmatprep.subr.bf16.mxu1 %v5218_v2  ;;  %v5310_v1 = vld [vmem:[%s7739_s1 + $0x5cc] ss:$16 sps:$4 sm:$0xff]   ;;  %v5305_v2 = vld [vmem:[%s7739_s1 + $0x5c0] ss:$16 sps:$4 sm:$0xff]  }
  0x7f   :  { %3636 = vmatpush1.bf16.msra.mxu0 %v5213_v3  ;;  %4005 = vmatpush1.bf16.msra.mxu1 %v5216_v4  ;;  %v5308_v3 = vld [vmem:[%s7739_s1 + $0x5c8] ss:$16 sps:$4 sm:$0xff]   ;;  %v5313_v4 = vld [vmem:[%s7739_s1 + $0x5e4] ss:$16 sps:$4 sm:$0xff]  }
  0x80   :  { %3646 = vmatprep.subr.bf16.mxu0 %v5223_v5  ;;  %4015 = vmatprep.subr.bf16.mxu1 %v5226_v6  ;;  %v5316_v5 = vld [vmem:[%s7739_s1 + $0x5ec] ss:$16 sps:$4 sm:$0xff]   ;;  %v5311_v6 = vld [vmem:[%s7739_s1 + $0x5e0] ss:$16 sps:$4 sm:$0xff]  }
  0x82   :  { %3638 = vmatmul.mubr.bf16.vlgmr.msra.gmra.mrb[0].mxu0 %v4361_v7  ;;  %4007 = vmatmul.mubr.bf16.vlgmr.msra.gmra.mrb[0].mxu1 %v4361_v7  ;;  %v5314_v7 = vld [vmem:[%s7739_s1 + $0x5e8] ss:$16 sps:$4 sm:$0xff]  }
  0x83   :  { %3647 = vmatpush1.bf16.msra.mxu0 %v5221_v8  ;;  %4016 = vmatpush1.bf16.msra.mxu1 %v5224_v9  ;;  %v5321_v8 = vld [vmem:[%s7739_s1 + $0x604] ss:$16 sps:$4 sm:$0xff]   ;;  %v5324_v9 = vld [vmem:[%s7739_s1 + $0x60c] ss:$16 sps:$4 sm:$0xff]  }
  0x84   :  { %3648 = vmatprep.subr.bf16.mxu0 %v5229_v10  ;;  %4017 = vmatprep.subr.bf16.mxu1 %v5232_v12  ;;  %v5319_v10 = vld [vmem:[%s7739_s1 + $0x600] ss:$16 sps:$4 sm:$0xff]   ;;  %v4363_v12 = vcombine.low %v6341_v11, %v6341_v11  ;;  %v5330_v11 = vld [vmem:[%s7739_s1 + $0x62c] ss:$16 sps:$4 sm:$0xff]  }
  0x85   :  { %3678 = vmatprep.mubr.bf16.mxu0 %v4364_v13  ;;  %4047 = vmatprep.mubr.bf16.mxu1 %v4364_v13  ;;  %v5322_v13 = vld [vmem:[%s7739_s1 + $0x608] ss:$16 sps:$4 sm:$0xff]  }
  0x87   :  { %3649 = vmatpush1.bf16.msra.mxu0 %v5227_v14  ;;  %4018 = vmatpush1.bf16.msra.mxu1 %v5230_v15  ;;  %v6539_v14 = vld [vmem:[%s7740_s0 + $0x18] sm:$0xff]  ;;  %v5327_v15 = vld [vmem:[%s7739_s1 + $0x624] ss:$16 sps:$4 sm:$0xff]  }
  0x88   :  { %3650 = vmatprep.subr.bf16.mxu0 %v5235_v16  ;;  %4019 = vmatprep.subr.bf16.mxu1 %v5238_v17  ;;  %v4366_v16 = vcombine.high %v6539_v14, %v6539_v14  ;;  %v5325_v17 = vld [vmem:[%s7739_s1 + $0x620] ss:$16 sps:$4 sm:$0xff]  }
  0x8b   :  { %3651 = vmatpush1.bf16.msra.mxu0 %v5233_v18  ;;  %4020 = vmatpush1.bf16.msra.mxu1 %v5236_v19  ;;  %v5328_v18 = vld [vmem:[%s7739_s1 + $0x628] ss:$16 sps:$4 sm:$0xff]   ;;  %v5333_v19 = vld [vmem:[%s7739_s1 + $0x644] ss:$16 sps:$4 sm:$0xff]  }
  0x8c   :  { %3652 = vmatprep.subr.bf16.mxu0 %v5241_v20  ;;  %4021 = vmatprep.subr.bf16.mxu1 %v5244_v21  ;;  %v5336_v20 = vld [vmem:[%s7739_s1 + $0x64c] ss:$16 sps:$4 sm:$0xff]   ;;  %v5331_v21 = vld [vmem:[%s7739_s1 + $0x640] ss:$16 sps:$4 sm:$0xff]  }
  0x8f   :  { %3653 = vmatpush1.bf16.msra.mxu0 %v5239_v22  ;;  %4022 = vmatpush1.bf16.msra.mxu1 %v5242_v23  ;;  %v5334_v22 = vld [vmem:[%s7739_s1 + $0x648] ss:$16 sps:$4 sm:$0xff]   ;;  %v5339_v23 = vld [vmem:[%s7739_s1 + $0x664] ss:$16 sps:$4 sm:$0xff]  }
  0x90   :  { %3654 = vmatprep.subr.bf16.mxu0 %v5247_v24  ;;  %4023 = vmatprep.subr.bf16.mxu1 %v5250_v25  ;;  %v5342_v24 = vld [vmem:[%s7739_s1 + $0x66c] ss:$16 sps:$4 sm:$0xff]   ;;  %v5337_v25 = vld [vmem:[%s7739_s1 + $0x660] ss:$16 sps:$4 sm:$0xff]  }
  0x93   :  { %3655 = vmatpush1.bf16.msra.mxu0 %v5245_v26  ;;  %4024 = vmatpush1.bf16.msra.mxu1 %v5248_v27  ;;  %v5340_v26 = vld [vmem:[%s7739_s1 + $0x668] ss:$16 sps:$4 sm:$0xff]   ;;  %v5345_v27 = vld [vmem:[%s7739_s1 + $0x684] ss:$16 sps:$4 sm:$0xff]  }
  0x94   :  { %3656 = vmatprep.subr.bf16.mxu0 %v5253_v28  ;;  %4025 = vmatprep.subr.bf16.mxu1 %v5256_v29  ;;  %v5348_v28 = vld [vmem:[%s7739_s1 + $0x68c] ss:$16 sps:$4 sm:$0xff]   ;;  %v5343_v29 = vld [vmem:[%s7739_s1 + $0x680] ss:$16 sps:$4 sm:$0xff]  }
  0x97   :  { %3657 = vmatpush1.bf16.msra.mxu0 %v5251_v30  ;;  %4026 = vmatpush1.bf16.msra.mxu1 %v5254_v31  ;;  %v5346_v30 = vld [vmem:[%s7739_s1 + $0x688] ss:$16 sps:$4 sm:$0xff]   ;;  %v5351_v31 = vld [vmem:[%s7739_s1 + $0x6a4] ss:$16 sps:$4 sm:$0xff]  }
  0x98   :  { %3658 = vmatprep.subr.bf16.mxu0 %v5259_v32  ;;  %4027 = vmatprep.subr.bf16.mxu1 %v5262_v33  ;;  %v5354_v32 = vld [vmem:[%s7739_s1 + $0x6ac] ss:$16 sps:$4 sm:$0xff]   ;;  %v5349_v33 = vld [vmem:[%s7739_s1 + $0x6a0] ss:$16 sps:$4 sm:$0xff]  }
  0x9b   :  { %3659 = vmatpush1.bf16.msra.mxu0 %v5257_v34  ;;  %4028 = vmatpush1.bf16.msra.mxu1 %v5260_v35  ;;  %v5352_v34 = vld [vmem:[%s7739_s1 + $0x6a8] ss:$16 sps:$4 sm:$0xff]   ;;  %v5357_v35 = vld [vmem:[%s7739_s1 + $0x6c4] ss:$16 sps:$4 sm:$0xff]  }
  0x9c   :  { %3660 = vmatprep.subr.bf16.mxu0 %v5265_v36  ;;  %4029 = vmatprep.subr.bf16.mxu1 %v5268_v37  ;;  %v5360_v36 = vld [vmem:[%s7739_s1 + $0x6cc] ss:$16 sps:$4 sm:$0xff]   ;;  %v5355_v37 = vld [vmem:[%s7739_s1 + $0x6c0] ss:$16 sps:$4 sm:$0xff]  }
  0x9f   :  { %3661 = vmatpush1.bf16.msra.mxu0 %v5263_v38  ;;  %4030 = vmatpush1.bf16.msra.mxu1 %v5266_v39  ;;  %v5358_v38 = vld [vmem:[%s7739_s1 + $0x6c8] ss:$16 sps:$4 sm:$0xff]   ;;  %v5363_v39 = vld [vmem:[%s7739_s1 + $0x6e4] ss:$16 sps:$4 sm:$0xff]  }
  0xa0   :  { %3662 = vmatprep.subr.bf16.mxu0 %v5271_v40  ;;  %4031 = vmatprep.subr.bf16.mxu1 %v5274_v41  ;;  %v5366_v40 = vld [vmem:[%s7739_s1 + $0x6ec] ss:$16 sps:$4 sm:$0xff]   ;;  %v5361_v41 = vld [vmem:[%s7739_s1 + $0x6e0] ss:$16 sps:$4 sm:$0xff]  }
  0xa3   :  { %3663 = vmatpush1.bf16.msra.mxu0 %v5269_v42  ;;  %4032 = vmatpush1.bf16.msra.mxu1 %v5272_v43  ;;  %v5364_v42 = vld [vmem:[%s7739_s1 + $0x6e8] ss:$16 sps:$4 sm:$0xff]   ;;  %v5369_v43 = vld [vmem:[%s7739_s1 + $0x704] ss:$16 sps:$4 sm:$0xff]  }
  0xa4   :  { %3664 = vmatprep.subr.bf16.mxu0 %v5277_v44  ;;  %4033 = vmatprep.subr.bf16.mxu1 %v5280_v45  ;;  %v5372_v44 = vld [vmem:[%s7739_s1 + $0x70c] ss:$16 sps:$4 sm:$0xff]   ;;  %v5367_v45 = vld [vmem:[%s7739_s1 + $0x700] ss:$16 sps:$4 sm:$0xff]  }
  0xa7   :  { %3665 = vmatpush1.bf16.msra.mxu0 %v5275_v46  ;;  %4034 = vmatpush1.bf16.msra.mxu1 %v5278_v47  ;;  %v5370_v46 = vld [vmem:[%s7739_s1 + $0x708] ss:$16 sps:$4 sm:$0xff]   ;;  %v5375_v47 = vld [vmem:[%s7739_s1 + $0x724] ss:$16 sps:$4 sm:$0xff]  }
  0xa8   :  { %3666 = vmatprep.subr.bf16.mxu0 %v5283_v48  ;;  %4035 = vmatprep.subr.bf16.mxu1 %v5286_v49  ;;  %v5378_v48 = vld [vmem:[%s7739_s1 + $0x72c] ss:$16 sps:$4 sm:$0xff]   ;;  %v5373_v49 = vld [vmem:[%s7739_s1 + $0x720] ss:$16 sps:$4 sm:$0xff]  }
  0xab   :  { %3667 = vmatpush1.bf16.msra.mxu0 %v5281_v50  ;;  %4036 = vmatpush1.bf16.msra.mxu1 %v5284_v51  ;;  %v5376_v50 = vld [vmem:[%s7739_s1 + $0x728] ss:$16 sps:$4 sm:$0xff]   ;;  %v5381_v51 = vld [vmem:[%s7739_s1 + $0x744] ss:$16 sps:$4 sm:$0xff]  }
  0xac   :  { %3668 = vmatprep.subr.bf16.mxu0 %v5289_v52  ;;  %4037 = vmatprep.subr.bf16.mxu1 %v5292_v53  ;;  %v5384_v52 = vld [vmem:[%s7739_s1 + $0x74c] ss:$16 sps:$4 sm:$0xff]   ;;  %v5379_v53 = vld [vmem:[%s7739_s1 + $0x740] ss:$16 sps:$4 sm:$0xff]  }
  0xaf   :  { %3669 = vmatpush1.bf16.msra.mxu0 %v5287_v54  ;;  %4038 = vmatpush1.bf16.msra.mxu1 %v5290_v55  ;;  %v5382_v54 = vld [vmem:[%s7739_s1 + $0x748] ss:$16 sps:$4 sm:$0xff]   ;;  %v5387_v55 = vld [vmem:[%s7739_s1 + $0x764] ss:$16 sps:$4 sm:$0xff]  }
  0xb0   :  { %3670 = vmatprep.subr.bf16.mxu0 %v5295_v56  ;;  %4039 = vmatprep.subr.bf16.mxu1 %v5298_v57  ;;  %v5390_v56 = vld [vmem:[%s7739_s1 + $0x76c] ss:$16 sps:$4 sm:$0xff]   ;;  %v5385_v57 = vld [vmem:[%s7739_s1 + $0x760] ss:$16 sps:$4 sm:$0xff]  }
  0xb3   :  { %3671 = vmatpush1.bf16.msra.mxu0 %v5293_v58  ;;  %4040 = vmatpush1.bf16.msra.mxu1 %v5296_v59  ;;  %v5388_v58 = vld [vmem:[%s7739_s1 + $0x768] ss:$16 sps:$4 sm:$0xff]   ;;  %v5393_v59 = vld [vmem:[%s7739_s1 + $0x784] ss:$16 sps:$4 sm:$0xff]  }
  0xb4   :  { %3672 = vmatprep.subr.bf16.mxu0 %v5301_v60  ;;  %4041 = vmatprep.subr.bf16.mxu1 %v5304_v61  ;;  %v5396_v60 = vld [vmem:[%s7739_s1 + $0x78c] ss:$16 sps:$4 sm:$0xff]   ;;  %v5391_v61 = vld [vmem:[%s7739_s1 + $0x780] ss:$16 sps:$4 sm:$0xff]  }
  0xb7   :  { %3673 = vmatpush1.bf16.msra.mxu0 %v5299_v62  ;;  %4042 = vmatpush1.bf16.msra.mxu1 %v5302_v63  ;;  %v5394_v62 = vld [vmem:[%s7739_s1 + $0x788] ss:$16 sps:$4 sm:$0xff]   ;;  %v5399_v63 = vld [vmem:[%s7739_s1 + $0x7a4] ss:$16 sps:$4 sm:$0xff]  }
  0xb8   :  { %3674 = vmatprep.subr.bf16.mxu0 %v5307_v0  ;;  %4043 = vmatprep.subr.bf16.mxu1 %v5310_v1  ;;  %v5402_v0 = vld [vmem:[%s7739_s1 + $0x7ac] ss:$16 sps:$4 sm:$0xff]   ;;  %v5397_v1 = vld [vmem:[%s7739_s1 + $0x7a0] ss:$16 sps:$4 sm:$0xff]  }
  0xbb   :  { %3675 = vmatpush1.bf16.msra.mxu0 %v5305_v2  ;;  %4044 = vmatpush1.bf16.msra.mxu1 %v5308_v3  ;;  %v5400_v2 = vld [vmem:[%s7739_s1 + $0x7a8] ss:$16 sps:$4 sm:$0xff]   ;;  %v5405_v3 = vld [vmem:[%s7739_s1 + $0x7c4] ss:$16 sps:$4 sm:$0xff]  }
  0xbc   :  { %3676 = vmatprep.subr.bf16.mxu0 %v5313_v4  ;;  %4045 = vmatprep.subr.bf16.mxu1 %v5316_v5  ;;  %v5408_v4 = vld [vmem:[%s7739_s1 + $0x7cc] ss:$16 sps:$4 sm:$0xff]   ;;  %v5403_v5 = vld [vmem:[%s7739_s1 + $0x7c0] ss:$16 sps:$4 sm:$0xff]  }
  0xbf   :  { %3677 = vmatpush1.bf16.msra.mxu0 %v5311_v6  ;;  %4046 = vmatpush1.bf16.msra.mxu1 %v5314_v7  ;;  %v5406_v6 = vld [vmem:[%s7739_s1 + $0x7c8] ss:$16 sps:$4 sm:$0xff]   ;;  %v5411_v7 = vld [vmem:[%s7739_s1 + $0x7e4] ss:$16 sps:$4 sm:$0xff]  }
  0xc0   :  { %3687 = vmatprep.subr.bf16.mxu0 %v5321_v8  ;;  %4056 = vmatprep.subr.bf16.mxu1 %v5324_v9  ;;  %v5414_v8 = vld [vmem:[%s7739_s1 + $0x7ec] ss:$16 sps:$4 sm:$0xff]   ;;  %v5409_v9 = vld [vmem:[%s7739_s1 + $0x7e0] ss:$16 sps:$4 sm:$0xff]  }
  0xc2   :  { %3679 = vmatmul.mubr.bf16.vlgmr.msra.gmra.mrb[0].mxu0 %v4363_v12  ;;  %4048 = vmatmul.mubr.bf16.vlgmr.msra.gmra.mrb[0].mxu1 %v4363_v12  ;;  %v5419_v12 = vld [vmem:[%s7739_s1 + $0x804] ss:$16 sps:$4 sm:$0xff]  }
  0xc3   :  { %3688 = vmatpush1.bf16.msra.mxu0 %v5319_v10  ;;  %4057 = vmatpush1.bf16.msra.mxu1 %v5322_v13  ;;  %v5412_v10 = vld [vmem:[%s7739_s1 + $0x7e8] ss:$16 sps:$4 sm:$0xff]   ;;  %v5422_v13 = vld [vmem:[%s7739_s1 + $0x80c] ss:$16 sps:$4 sm:$0xff]  }
  0xc4   :  { %3689 = vmatprep.subr.bf16.mxu0 %v5327_v15  ;;  %4058 = vmatprep.subr.bf16.mxu1 %v5330_v11  ;;  %v5417_v15 = vld [vmem:[%s7739_s1 + $0x800] ss:$16 sps:$4 sm:$0xff]   ;;  %v4365_v11 = vcombine.low %v6539_v14, %v6539_v14  ;;  %v5428_v14 = vld [vmem:[%s7739_s1 + $0x82c] ss:$16 sps:$4 sm:$0xff]  }
  0xc5   :  { %3719 = vmatprep.mubr.bf16.mxu0 %v4366_v16  ;;  %4088 = vmatprep.mubr.bf16.mxu1 %v4366_v16  ;;  %v6737_v16 = vld [vmem:[%s7740_s0 + $0x20] sm:$0xff] }
  0xc7   :  { %3690 = vmatpush1.bf16.msra.mxu0 %v5325_v17  ;;  %4059 = vmatpush1.bf16.msra.mxu1 %v5328_v18  ;;  %v5420_v17 = vld [vmem:[%s7739_s1 + $0x808] ss:$16 sps:$4 sm:$0xff]   ;;  %v5425_v18 = vld [vmem:[%s7739_s1 + $0x824] ss:$16 sps:$4 sm:$0xff]  }
  0xc8   :  { %3691 = vmatprep.subr.bf16.mxu0 %v5333_v19  ;;  %4060 = vmatprep.subr.bf16.mxu1 %v5336_v20  ;;  %v4368_v19 = vcombine.high %v6737_v16, %v6737_v16  ;;  %v5423_v20 = vld [vmem:[%s7739_s1 + $0x820] ss:$16 sps:$4 sm:$0xff]  }
  0xcb   :  { %3692 = vmatpush1.bf16.msra.mxu0 %v5331_v21  ;;  %4061 = vmatpush1.bf16.msra.mxu1 %v5334_v22  ;;  %v5426_v21 = vld [vmem:[%s7739_s1 + $0x828] ss:$16 sps:$4 sm:$0xff]   ;;  %v5431_v22 = vld [vmem:[%s7739_s1 + $0x844] ss:$16 sps:$4 sm:$0xff]  }
  0xcc   :  { %3693 = vmatprep.subr.bf16.mxu0 %v5339_v23  ;;  %4062 = vmatprep.subr.bf16.mxu1 %v5342_v24  ;;  %v5434_v23 = vld [vmem:[%s7739_s1 + $0x84c] ss:$16 sps:$4 sm:$0xff]   ;;  %v5429_v24 = vld [vmem:[%s7739_s1 + $0x840] ss:$16 sps:$4 sm:$0xff]  }
  0xcf   :  { %3694 = vmatpush1.bf16.msra.mxu0 %v5337_v25  ;;  %4063 = vmatpush1.bf16.msra.mxu1 %v5340_v26  ;;  %v5432_v25 = vld [vmem:[%s7739_s1 + $0x848] ss:$16 sps:$4 sm:$0xff]   ;;  %v5437_v26 = vld [vmem:[%s7739_s1 + $0x864] ss:$16 sps:$4 sm:$0xff]  }
  0xd0   :  { %3695 = vmatprep.subr.bf16.mxu0 %v5345_v27  ;;  %4064 = vmatprep.subr.bf16.mxu1 %v5348_v28  ;;  %v5440_v27 = vld [vmem:[%s7739_s1 + $0x86c] ss:$16 sps:$4 sm:$0xff]   ;;  %v5435_v28 = vld [vmem:[%s7739_s1 + $0x860] ss:$16 sps:$4 sm:$0xff]  }
  0xd3   :  { %3696 = vmatpush1.bf16.msra.mxu0 %v5343_v29  ;;  %4065 = vmatpush1.bf16.msra.mxu1 %v5346_v30  ;;  %v5438_v29 = vld [vmem:[%s7739_s1 + $0x868] ss:$16 sps:$4 sm:$0xff]   ;;  %v5443_v30 = vld [vmem:[%s7739_s1 + $0x884] ss:$16 sps:$4 sm:$0xff]  }
  0xd4   :  { %3697 = vmatprep.subr.bf16.mxu0 %v5351_v31  ;;  %4066 = vmatprep.subr.bf16.mxu1 %v5354_v32  ;;  %v5446_v31 = vld [vmem:[%s7739_s1 + $0x88c] ss:$16 sps:$4 sm:$0xff]   ;;  %v5441_v32 = vld [vmem:[%s7739_s1 + $0x880] ss:$16 sps:$4 sm:$0xff]  }
  0xd7   :  { %3698 = vmatpush1.bf16.msra.mxu0 %v5349_v33  ;;  %4067 = vmatpush1.bf16.msra.mxu1 %v5352_v34  ;;  %v5444_v33 = vld [vmem:[%s7739_s1 + $0x888] ss:$16 sps:$4 sm:$0xff]   ;;  %v5449_v34 = vld [vmem:[%s7739_s1 + $0x8a4] ss:$16 sps:$4 sm:$0xff]  }
  0xd8   :  { %3699 = vmatprep.subr.bf16.mxu0 %v5357_v35  ;;  %4068 = vmatprep.subr.bf16.mxu1 %v5360_v36  ;;  %v5452_v35 = vld [vmem:[%s7739_s1 + $0x8ac] ss:$16 sps:$4 sm:$0xff]   ;;  %v5447_v36 = vld [vmem:[%s7739_s1 + $0x8a0] ss:$16 sps:$4 sm:$0xff]  }
  0xdb   :  { %3700 = vmatpush1.bf16.msra.mxu0 %v5355_v37  ;;  %4069 = vmatpush1.bf16.msra.mxu1 %v5358_v38  ;;  %v5450_v37 = vld [vmem:[%s7739_s1 + $0x8a8] ss:$16 sps:$4 sm:$0xff]   ;;  %v5455_v38 = vld [vmem:[%s7739_s1 + $0x8c4] ss:$16 sps:$4 sm:$0xff]  }
  0xdc   :  { %3701 = vmatprep.subr.bf16.mxu0 %v5363_v39  ;;  %4070 = vmatprep.subr.bf16.mxu1 %v5366_v40  ;;  %v5458_v39 = vld [vmem:[%s7739_s1 + $0x8cc] ss:$16 sps:$4 sm:$0xff]   ;;  %v5453_v40 = vld [vmem:[%s7739_s1 + $0x8c0] ss:$16 sps:$4 sm:$0xff]  }
  0xdf   :  { %3702 = vmatpush1.bf16.msra.mxu0 %v5361_v41  ;;  %4071 = vmatpush1.bf16.msra.mxu1 %v5364_v42  ;;  %v5456_v41 = vld [vmem:[%s7739_s1 + $0x8c8] ss:$16 sps:$4 sm:$0xff]   ;;  %v5461_v42 = vld [vmem:[%s7739_s1 + $0x8e4] ss:$16 sps:$4 sm:$0xff]  }
  0xe0   :  { %3703 = vmatprep.subr.bf16.mxu0 %v5369_v43  ;;  %4072 = vmatprep.subr.bf16.mxu1 %v5372_v44  ;;  %v5464_v43 = vld [vmem:[%s7739_s1 + $0x8ec] ss:$16 sps:$4 sm:$0xff]   ;;  %v5459_v44 = vld [vmem:[%s7739_s1 + $0x8e0] ss:$16 sps:$4 sm:$0xff]  }
  0xe3   :  { %3704 = vmatpush1.bf16.msra.mxu0 %v5367_v45  ;;  %4073 = vmatpush1.bf16.msra.mxu1 %v5370_v46  ;;  %v5462_v45 = vld [vmem:[%s7739_s1 + $0x8e8] ss:$16 sps:$4 sm:$0xff]   ;;  %v5467_v46 = vld [vmem:[%s7739_s1 + $0x904] ss:$16 sps:$4 sm:$0xff]  }
  0xe4   :  { %3705 = vmatprep.subr.bf16.mxu0 %v5375_v47  ;;  %4074 = vmatprep.subr.bf16.mxu1 %v5378_v48  ;;  %v5470_v47 = vld [vmem:[%s7739_s1 + $0x90c] ss:$16 sps:$4 sm:$0xff]   ;;  %v5465_v48 = vld [vmem:[%s7739_s1 + $0x900] ss:$16 sps:$4 sm:$0xff]  }
  0xe7   :  { %3706 = vmatpush1.bf16.msra.mxu0 %v5373_v49  ;;  %4075 = vmatpush1.bf16.msra.mxu1 %v5376_v50  ;;  %v5468_v49 = vld [vmem:[%s7739_s1 + $0x908] ss:$16 sps:$4 sm:$0xff]   ;;  %v5473_v50 = vld [vmem:[%s7739_s1 + $0x924] ss:$16 sps:$4 sm:$0xff]  }
  0xe8   :  { %3707 = vmatprep.subr.bf16.mxu0 %v5381_v51  ;;  %4076 = vmatprep.subr.bf16.mxu1 %v5384_v52  ;;  %v5476_v51 = vld [vmem:[%s7739_s1 + $0x92c] ss:$16 sps:$4 sm:$0xff]   ;;  %v5471_v52 = vld [vmem:[%s7739_s1 + $0x920] ss:$16 sps:$4 sm:$0xff]  }
  0xeb   :  { %3708 = vmatpush1.bf16.msra.mxu0 %v5379_v53  ;;  %4077 = vmatpush1.bf16.msra.mxu1 %v5382_v54  ;;  %v5474_v53 = vld [vmem:[%s7739_s1 + $0x928] ss:$16 sps:$4 sm:$0xff]   ;;  %v5479_v54 = vld [vmem:[%s7739_s1 + $0x944] ss:$16 sps:$4 sm:$0xff]  }
  0xec   :  { %3709 = vmatprep.subr.bf16.mxu0 %v5387_v55  ;;  %4078 = vmatprep.subr.bf16.mxu1 %v5390_v56  ;;  %v5482_v55 = vld [vmem:[%s7739_s1 + $0x94c] ss:$16 sps:$4 sm:$0xff]   ;;  %v5477_v56 = vld [vmem:[%s7739_s1 + $0x940] ss:$16 sps:$4 sm:$0xff]  }
  0xef   :  { %3710 = vmatpush1.bf16.msra.mxu0 %v5385_v57  ;;  %4079 = vmatpush1.bf16.msra.mxu1 %v5388_v58  ;;  %v5480_v57 = vld [vmem:[%s7739_s1 + $0x948] ss:$16 sps:$4 sm:$0xff]   ;;  %v5485_v58 = vld [vmem:[%s7739_s1 + $0x964] ss:$16 sps:$4 sm:$0xff]  }
  0xf0   :  { %3711 = vmatprep.subr.bf16.mxu0 %v5393_v59  ;;  %4080 = vmatprep.subr.bf16.mxu1 %v5396_v60  ;;  %v5488_v59 = vld [vmem:[%s7739_s1 + $0x96c] ss:$16 sps:$4 sm:$0xff]   ;;  %v5483_v60 = vld [vmem:[%s7739_s1 + $0x960] ss:$16 sps:$4 sm:$0xff]  }
  0xf3   :  { %3712 = vmatpush1.bf16.msra.mxu0 %v5391_v61  ;;  %4081 = vmatpush1.bf16.msra.mxu1 %v5394_v62  ;;  %v5486_v61 = vld [vmem:[%s7739_s1 + $0x968] ss:$16 sps:$4 sm:$0xff]   ;;  %v5491_v62 = vld [vmem:[%s7739_s1 + $0x984] ss:$16 sps:$4 sm:$0xff]  }
  0xf4   :  { %3713 = vmatprep.subr.bf16.mxu0 %v5399_v63  ;;  %4082 = vmatprep.subr.bf16.mxu1 %v5402_v0  ;;  %v5494_v63 = vld [vmem:[%s7739_s1 + $0x98c] ss:$16 sps:$4 sm:$0xff]   ;;  %v5489_v0 = vld [vmem:[%s7739_s1 + $0x980] ss:$16 sps:$4 sm:$0xff]  }
  0xf7   :  { %3714 = vmatpush1.bf16.msra.mxu0 %v5397_v1  ;;  %4083 = vmatpush1.bf16.msra.mxu1 %v5400_v2  ;;  %v5492_v1 = vld [vmem:[%s7739_s1 + $0x988] ss:$16 sps:$4 sm:$0xff]   ;;  %v5497_v2 = vld [vmem:[%s7739_s1 + $0x9a4] ss:$16 sps:$4 sm:$0xff]  }
  0xf8   :  { %3715 = vmatprep.subr.bf16.mxu0 %v5405_v3  ;;  %4084 = vmatprep.subr.bf16.mxu1 %v5408_v4  ;;  %v5500_v3 = vld [vmem:[%s7739_s1 + $0x9ac] ss:$16 sps:$4 sm:$0xff]   ;;  %v5495_v4 = vld [vmem:[%s7739_s1 + $0x9a0] ss:$16 sps:$4 sm:$0xff]  }
  0xfb   :  { %3716 = vmatpush1.bf16.msra.mxu0 %v5403_v5  ;;  %4085 = vmatpush1.bf16.msra.mxu1 %v5406_v6  ;;  %v5498_v5 = vld [vmem:[%s7739_s1 + $0x9a8] ss:$16 sps:$4 sm:$0xff]   ;;  %v5503_v6 = vld [vmem:[%s7739_s1 + $0x9c4] ss:$16 sps:$4 sm:$0xff]  }
  0xfc   :  { %3717 = vmatprep.subr.bf16.mxu0 %v5411_v7  ;;  %4086 = vmatprep.subr.bf16.mxu1 %v5414_v8  ;;  %v5506_v7 = vld [vmem:[%s7739_s1 + $0x9cc] ss:$16 sps:$4 sm:$0xff]   ;;  %v5501_v8 = vld [vmem:[%s7739_s1 + $0x9c0] ss:$16 sps:$4 sm:$0xff]  }
  0xff   :  { %3718 = vmatpush1.bf16.msra.mxu0 %v5409_v9  ;;  %4087 = vmatpush1.bf16.msra.mxu1 %v5412_v10  ;;  %v5504_v9 = vld [vmem:[%s7739_s1 + $0x9c8] ss:$16 sps:$4 sm:$0xff]   ;;  %v5509_v10 = vld [vmem:[%s7739_s1 + $0x9e4] ss:$16 sps:$4 sm:$0xff]  }
 0x100   :  { %3728 = vmatprep.subr.bf16.mxu0 %v5419_v12  ;;  %4097 = vmatprep.subr.bf16.mxu1 %v5422_v13  ;;  %v5512_v12 = vld [vmem:[%s7739_s1 + $0x9ec] ss:$16 sps:$4 sm:$0xff]   ;;  %v5507_v13 = vld [vmem:[%s7739_s1 + $0x9e0] ss:$16 sps:$4 sm:$0xff]  }
 0x102   :  { %3720 = vmatmul.mubr.bf16.vlgmr.msra.gmra.mrb[0].mxu0 %v4365_v11  ;;  %4089 = vmatmul.mubr.bf16.vlgmr.msra.gmra.mrb[0].mxu1 %v4365_v11  ;;  %v5517_v11 = vld [vmem:[%s7739_s1 + $0xa04] ss:$16 sps:$4 sm:$0xff]  }
 0x103   :  { %3729 = vmatpush1.bf16.msra.mxu0 %v5417_v15  ;;  %4098 = vmatpush1.bf16.msra.mxu1 %v5420_v17  ;;  %v5510_v15 = vld [vmem:[%s7739_s1 + $0x9e8] ss:$16 sps:$4 sm:$0xff]   ;;  %v5520_v17 = vld [vmem:[%s7739_s1 + $0xa0c] ss:$16 sps:$4 sm:$0xff]  }
 0x104   :  { %3730 = vmatprep.subr.bf16.mxu0 %v5425_v18  ;;  %4099 = vmatprep.subr.bf16.mxu1 %v5428_v14  ;;  %v6933_v18 = vld [vmem:[%s7740_s0 + $0x28] sm:$0xff]  ;;  %v4367_v14 = vcombine.low %v6737_v16, %v6737_v16 }
 0x105   :  { %3760 = vmatprep.mubr.bf16.mxu0 %v4368_v19  ;;  %4129 = vmatprep.mubr.bf16.mxu1 %v4368_v19  ;;  %v5515_v19 = vld [vmem:[%s7739_s1 + $0xa00] ss:$16 sps:$4 sm:$0xff]   ;;  %v5526_v16 = vld [vmem:[%s7739_s1 + $0xa2c] ss:$16 sps:$4 sm:$0xff]  }
 0x107   :  { %3731 = vmatpush1.bf16.msra.mxu0 %v5423_v20  ;;  %4100 = vmatpush1.bf16.msra.mxu1 %v5426_v21  ;;  %v5518_v20 = vld [vmem:[%s7739_s1 + $0xa08] ss:$16 sps:$4 sm:$0xff]   ;;  %v5523_v21 = vld [vmem:[%s7739_s1 + $0xa24] ss:$16 sps:$4 sm:$0xff]  }
 0x108   :  { %3732 = vmatprep.subr.bf16.mxu0 %v5431_v22  ;;  %4101 = vmatprep.subr.bf16.mxu1 %v5434_v23  ;;  %v4370_v22 = vcombine.high %v6933_v18, %v6933_v18  ;;  %v5521_v23 = vld [vmem:[%s7739_s1 + $0xa20] ss:$16 sps:$4 sm:$0xff]  }
 0x10b   :  { %3733 = vmatpush1.bf16.msra.mxu0 %v5429_v24  ;;  %4102 = vmatpush1.bf16.msra.mxu1 %v5432_v25  ;;  %v5524_v24 = vld [vmem:[%s7739_s1 + $0xa28] ss:$16 sps:$4 sm:$0xff]   ;;  %v5529_v25 = vld [vmem:[%s7739_s1 + $0xa44] ss:$16 sps:$4 sm:$0xff]  }
 0x10c   :  { %3734 = vmatprep.subr.bf16.mxu0 %v5437_v26  ;;  %4103 = vmatprep.subr.bf16.mxu1 %v5440_v27  ;;  %v5532_v26 = vld [vmem:[%s7739_s1 + $0xa4c] ss:$16 sps:$4 sm:$0xff]   ;;  %v5527_v27 = vld [vmem:[%s7739_s1 + $0xa40] ss:$16 sps:$4 sm:$0xff]  }
 0x10f   :  { %3735 = vmatpush1.bf16.msra.mxu0 %v5435_v28  ;;  %4104 = vmatpush1.bf16.msra.mxu1 %v5438_v29  ;;  %v5530_v28 = vld [vmem:[%s7739_s1 + $0xa48] ss:$16 sps:$4 sm:$0xff]   ;;  %v5535_v29 = vld [vmem:[%s7739_s1 + $0xa64] ss:$16 sps:$4 sm:$0xff]  }
 0x110   :  { %3736 = vmatprep.subr.bf16.mxu0 %v5443_v30  ;;  %4105 = vmatprep.subr.bf16.mxu1 %v5446_v31  ;;  %v5538_v30 = vld [vmem:[%s7739_s1 + $0xa6c] ss:$16 sps:$4 sm:$0xff]   ;;  %v5533_v31 = vld [vmem:[%s7739_s1 + $0xa60] ss:$16 sps:$4 sm:$0xff]  }
 0x113   :  { %3737 = vmatpush1.bf16.msra.mxu0 %v5441_v32  ;;  %4106 = vmatpush1.bf16.msra.mxu1 %v5444_v33  ;;  %v5536_v32 = vld [vmem:[%s7739_s1 + $0xa68] ss:$16 sps:$4 sm:$0xff]   ;;  %v5541_v33 = vld [vmem:[%s7739_s1 + $0xa84] ss:$16 sps:$4 sm:$0xff]  }
 0x114   :  { %3738 = vmatprep.subr.bf16.mxu0 %v5449_v34  ;;  %4107 = vmatprep.subr.bf16.mxu1 %v5452_v35  ;;  %v5544_v34 = vld [vmem:[%s7739_s1 + $0xa8c] ss:$16 sps:$4 sm:$0xff]   ;;  %v5539_v35 = vld [vmem:[%s7739_s1 + $0xa80] ss:$16 sps:$4 sm:$0xff]  }
 0x117   :  { %3739 = vmatpush1.bf16.msra.mxu0 %v5447_v36  ;;  %4108 = vmatpush1.bf16.msra.mxu1 %v5450_v37  ;;  %v5542_v36 = vld [vmem:[%s7739_s1 + $0xa88] ss:$16 sps:$4 sm:$0xff]   ;;  %v5547_v37 = vld [vmem:[%s7739_s1 + $0xaa4] ss:$16 sps:$4 sm:$0xff]  }
 0x118   :  { %3740 = vmatprep.subr.bf16.mxu0 %v5455_v38  ;;  %4109 = vmatprep.subr.bf16.mxu1 %v5458_v39  ;;  %v5550_v38 = vld [vmem:[%s7739_s1 + $0xaac] ss:$16 sps:$4 sm:$0xff]   ;;  %v5545_v39 = vld [vmem:[%s7739_s1 + $0xaa0] ss:$16 sps:$4 sm:$0xff]  }
 0x11b   :  { %3741 = vmatpush1.bf16.msra.mxu0 %v5453_v40  ;;  %4110 = vmatpush1.bf16.msra.mxu1 %v5456_v41  ;;  %v5548_v40 = vld [vmem:[%s7739_s1 + $0xaa8] ss:$16 sps:$4 sm:$0xff]   ;;  %v5553_v41 = vld [vmem:[%s7739_s1 + $0xac4] ss:$16 sps:$4 sm:$0xff]  }
 0x11c   :  { %3742 = vmatprep.subr.bf16.mxu0 %v5461_v42  ;;  %4111 = vmatprep.subr.bf16.mxu1 %v5464_v43  ;;  %v5556_v42 = vld [vmem:[%s7739_s1 + $0xacc] ss:$16 sps:$4 sm:$0xff]   ;;  %v5551_v43 = vld [vmem:[%s7739_s1 + $0xac0] ss:$16 sps:$4 sm:$0xff]  }
 0x11f   :  { %3743 = vmatpush1.bf16.msra.mxu0 %v5459_v44  ;;  %4112 = vmatpush1.bf16.msra.mxu1 %v5462_v45  ;;  %v5554_v44 = vld [vmem:[%s7739_s1 + $0xac8] ss:$16 sps:$4 sm:$0xff]   ;;  %v5559_v45 = vld [vmem:[%s7739_s1 + $0xae4] ss:$16 sps:$4 sm:$0xff]  }
 0x120   :  { %3744 = vmatprep.subr.bf16.mxu0 %v5467_v46  ;;  %4113 = vmatprep.subr.bf16.mxu1 %v5470_v47  ;;  %v5562_v46 = vld [vmem:[%s7739_s1 + $0xaec] ss:$16 sps:$4 sm:$0xff]   ;;  %v5557_v47 = vld [vmem:[%s7739_s1 + $0xae0] ss:$16 sps:$4 sm:$0xff]  }
 0x123   :  { %3745 = vmatpush1.bf16.msra.mxu0 %v5465_v48  ;;  %4114 = vmatpush1.bf16.msra.mxu1 %v5468_v49  ;;  %v5560_v48 = vld [vmem:[%s7739_s1 + $0xae8] ss:$16 sps:$4 sm:$0xff]   ;;  %v5565_v49 = vld [vmem:[%s7739_s1 + $0xb04] ss:$16 sps:$4 sm:$0xff]  }
 0x124   :  { %3746 = vmatprep.subr.bf16.mxu0 %v5473_v50  ;;  %4115 = vmatprep.subr.bf16.mxu1 %v5476_v51  ;;  %v5568_v50 = vld [vmem:[%s7739_s1 + $0xb0c] ss:$16 sps:$4 sm:$0xff]   ;;  %v5563_v51 = vld [vmem:[%s7739_s1 + $0xb00] ss:$16 sps:$4 sm:$0xff]  }
 0x127   :  { %3747 = vmatpush1.bf16.msra.mxu0 %v5471_v52  ;;  %4116 = vmatpush1.bf16.msra.mxu1 %v5474_v53  ;;  %v5566_v52 = vld [vmem:[%s7739_s1 + $0xb08] ss:$16 sps:$4 sm:$0xff]   ;;  %v5571_v53 = vld [vmem:[%s7739_s1 + $0xb24] ss:$16 sps:$4 sm:$0xff]  }
 0x128   :  { %3748 = vmatprep.subr.bf16.mxu0 %v5479_v54  ;;  %4117 = vmatprep.subr.bf16.mxu1 %v5482_v55  ;;  %v5574_v54 = vld [vmem:[%s7739_s1 + $0xb2c] ss:$16 sps:$4 sm:$0xff]   ;;  %v5569_v55 = vld [vmem:[%s7739_s1 + $0xb20] ss:$16 sps:$4 sm:$0xff]  }
 0x12b   :  { %3749 = vmatpush1.bf16.msra.mxu0 %v5477_v56  ;;  %4118 = vmatpush1.bf16.msra.mxu1 %v5480_v57  ;;  %v5572_v56 = vld [vmem:[%s7739_s1 + $0xb28] ss:$16 sps:$4 sm:$0xff]   ;;  %v5577_v57 = vld [vmem:[%s7739_s1 + $0xb44] ss:$16 sps:$4 sm:$0xff]  }
 0x12c   :  { %3750 = vmatprep.subr.bf16.mxu0 %v5485_v58  ;;  %4119 = vmatprep.subr.bf16.mxu1 %v5488_v59  ;;  %v5580_v58 = vld [vmem:[%s7739_s1 + $0xb4c] ss:$16 sps:$4 sm:$0xff]   ;;  %v5575_v59 = vld [vmem:[%s7739_s1 + $0xb40] ss:$16 sps:$4 sm:$0xff]  }
 0x12f   :  { %3751 = vmatpush1.bf16.msra.mxu0 %v5483_v60  ;;  %4120 = vmatpush1.bf16.msra.mxu1 %v5486_v61  ;;  %v5578_v60 = vld [vmem:[%s7739_s1 + $0xb48] ss:$16 sps:$4 sm:$0xff]   ;;  %v5583_v61 = vld [vmem:[%s7739_s1 + $0xb64] ss:$16 sps:$4 sm:$0xff]  }
 0x130   :  { %3752 = vmatprep.subr.bf16.mxu0 %v5491_v62  ;;  %4121 = vmatprep.subr.bf16.mxu1 %v5494_v63  ;;  %v5586_v62 = vld [vmem:[%s7739_s1 + $0xb6c] ss:$16 sps:$4 sm:$0xff]   ;;  %v5581_v63 = vld [vmem:[%s7739_s1 + $0xb60] ss:$16 sps:$4 sm:$0xff]  }
 0x133   :  { %3753 = vmatpush1.bf16.msra.mxu0 %v5489_v0  ;;  %4122 = vmatpush1.bf16.msra.mxu1 %v5492_v1  ;;  %v5584_v0 = vld [vmem:[%s7739_s1 + $0xb68] ss:$16 sps:$4 sm:$0xff]   ;;  %v5589_v1 = vld [vmem:[%s7739_s1 + $0xb84] ss:$16 sps:$4 sm:$0xff]  }
 0x134   :  { %3754 = vmatprep.subr.bf16.mxu0 %v5497_v2  ;;  %4123 = vmatprep.subr.bf16.mxu1 %v5500_v3  ;;  %v5592_v2 = vld [vmem:[%s7739_s1 + $0xb8c] ss:$16 sps:$4 sm:$0xff]   ;;  %v5587_v3 = vld [vmem:[%s7739_s1 + $0xb80] ss:$16 sps:$4 sm:$0xff]  }
 0x137   :  { %3755 = vmatpush1.bf16.msra.mxu0 %v5495_v4  ;;  %4124 = vmatpush1.bf16.msra.mxu1 %v5498_v5  ;;  %v5590_v4 = vld [vmem:[%s7739_s1 + $0xb88] ss:$16 sps:$4 sm:$0xff]   ;;  %v5595_v5 = vld [vmem:[%s7739_s1 + $0xba4] ss:$16 sps:$4 sm:$0xff]  }
 0x138   :  { %3756 = vmatprep.subr.bf16.mxu0 %v5503_v6  ;;  %4125 = vmatprep.subr.bf16.mxu1 %v5506_v7  ;;  %v5598_v6 = vld [vmem:[%s7739_s1 + $0xbac] ss:$16 sps:$4 sm:$0xff]   ;;  %v5593_v7 = vld [vmem:[%s7739_s1 + $0xba0] ss:$16 sps:$4 sm:$0xff]  }
 0x13b   :  { %3757 = vmatpush1.bf16.msra.mxu0 %v5501_v8  ;;  %4126 = vmatpush1.bf16.msra.mxu1 %v5504_v9  ;;  %v5596_v8 = vld [vmem:[%s7739_s1 + $0xba8] ss:$16 sps:$4 sm:$0xff]   ;;  %v5601_v9 = vld [vmem:[%s7739_s1 + $0xbc4] ss:$16 sps:$4 sm:$0xff]  }
 0x13c   :  { %3758 = vmatprep.subr.bf16.mxu0 %v5509_v10  ;;  %4127 = vmatprep.subr.bf16.mxu1 %v5512_v12  ;;  %v5604_v10 = vld [vmem:[%s7739_s1 + $0xbcc] ss:$16 sps:$4 sm:$0xff]   ;;  %v5599_v12 = vld [vmem:[%s7739_s1 + $0xbc0] ss:$16 sps:$4 sm:$0xff]  }
 0x13f   :  { %3759 = vmatpush1.bf16.msra.mxu0 %v5507_v13  ;;  %4128 = vmatpush1.bf16.msra.mxu1 %v5510_v15  ;;  %v5602_v13 = vld [vmem:[%s7739_s1 + $0xbc8] ss:$16 sps:$4 sm:$0xff]   ;;  %v5607_v15 = vld [vmem:[%s7739_s1 + $0xbe4] ss:$16 sps:$4 sm:$0xff]  }
 0x140   :  { %3769 = vmatprep.subr.bf16.mxu0 %v5517_v11  ;;  %4138 = vmatprep.subr.bf16.mxu1 %v5520_v17  ;;  %v5610_v11 = vld [vmem:[%s7739_s1 + $0xbec] ss:$16 sps:$4 sm:$0xff]   ;;  %v5605_v17 = vld [vmem:[%s7739_s1 + $0xbe0] ss:$16 sps:$4 sm:$0xff]  }
 0x142   :  { %3761 = vmatmul.mubr.bf16.vlgmr.msra.gmra.mrb[0].mxu0 %v4367_v14  ;;  %4130 = vmatmul.mubr.bf16.vlgmr.msra.gmra.mrb[0].mxu1 %v4367_v14  ;;  %v5608_v14 = vld [vmem:[%s7739_s1 + $0xbe8] ss:$16 sps:$4 sm:$0xff]  }
 0x143   :  { %3770 = vmatpush1.bf16.msra.mxu0 %v5515_v19  ;;  %4139 = vmatpush1.bf16.msra.mxu1 %v5518_v20  ;;  %v5615_v19 = vld [vmem:[%s7739_s1 + $0xc04] ss:$16 sps:$4 sm:$0xff]   ;;  %v5618_v20 = vld [vmem:[%s7739_s1 + $0xc0c] ss:$16 sps:$4 sm:$0xff]  }
 0x144   :  { %3771 = vmatprep.subr.bf16.mxu0 %v5523_v21  ;;  %4140 = vmatprep.subr.bf16.mxu1 %v5526_v16  ;;  %v4369_v21 = vcombine.low %v6933_v18, %v6933_v18  ;;  %v7136_v16 = vld [vmem:[%s7740_s0 + $0x30] sm:$0xff] }
 0x145   :  { %3801 = vmatprep.mubr.bf16.mxu0 %v4370_v22  ;;  %4170 = vmatprep.mubr.bf16.mxu1 %v4370_v22  ;;  %v5613_v22 = vld [vmem:[%s7739_s1 + $0xc00] ss:$16 sps:$4 sm:$0xff]   ;;  %v5621_v18 = vld [vmem:[%s7739_s1 + $0xc24] ss:$16 sps:$4 sm:$0xff]  }
 0x147   :  { %3772 = vmatpush1.bf16.msra.mxu0 %v5521_v23  ;;  %4141 = vmatpush1.bf16.msra.mxu1 %v5524_v24  ;;  %v5616_v23 = vld [vmem:[%s7739_s1 + $0xc08] ss:$16 sps:$4 sm:$0xff]   ;;  %v5624_v24 = vld [vmem:[%s7739_s1 + $0xc2c] ss:$16 sps:$4 sm:$0xff]  }
 0x148   :  { %3773 = vmatprep.subr.bf16.mxu0 %v5529_v25  ;;  %4142 = vmatprep.subr.bf16.mxu1 %v5532_v26  ;;  %v4372_v25 = vcombine.high %v7136_v16, %v7136_v16  ;;  %v5619_v26 = vld [vmem:[%s7739_s1 + $0xc20] ss:$16 sps:$4 sm:$0xff]  }
 0x14b   :  { %3774 = vmatpush1.bf16.msra.mxu0 %v5527_v27  ;;  %4143 = vmatpush1.bf16.msra.mxu1 %v5530_v28  ;;  %v5622_v27 = vld [vmem:[%s7739_s1 + $0xc28] ss:$16 sps:$4 sm:$0xff]   ;;  %v5627_v28 = vld [vmem:[%s7739_s1 + $0xc44] ss:$16 sps:$4 sm:$0xff]  }
 0x14c   :  { %3775 = vmatprep.subr.bf16.mxu0 %v5535_v29  ;;  %4144 = vmatprep.subr.bf16.mxu1 %v5538_v30  ;;  %v5630_v29 = vld [vmem:[%s7739_s1 + $0xc4c] ss:$16 sps:$4 sm:$0xff]   ;;  %v5625_v30 = vld [vmem:[%s7739_s1 + $0xc40] ss:$16 sps:$4 sm:$0xff]  }
 0x14f   :  { %3776 = vmatpush1.bf16.msra.mxu0 %v5533_v31  ;;  %4145 = vmatpush1.bf16.msra.mxu1 %v5536_v32  ;;  %v5628_v31 = vld [vmem:[%s7739_s1 + $0xc48] ss:$16 sps:$4 sm:$0xff]   ;;  %v5633_v32 = vld [vmem:[%s7739_s1 + $0xc64] ss:$16 sps:$4 sm:$0xff]  }
 0x150   :  { %3777 = vmatprep.subr.bf16.mxu0 %v5541_v33  ;;  %4146 = vmatprep.subr.bf16.mxu1 %v5544_v34  ;;  %v5636_v33 = vld [vmem:[%s7739_s1 + $0xc6c] ss:$16 sps:$4 sm:$0xff]   ;;  %v5631_v34 = vld [vmem:[%s7739_s1 + $0xc60] ss:$16 sps:$4 sm:$0xff]  }
 0x153   :  { %3778 = vmatpush1.bf16.msra.mxu0 %v5539_v35  ;;  %4147 = vmatpush1.bf16.msra.mxu1 %v5542_v36  ;;  %v5634_v35 = vld [vmem:[%s7739_s1 + $0xc68] ss:$16 sps:$4 sm:$0xff]   ;;  %v5639_v36 = vld [vmem:[%s7739_s1 + $0xc84] ss:$16 sps:$4 sm:$0xff]  }
 0x154   :  { %3779 = vmatprep.subr.bf16.mxu0 %v5547_v37  ;;  %4148 = vmatprep.subr.bf16.mxu1 %v5550_v38  ;;  %v5642_v37 = vld [vmem:[%s7739_s1 + $0xc8c] ss:$16 sps:$4 sm:$0xff]   ;;  %v5637_v38 = vld [vmem:[%s7739_s1 + $0xc80] ss:$16 sps:$4 sm:$0xff]  }
 0x157   :  { %3780 = vmatpush1.bf16.msra.mxu0 %v5545_v39  ;;  %4149 = vmatpush1.bf16.msra.mxu1 %v5548_v40  ;;  %v5640_v39 = vld [vmem:[%s7739_s1 + $0xc88] ss:$16 sps:$4 sm:$0xff]   ;;  %v5645_v40 = vld [vmem:[%s7739_s1 + $0xca4] ss:$16 sps:$4 sm:$0xff]  }
 0x158   :  { %3781 = vmatprep.subr.bf16.mxu0 %v5553_v41  ;;  %4150 = vmatprep.subr.bf16.mxu1 %v5556_v42  ;;  %v5648_v41 = vld [vmem:[%s7739_s1 + $0xcac] ss:$16 sps:$4 sm:$0xff]   ;;  %v5643_v42 = vld [vmem:[%s7739_s1 + $0xca0] ss:$16 sps:$4 sm:$0xff]  }
 0x15b   :  { %3782 = vmatpush1.bf16.msra.mxu0 %v5551_v43  ;;  %4151 = vmatpush1.bf16.msra.mxu1 %v5554_v44  ;;  %v5646_v43 = vld [vmem:[%s7739_s1 + $0xca8] ss:$16 sps:$4 sm:$0xff]   ;;  %v5651_v44 = vld [vmem:[%s7739_s1 + $0xcc4] ss:$16 sps:$4 sm:$0xff]  }
 0x15c   :  { %3783 = vmatprep.subr.bf16.mxu0 %v5559_v45  ;;  %4152 = vmatprep.subr.bf16.mxu1 %v5562_v46  ;;  %v5654_v45 = vld [vmem:[%s7739_s1 + $0xccc] ss:$16 sps:$4 sm:$0xff]   ;;  %v5649_v46 = vld [vmem:[%s7739_s1 + $0xcc0] ss:$16 sps:$4 sm:$0xff]  }
 0x15f   :  { %3784 = vmatpush1.bf16.msra.mxu0 %v5557_v47  ;;  %4153 = vmatpush1.bf16.msra.mxu1 %v5560_v48  ;;  %v5652_v47 = vld [vmem:[%s7739_s1 + $0xcc8] ss:$16 sps:$4 sm:$0xff]   ;;  %v5657_v48 = vld [vmem:[%s7739_s1 + $0xce4] ss:$16 sps:$4 sm:$0xff]  }
 0x160   :  { %3785 = vmatprep.subr.bf16.mxu0 %v5565_v49  ;;  %4154 = vmatprep.subr.bf16.mxu1 %v5568_v50  ;;  %v5660_v49 = vld [vmem:[%s7739_s1 + $0xcec] ss:$16 sps:$4 sm:$0xff]   ;;  %v5655_v50 = vld [vmem:[%s7739_s1 + $0xce0] ss:$16 sps:$4 sm:$0xff]  }
 0x163   :  { %3786 = vmatpush1.bf16.msra.mxu0 %v5563_v51  ;;  %4155 = vmatpush1.bf16.msra.mxu1 %v5566_v52  ;;  %v5658_v51 = vld [vmem:[%s7739_s1 + $0xce8] ss:$16 sps:$4 sm:$0xff]   ;;  %v5663_v52 = vld [vmem:[%s7739_s1 + $0xd04] ss:$16 sps:$4 sm:$0xff]  }
 0x164   :  { %3787 = vmatprep.subr.bf16.mxu0 %v5571_v53  ;;  %4156 = vmatprep.subr.bf16.mxu1 %v5574_v54  ;;  %v5666_v53 = vld [vmem:[%s7739_s1 + $0xd0c] ss:$16 sps:$4 sm:$0xff]   ;;  %v5661_v54 = vld [vmem:[%s7739_s1 + $0xd00] ss:$16 sps:$4 sm:$0xff]  }
 0x167   :  { %3788 = vmatpush1.bf16.msra.mxu0 %v5569_v55  ;;  %4157 = vmatpush1.bf16.msra.mxu1 %v5572_v56  ;;  %v5664_v55 = vld [vmem:[%s7739_s1 + $0xd08] ss:$16 sps:$4 sm:$0xff]   ;;  %v5669_v56 = vld [vmem:[%s7739_s1 + $0xd24] ss:$16 sps:$4 sm:$0xff]  }
 0x168   :  { %3789 = vmatprep.subr.bf16.mxu0 %v5577_v57  ;;  %4158 = vmatprep.subr.bf16.mxu1 %v5580_v58  ;;  %v5672_v57 = vld [vmem:[%s7739_s1 + $0xd2c] ss:$16 sps:$4 sm:$0xff]   ;;  %v5667_v58 = vld [vmem:[%s7739_s1 + $0xd20] ss:$16 sps:$4 sm:$0xff]  }
 0x16b   :  { %3790 = vmatpush1.bf16.msra.mxu0 %v5575_v59  ;;  %4159 = vmatpush1.bf16.msra.mxu1 %v5578_v60  ;;  %v5670_v59 = vld [vmem:[%s7739_s1 + $0xd28] ss:$16 sps:$4 sm:$0xff]   ;;  %v5675_v60 = vld [vmem:[%s7739_s1 + $0xd44] ss:$16 sps:$4 sm:$0xff]  }
 0x16c   :  { %3791 = vmatprep.subr.bf16.mxu0 %v5583_v61  ;;  %4160 = vmatprep.subr.bf16.mxu1 %v5586_v62  ;;  %v5678_v61 = vld [vmem:[%s7739_s1 + $0xd4c] ss:$16 sps:$4 sm:$0xff]   ;;  %v5673_v62 = vld [vmem:[%s7739_s1 + $0xd40] ss:$16 sps:$4 sm:$0xff]  }
 0x16f   :  { %3792 = vmatpush1.bf16.msra.mxu0 %v5581_v63  ;;  %4161 = vmatpush1.bf16.msra.mxu1 %v5584_v0  ;;  %v5676_v63 = vld [vmem:[%s7739_s1 + $0xd48] ss:$16 sps:$4 sm:$0xff]   ;;  %v5681_v0 = vld [vmem:[%s7739_s1 + $0xd64] ss:$16 sps:$4 sm:$0xff]  }
 0x170   :  { %3793 = vmatprep.subr.bf16.mxu0 %v5589_v1  ;;  %4162 = vmatprep.subr.bf16.mxu1 %v5592_v2  ;;  %v5684_v1 = vld [vmem:[%s7739_s1 + $0xd6c] ss:$16 sps:$4 sm:$0xff]   ;;  %v5679_v2 = vld [vmem:[%s7739_s1 + $0xd60] ss:$16 sps:$4 sm:$0xff]  }
 0x173   :  { %3794 = vmatpush1.bf16.msra.mxu0 %v5587_v3  ;;  %4163 = vmatpush1.bf16.msra.mxu1 %v5590_v4  ;;  %v5682_v3 = vld [vmem:[%s7739_s1 + $0xd68] ss:$16 sps:$4 sm:$0xff]   ;;  %v5687_v4 = vld [vmem:[%s7739_s1 + $0xd84] ss:$16 sps:$4 sm:$0xff]  }
 0x174   :  { %3795 = vmatprep.subr.bf16.mxu0 %v5595_v5  ;;  %4164 = vmatprep.subr.bf16.mxu1 %v5598_v6  ;;  %v5690_v5 = vld [vmem:[%s7739_s1 + $0xd8c] ss:$16 sps:$4 sm:$0xff]   ;;  %v5685_v6 = vld [vmem:[%s7739_s1 + $0xd80] ss:$16 sps:$4 sm:$0xff]  }
 0x177   :  { %3796 = vmatpush1.bf16.msra.mxu0 %v5593_v7  ;;  %4165 = vmatpush1.bf16.msra.mxu1 %v5596_v8  ;;  %v5688_v7 = vld [vmem:[%s7739_s1 + $0xd88] ss:$16 sps:$4 sm:$0xff]   ;;  %v5693_v8 = vld [vmem:[%s7739_s1 + $0xda4] ss:$16 sps:$4 sm:$0xff]  }
 0x178   :  { %3797 = vmatprep.subr.bf16.mxu0 %v5601_v9  ;;  %4166 = vmatprep.subr.bf16.mxu1 %v5604_v10  ;;  %v5696_v9 = vld [vmem:[%s7739_s1 + $0xdac] ss:$16 sps:$4 sm:$0xff]   ;;  %v5691_v10 = vld [vmem:[%s7739_s1 + $0xda0] ss:$16 sps:$4 sm:$0xff]  }
 0x17b   :  { %3798 = vmatpush1.bf16.msra.mxu0 %v5599_v12  ;;  %4167 = vmatpush1.bf16.msra.mxu1 %v5602_v13  ;;  %v5694_v12 = vld [vmem:[%s7739_s1 + $0xda8] ss:$16 sps:$4 sm:$0xff]   ;;  %v5699_v13 = vld [vmem:[%s7739_s1 + $0xdc4] ss:$16 sps:$4 sm:$0xff]  }
 0x17c   :  { %3799 = vmatprep.subr.bf16.mxu0 %v5607_v15  ;;  %4168 = vmatprep.subr.bf16.mxu1 %v5610_v11  ;;  %v5702_v15 = vld [vmem:[%s7739_s1 + $0xdcc] ss:$16 sps:$4 sm:$0xff]   ;;  %v5697_v11 = vld [vmem:[%s7739_s1 + $0xdc0] ss:$16 sps:$4 sm:$0xff]  }
 0x17f   :  { %3800 = vmatpush1.bf16.msra.mxu0 %v5605_v17  ;;  %4169 = vmatpush1.bf16.msra.mxu1 %v5608_v14  ;;  %v5700_v17 = vld [vmem:[%s7739_s1 + $0xdc8] ss:$16 sps:$4 sm:$0xff]   ;;  %v5705_v14 = vld [vmem:[%s7739_s1 + $0xde4] ss:$16 sps:$4 sm:$0xff]  }
 0x180   :  { %3810 = vmatprep.subr.bf16.mxu0 %v5615_v19  ;;  %4179 = vmatprep.subr.bf16.mxu1 %v5618_v20  ;;  %v5708_v19 = vld [vmem:[%s7739_s1 + $0xdec] ss:$16 sps:$4 sm:$0xff]   ;;  %v5703_v20 = vld [vmem:[%s7739_s1 + $0xde0] ss:$16 sps:$4 sm:$0xff]  }
 0x182   :  { %3802 = vmatmul.mubr.bf16.vlgmr.msra.gmra.mrb[0].mxu0 %v4369_v21  ;;  %4171 = vmatmul.mubr.bf16.vlgmr.msra.gmra.mrb[0].mxu1 %v4369_v21  ;;  %v5706_v21 = vld [vmem:[%s7739_s1 + $0xde8] ss:$16 sps:$4 sm:$0xff]  }
 0x183   :  { %3811 = vmatpush1.bf16.msra.mxu0 %v5613_v22  ;;  %4180 = vmatpush1.bf16.msra.mxu1 %v5616_v23  ;;  %v5713_v22 = vld [vmem:[%s7739_s1 + $0xe04] ss:$16 sps:$4 sm:$0xff]   ;;  %v5716_v23 = vld [vmem:[%s7739_s1 + $0xe0c] ss:$16 sps:$4 sm:$0xff]  }
 0x184   :  { %3812 = vmatprep.subr.bf16.mxu0 %v5621_v18  ;;  %4181 = vmatprep.subr.bf16.mxu1 %v5624_v24  ;;  %v4371_v18 = vcombine.low %v7136_v16, %v7136_v16  ;;  %v7337_v24 = vld [vmem:[%s7740_s0 + $0x38] sm:$0xff]  ;;  %v5719_v16 = vld [vmem:[%s7739_s1 + $0xe24] ss:$16 sps:$4 sm:$0xff]  }
 0x185   :  { %3842 = vmatprep.mubr.bf16.mxu0 %v4372_v25  ;;  %4211 = vmatprep.mubr.bf16.mxu1 %v4372_v25  ;;  %v5711_v25 = vld [vmem:[%s7739_s1 + $0xe00] ss:$16 sps:$4 sm:$0xff]  }
 0x187   :  { %3813 = vmatpush1.bf16.msra.mxu0 %v5619_v26  ;;  %4182 = vmatpush1.bf16.msra.mxu1 %v5622_v27  ;;  %v5714_v26 = vld [vmem:[%s7739_s1 + $0xe08] ss:$16 sps:$4 sm:$0xff]   ;;  %v5722_v27 = vld [vmem:[%s7739_s1 + $0xe2c] ss:$16 sps:$4 sm:$0xff]  }
 0x188   :  { %3814 = vmatprep.subr.bf16.mxu0 %v5627_v28  ;;  %4183 = vmatprep.subr.bf16.mxu1 %v5630_v29  ;;  %v4374_v28 = vcombine.high %v7337_v24, %v7337_v24  ;;  %v5717_v29 = vld [vmem:[%s7739_s1 + $0xe20] ss:$16 sps:$4 sm:$0xff]  }
 0x18b   :  { %3815 = vmatpush1.bf16.msra.mxu0 %v5625_v30  ;;  %4184 = vmatpush1.bf16.msra.mxu1 %v5628_v31  ;;  %v5720_v30 = vld [vmem:[%s7739_s1 + $0xe28] ss:$16 sps:$4 sm:$0xff]   ;;  %v5725_v31 = vld [vmem:[%s7739_s1 + $0xe44] ss:$16 sps:$4 sm:$0xff]  }
 0x18c   :  { %3816 = vmatprep.subr.bf16.mxu0 %v5633_v32  ;;  %4185 = vmatprep.subr.bf16.mxu1 %v5636_v33  ;;  %v5728_v32 = vld [vmem:[%s7739_s1 + $0xe4c] ss:$16 sps:$4 sm:$0xff]   ;;  %v5723_v33 = vld [vmem:[%s7739_s1 + $0xe40] ss:$16 sps:$4 sm:$0xff]  }
 0x18f   :  { %3817 = vmatpush1.bf16.msra.mxu0 %v5631_v34  ;;  %4186 = vmatpush1.bf16.msra.mxu1 %v5634_v35  ;;  %v5726_v34 = vld [vmem:[%s7739_s1 + $0xe48] ss:$16 sps:$4 sm:$0xff]   ;;  %v5731_v35 = vld [vmem:[%s7739_s1 + $0xe64] ss:$16 sps:$4 sm:$0xff]  }
 0x190   :  { %3818 = vmatprep.subr.bf16.mxu0 %v5639_v36  ;;  %4187 = vmatprep.subr.bf16.mxu1 %v5642_v37  ;;  %v5734_v36 = vld [vmem:[%s7739_s1 + $0xe6c] ss:$16 sps:$4 sm:$0xff]   ;;  %v5729_v37 = vld [vmem:[%s7739_s1 + $0xe60] ss:$16 sps:$4 sm:$0xff]  }
 0x193   :  { %3819 = vmatpush1.bf16.msra.mxu0 %v5637_v38  ;;  %4188 = vmatpush1.bf16.msra.mxu1 %v5640_v39  ;;  %v5732_v38 = vld [vmem:[%s7739_s1 + $0xe68] ss:$16 sps:$4 sm:$0xff]   ;;  %v5737_v39 = vld [vmem:[%s7739_s1 + $0xe84] ss:$16 sps:$4 sm:$0xff]  }
 0x194   :  { %3820 = vmatprep.subr.bf16.mxu0 %v5645_v40  ;;  %4189 = vmatprep.subr.bf16.mxu1 %v5648_v41  ;;  %v5740_v40 = vld [vmem:[%s7739_s1 + $0xe8c] ss:$16 sps:$4 sm:$0xff]   ;;  %v5735_v41 = vld [vmem:[%s7739_s1 + $0xe80] ss:$16 sps:$4 sm:$0xff]  }
 0x197   :  { %3821 = vmatpush1.bf16.msra.mxu0 %v5643_v42  ;;  %4190 = vmatpush1.bf16.msra.mxu1 %v5646_v43  ;;  %v5738_v42 = vld [vmem:[%s7739_s1 + $0xe88] ss:$16 sps:$4 sm:$0xff]   ;;  %v5743_v43 = vld [vmem:[%s7739_s1 + $0xea4] ss:$16 sps:$4 sm:$0xff]  }
 0x198   :  { %3822 = vmatprep.subr.bf16.mxu0 %v5651_v44  ;;  %4191 = vmatprep.subr.bf16.mxu1 %v5654_v45  ;;  %v5746_v44 = vld [vmem:[%s7739_s1 + $0xeac] ss:$16 sps:$4 sm:$0xff]   ;;  %v5741_v45 = vld [vmem:[%s7739_s1 + $0xea0] ss:$16 sps:$4 sm:$0xff]  }
 0x19b   :  { %3823 = vmatpush1.bf16.msra.mxu0 %v5649_v46  ;;  %4192 = vmatpush1.bf16.msra.mxu1 %v5652_v47  ;;  %v5744_v46 = vld [vmem:[%s7739_s1 + $0xea8] ss:$16 sps:$4 sm:$0xff]   ;;  %v5749_v47 = vld [vmem:[%s7739_s1 + $0xec4] ss:$16 sps:$4 sm:$0xff]  }
 0x19c   :  { %3824 = vmatprep.subr.bf16.mxu0 %v5657_v48  ;;  %4193 = vmatprep.subr.bf16.mxu1 %v5660_v49  ;;  %v5752_v48 = vld [vmem:[%s7739_s1 + $0xecc] ss:$16 sps:$4 sm:$0xff]   ;;  %v5747_v49 = vld [vmem:[%s7739_s1 + $0xec0] ss:$16 sps:$4 sm:$0xff]  }
 0x19f   :  { %3825 = vmatpush1.bf16.msra.mxu0 %v5655_v50  ;;  %4194 = vmatpush1.bf16.msra.mxu1 %v5658_v51  ;;  %v5750_v50 = vld [vmem:[%s7739_s1 + $0xec8] ss:$16 sps:$4 sm:$0xff]   ;;  %v5755_v51 = vld [vmem:[%s7739_s1 + $0xee4] ss:$16 sps:$4 sm:$0xff]  }
 0x1a0   :  { %3826 = vmatprep.subr.bf16.mxu0 %v5663_v52  ;;  %4195 = vmatprep.subr.bf16.mxu1 %v5666_v53  ;;  %v5758_v52 = vld [vmem:[%s7739_s1 + $0xeec] ss:$16 sps:$4 sm:$0xff]   ;;  %v5753_v53 = vld [vmem:[%s7739_s1 + $0xee0] ss:$16 sps:$4 sm:$0xff]  }
 0x1a3   :  { %3827 = vmatpush1.bf16.msra.mxu0 %v5661_v54  ;;  %4196 = vmatpush1.bf16.msra.mxu1 %v5664_v55  ;;  %v5756_v54 = vld [vmem:[%s7739_s1 + $0xee8] ss:$16 sps:$4 sm:$0xff]   ;;  %v5761_v55 = vld [vmem:[%s7739_s1 + $0xf04] ss:$16 sps:$4 sm:$0xff]  }
 0x1a4   :  { %3828 = vmatprep.subr.bf16.mxu0 %v5669_v56  ;;  %4197 = vmatprep.subr.bf16.mxu1 %v5672_v57  ;;  %v5764_v56 = vld [vmem:[%s7739_s1 + $0xf0c] ss:$16 sps:$4 sm:$0xff]   ;;  %v5759_v57 = vld [vmem:[%s7739_s1 + $0xf00] ss:$16 sps:$4 sm:$0xff]  }
 0x1a7   :  { %3829 = vmatpush1.bf16.msra.mxu0 %v5667_v58  ;;  %4198 = vmatpush1.bf16.msra.mxu1 %v5670_v59  ;;  %v5762_v58 = vld [vmem:[%s7739_s1 + $0xf08] ss:$16 sps:$4 sm:$0xff]   ;;  %v5767_v59 = vld [vmem:[%s7739_s1 + $0xf24] ss:$16 sps:$4 sm:$0xff]  }
 0x1a8   :  { %3830 = vmatprep.subr.bf16.mxu0 %v5675_v60  ;;  %4199 = vmatprep.subr.bf16.mxu1 %v5678_v61  ;;  %v5770_v60 = vld [vmem:[%s7739_s1 + $0xf2c] ss:$16 sps:$4 sm:$0xff]   ;;  %v5765_v61 = vld [vmem:[%s7739_s1 + $0xf20] ss:$16 sps:$4 sm:$0xff]  }
 0x1ab   :  { %3831 = vmatpush1.bf16.msra.mxu0 %v5673_v62  ;;  %4200 = vmatpush1.bf16.msra.mxu1 %v5676_v63  ;;  %v5768_v62 = vld [vmem:[%s7739_s1 + $0xf28] ss:$16 sps:$4 sm:$0xff]   ;;  %v5773_v63 = vld [vmem:[%s7739_s1 + $0xf44] ss:$16 sps:$4 sm:$0xff]  }
 0x1ac   :  { %3832 = vmatprep.subr.bf16.mxu0 %v5681_v0  ;;  %4201 = vmatprep.subr.bf16.mxu1 %v5684_v1  ;;  %v5776_v0 = vld [vmem:[%s7739_s1 + $0xf4c] ss:$16 sps:$4 sm:$0xff]   ;;  %v5771_v1 = vld [vmem:[%s7739_s1 + $0xf40] ss:$16 sps:$4 sm:$0xff]  }
 0x1af   :  { %3833 = vmatpush1.bf16.msra.mxu0 %v5679_v2  ;;  %4202 = vmatpush1.bf16.msra.mxu1 %v5682_v3  ;;  %v5774_v2 = vld [vmem:[%s7739_s1 + $0xf48] ss:$16 sps:$4 sm:$0xff]   ;;  %v5779_v3 = vld [vmem:[%s7739_s1 + $0xf64] ss:$16 sps:$4 sm:$0xff]  }
 0x1b0   :  { %3834 = vmatprep.subr.bf16.mxu0 %v5687_v4  ;;  %4203 = vmatprep.subr.bf16.mxu1 %v5690_v5  ;;  %v5782_v4 = vld [vmem:[%s7739_s1 + $0xf6c] ss:$16 sps:$4 sm:$0xff]   ;;  %v5777_v5 = vld [vmem:[%s7739_s1 + $0xf60] ss:$16 sps:$4 sm:$0xff]  }
 0x1b3   :  { %3835 = vmatpush1.bf16.msra.mxu0 %v5685_v6  ;;  %4204 = vmatpush1.bf16.msra.mxu1 %v5688_v7  ;;  %v5780_v6 = vld [vmem:[%s7739_s1 + $0xf68] ss:$16 sps:$4 sm:$0xff]   ;;  %v5785_v7 = vld [vmem:[%s7739_s1 + $0xf84] ss:$16 sps:$4 sm:$0xff]  }
 0x1b4   :  { %3836 = vmatprep.subr.bf16.mxu0 %v5693_v8  ;;  %4205 = vmatprep.subr.bf16.mxu1 %v5696_v9  ;;  %v5788_v8 = vld [vmem:[%s7739_s1 + $0xf8c] ss:$16 sps:$4 sm:$0xff]   ;;  %v5783_v9 = vld [vmem:[%s7739_s1 + $0xf80] ss:$16 sps:$4 sm:$0xff]  }
 0x1b7   :  { %3837 = vmatpush1.bf16.msra.mxu0 %v5691_v10  ;;  %4206 = vmatpush1.bf16.msra.mxu1 %v5694_v12  ;;  %v5786_v10 = vld [vmem:[%s7739_s1 + $0xf88] ss:$16 sps:$4 sm:$0xff]   ;;  %v5791_v12 = vld [vmem:[%s7739_s1 + $0xfa4] ss:$16 sps:$4 sm:$0xff]  }
 0x1b8   :  { %3838 = vmatprep.subr.bf16.mxu0 %v5699_v13  ;;  %4207 = vmatprep.subr.bf16.mxu1 %v5702_v15  ;;  %v5794_v13 = vld [vmem:[%s7739_s1 + $0xfac] ss:$16 sps:$4 sm:$0xff]   ;;  %v5789_v15 = vld [vmem:[%s7739_s1 + $0xfa0] ss:$16 sps:$4 sm:$0xff]  }
 0x1bb   :  { %3839 = vmatpush1.bf16.msra.mxu0 %v5697_v11  ;;  %4208 = vmatpush1.bf16.msra.mxu1 %v5700_v17  ;;  %v5792_v11 = vld [vmem:[%s7739_s1 + $0xfa8] ss:$16 sps:$4 sm:$0xff]   ;;  %v5797_v17 = vld [vmem:[%s7739_s1 + $0xfc4] ss:$16 sps:$4 sm:$0xff]  }
 0x1bc   :  { %3840 = vmatprep.subr.bf16.mxu0 %v5705_v14  ;;  %4209 = vmatprep.subr.bf16.mxu1 %v5708_v19  ;;  %v5800_v14 = vld [vmem:[%s7739_s1 + $0xfcc] ss:$16 sps:$4 sm:$0xff]   ;;  %v5795_v19 = vld [vmem:[%s7739_s1 + $0xfc0] ss:$16 sps:$4 sm:$0xff]  }
 0x1bf   :  { %3841 = vmatpush1.bf16.msra.mxu0 %v5703_v20  ;;  %4210 = vmatpush1.bf16.msra.mxu1 %v5706_v21  ;;  %v5798_v20 = vld [vmem:[%s7739_s1 + $0xfc8] ss:$16 sps:$4 sm:$0xff]   ;;  %v5803_v21 = vld [vmem:[%s7739_s1 + $0xfe4] ss:$16 sps:$4 sm:$0xff]  }
 0x1c0   :  { %3851 = vmatprep.subr.bf16.mxu0 %v5713_v22  ;;  %4220 = vmatprep.subr.bf16.mxu1 %v5716_v23  ;;  %v5806_v22 = vld [vmem:[%s7739_s1 + $0xfec] ss:$16 sps:$4 sm:$0xff]   ;;  %v5801_v23 = vld [vmem:[%s7739_s1 + $0xfe0] ss:$16 sps:$4 sm:$0xff]  }
 0x1c2   :  { %3843 = vmatmul.mubr.bf16.vlgmr.msra.gmra.mrb[0].mxu0 %v4371_v18  ;;  %4212 = vmatmul.mubr.bf16.vlgmr.msra.gmra.mrb[0].mxu1 %v4371_v18  ;;  %v5804_v18 = vld [vmem:[%s7739_s1 + $0xfe8] ss:$16 sps:$4 sm:$0xff]  }
 0x1c3   :  { %3852 = vmatpush1.bf16.msra.mxu0 %v5711_v25  ;;  %4221 = vmatpush1.bf16.msra.mxu1 %v5714_v26  ;;  %v5811_v25 = vld [vmem:[%s7739_s1 + $0x1004] ss:$16 sps:$4 sm:$0xff]   ;;  %v5814_v26 = vld [vmem:[%s7739_s1 + $0x100c] ss:$16 sps:$4 sm:$0xff]  }
 0x1c4   :  { %3853 = vmatprep.subr.bf16.mxu0 %v5719_v16  ;;  %4222 = vmatprep.subr.bf16.mxu1 %v5722_v27  ;;  %v4373_v16 = vcombine.low %v7337_v24, %v7337_v24  ;;  %v7538_v27 = vld [vmem:[%s7740_s0 + $0x40] sm:$0xff] }
 0x1c5   :  { %3883 = vmatprep.mubr.bf16.mxu0 %v4374_v28  ;;  %4252 = vmatprep.mubr.bf16.mxu1 %v4374_v28  ;;  %v5809_v28 = vld [vmem:[%s7739_s1 + $0x1000] ss:$16 sps:$4 sm:$0xff]   ;;  %v5817_v24 = vld [vmem:[%s7739_s1 + $0x1024] ss:$16 sps:$4 sm:$0xff]  }
 0x1c7   :  { %3854 = vmatpush1.bf16.msra.mxu0 %v5717_v29  ;;  %4223 = vmatpush1.bf16.msra.mxu1 %v5720_v30  ;;  %v5812_v29 = vld [vmem:[%s7739_s1 + $0x1008] ss:$16 sps:$4 sm:$0xff]   ;;  %v5820_v30 = vld [vmem:[%s7739_s1 + $0x102c] ss:$16 sps:$4 sm:$0xff]  }
 0x1c8   :  { %3855 = vmatprep.subr.bf16.mxu0 %v5725_v31  ;;  %4224 = vmatprep.subr.bf16.mxu1 %v5728_v32  ;;  %v4376_v31 = vcombine.high %v7538_v27, %v7538_v27  ;;  %v5815_v32 = vld [vmem:[%s7739_s1 + $0x1020] ss:$16 sps:$4 sm:$0xff]  }
 0x1cb   :  { %3856 = vmatpush1.bf16.msra.mxu0 %v5723_v33  ;;  %4225 = vmatpush1.bf16.msra.mxu1 %v5726_v34  ;;  %v5818_v33 = vld [vmem:[%s7739_s1 + $0x1028] ss:$16 sps:$4 sm:$0xff]   ;;  %v5823_v34 = vld [vmem:[%s7739_s1 + $0x1044] ss:$16 sps:$4 sm:$0xff]  }
 0x1cc   :  { %3857 = vmatprep.subr.bf16.mxu0 %v5731_v35  ;;  %4226 = vmatprep.subr.bf16.mxu1 %v5734_v36  ;;  %v5826_v35 = vld [vmem:[%s7739_s1 + $0x104c] ss:$16 sps:$4 sm:$0xff]   ;;  %v5821_v36 = vld [vmem:[%s7739_s1 + $0x1040] ss:$16 sps:$4 sm:$0xff]  }
 0x1cf   :  { %3858 = vmatpush1.bf16.msra.mxu0 %v5729_v37  ;;  %4227 = vmatpush1.bf16.msra.mxu1 %v5732_v38  ;;  %v5824_v37 = vld [vmem:[%s7739_s1 + $0x1048] ss:$16 sps:$4 sm:$0xff]   ;;  %v5829_v38 = vld [vmem:[%s7739_s1 + $0x1064] ss:$16 sps:$4 sm:$0xff]  }
 0x1d0   :  { %3859 = vmatprep.subr.bf16.mxu0 %v5737_v39  ;;  %4228 = vmatprep.subr.bf16.mxu1 %v5740_v40  ;;  %v5832_v39 = vld [vmem:[%s7739_s1 + $0x106c] ss:$16 sps:$4 sm:$0xff]   ;;  %v5827_v40 = vld [vmem:[%s7739_s1 + $0x1060] ss:$16 sps:$4 sm:$0xff]  }
 0x1d3   :  { %3860 = vmatpush1.bf16.msra.mxu0 %v5735_v41  ;;  %4229 = vmatpush1.bf16.msra.mxu1 %v5738_v42  ;;  %v5830_v41 = vld [vmem:[%s7739_s1 + $0x1068] ss:$16 sps:$4 sm:$0xff]   ;;  %v5835_v42 = vld [vmem:[%s7739_s1 + $0x1084] ss:$16 sps:$4 sm:$0xff]  }
 0x1d4   :  { %3861 = vmatprep.subr.bf16.mxu0 %v5743_v43  ;;  %4230 = vmatprep.subr.bf16.mxu1 %v5746_v44  ;;  %v5838_v43 = vld [vmem:[%s7739_s1 + $0x108c] ss:$16 sps:$4 sm:$0xff]   ;;  %v5833_v44 = vld [vmem:[%s7739_s1 + $0x1080] ss:$16 sps:$4 sm:$0xff]  }
 0x1d7   :  { %3862 = vmatpush1.bf16.msra.mxu0 %v5741_v45  ;;  %4231 = vmatpush1.bf16.msra.mxu1 %v5744_v46  ;;  %v5836_v45 = vld [vmem:[%s7739_s1 + $0x1088] ss:$16 sps:$4 sm:$0xff]   ;;  %v5841_v46 = vld [vmem:[%s7739_s1 + $0x10a4] ss:$16 sps:$4 sm:$0xff]  }
 0x1d8   :  { %3863 = vmatprep.subr.bf16.mxu0 %v5749_v47  ;;  %4232 = vmatprep.subr.bf16.mxu1 %v5752_v48  ;;  %v5844_v47 = vld [vmem:[%s7739_s1 + $0x10ac] ss:$16 sps:$4 sm:$0xff]   ;;  %v5839_v48 = vld [vmem:[%s7739_s1 + $0x10a0] ss:$16 sps:$4 sm:$0xff]  }
 0x1db   :  { %3864 = vmatpush1.bf16.msra.mxu0 %v5747_v49  ;;  %4233 = vmatpush1.bf16.msra.mxu1 %v5750_v50  ;;  %v5842_v49 = vld [vmem:[%s7739_s1 + $0x10a8] ss:$16 sps:$4 sm:$0xff]   ;;  %v5847_v50 = vld [vmem:[%s7739_s1 + $0x10c4] ss:$16 sps:$4 sm:$0xff]  }
 0x1dc   :  { %3865 = vmatprep.subr.bf16.mxu0 %v5755_v51  ;;  %4234 = vmatprep.subr.bf16.mxu1 %v5758_v52  ;;  %v5850_v51 = vld [vmem:[%s7739_s1 + $0x10cc] ss:$16 sps:$4 sm:$0xff]   ;;  %v5845_v52 = vld [vmem:[%s7739_s1 + $0x10c0] ss:$16 sps:$4 sm:$0xff]  }
 0x1df   :  { %3866 = vmatpush1.bf16.msra.mxu0 %v5753_v53  ;;  %4235 = vmatpush1.bf16.msra.mxu1 %v5756_v54  ;;  %v5848_v53 = vld [vmem:[%s7739_s1 + $0x10c8] ss:$16 sps:$4 sm:$0xff]   ;;  %v5853_v54 = vld [vmem:[%s7739_s1 + $0x10e4] ss:$16 sps:$4 sm:$0xff]  }
 0x1e0   :  { %3867 = vmatprep.subr.bf16.mxu0 %v5761_v55  ;;  %4236 = vmatprep.subr.bf16.mxu1 %v5764_v56  ;;  %v5856_v55 = vld [vmem:[%s7739_s1 + $0x10ec] ss:$16 sps:$4 sm:$0xff]   ;;  %v5851_v56 = vld [vmem:[%s7739_s1 + $0x10e0] ss:$16 sps:$4 sm:$0xff]  }
 0x1e3   :  { %3868 = vmatpush1.bf16.msra.mxu0 %v5759_v57  ;;  %4237 = vmatpush1.bf16.msra.mxu1 %v5762_v58  ;;  %v5854_v57 = vld [vmem:[%s7739_s1 + $0x10e8] ss:$16 sps:$4 sm:$0xff]   ;;  %v5859_v58 = vld [vmem:[%s7739_s1 + $0x1104] ss:$16 sps:$4 sm:$0xff]  }
 0x1e4   :  { %3869 = vmatprep.subr.bf16.mxu0 %v5767_v59  ;;  %4238 = vmatprep.subr.bf16.mxu1 %v5770_v60  ;;  %v5862_v59 = vld [vmem:[%s7739_s1 + $0x110c] ss:$16 sps:$4 sm:$0xff]   ;;  %v5857_v60 = vld [vmem:[%s7739_s1 + $0x1100] ss:$16 sps:$4 sm:$0xff]  }
 0x1e7   :  { %3870 = vmatpush1.bf16.msra.mxu0 %v5765_v61  ;;  %4239 = vmatpush1.bf16.msra.mxu1 %v5768_v62  ;;  %v5860_v61 = vld [vmem:[%s7739_s1 + $0x1108] ss:$16 sps:$4 sm:$0xff]   ;;  %v5865_v62 = vld [vmem:[%s7739_s1 + $0x1124] ss:$16 sps:$4 sm:$0xff]  }
 0x1e8   :  { %3871 = vmatprep.subr.bf16.mxu0 %v5773_v63  ;;  %4240 = vmatprep.subr.bf16.mxu1 %v5776_v0  ;;  %v5868_v63 = vld [vmem:[%s7739_s1 + $0x112c] ss:$16 sps:$4 sm:$0xff]   ;;  %v5863_v0 = vld [vmem:[%s7739_s1 + $0x1120] ss:$16 sps:$4 sm:$0xff]  }
 0x1eb   :  { %3872 = vmatpush1.bf16.msra.mxu0 %v5771_v1  ;;  %4241 = vmatpush1.bf16.msra.mxu1 %v5774_v2  ;;  %v5866_v1 = vld [vmem:[%s7739_s1 + $0x1128] ss:$16 sps:$4 sm:$0xff]   ;;  %v5871_v2 = vld [vmem:[%s7739_s1 + $0x1144] ss:$16 sps:$4 sm:$0xff]  }
 0x1ec   :  { %3873 = vmatprep.subr.bf16.mxu0 %v5779_v3  ;;  %4242 = vmatprep.subr.bf16.mxu1 %v5782_v4  ;;  %v5874_v3 = vld [vmem:[%s7739_s1 + $0x114c] ss:$16 sps:$4 sm:$0xff]   ;;  %v5869_v4 = vld [vmem:[%s7739_s1 + $0x1140] ss:$16 sps:$4 sm:$0xff]  }
 0x1ef   :  { %3874 = vmatpush1.bf16.msra.mxu0 %v5777_v5  ;;  %4243 = vmatpush1.bf16.msra.mxu1 %v5780_v6  ;;  %v5872_v5 = vld [vmem:[%s7739_s1 + $0x1148] ss:$16 sps:$4 sm:$0xff]   ;;  %v5877_v6 = vld [vmem:[%s7739_s1 + $0x1164] ss:$16 sps:$4 sm:$0xff]  }
 0x1f0   :  { %3875 = vmatprep.subr.bf16.mxu0 %v5785_v7  ;;  %4244 = vmatprep.subr.bf16.mxu1 %v5788_v8  ;;  %v5880_v7 = vld [vmem:[%s7739_s1 + $0x116c] ss:$16 sps:$4 sm:$0xff]   ;;  %v5875_v8 = vld [vmem:[%s7739_s1 + $0x1160] ss:$16 sps:$4 sm:$0xff]  }
 0x1f3   :  { %3876 = vmatpush1.bf16.msra.mxu0 %v5783_v9  ;;  %4245 = vmatpush1.bf16.msra.mxu1 %v5786_v10  ;;  %v5878_v9 = vld [vmem:[%s7739_s1 + $0x1168] ss:$16 sps:$4 sm:$0xff]   ;;  %v5883_v10 = vld [vmem:[%s7739_s1 + $0x1184] ss:$16 sps:$4 sm:$0xff]  }
 0x1f4   :  { %3877 = vmatprep.subr.bf16.mxu0 %v5791_v12  ;;  %4246 = vmatprep.subr.bf16.mxu1 %v5794_v13  ;;  %v5886_v12 = vld [vmem:[%s7739_s1 + $0x118c] ss:$16 sps:$4 sm:$0xff]   ;;  %v5881_v13 = vld [vmem:[%s7739_s1 + $0x1180] ss:$16 sps:$4 sm:$0xff]  }
 0x1f7   :  { %3878 = vmatpush1.bf16.msra.mxu0 %v5789_v15  ;;  %4247 = vmatpush1.bf16.msra.mxu1 %v5792_v11  ;;  %v5884_v15 = vld [vmem:[%s7739_s1 + $0x1188] ss:$16 sps:$4 sm:$0xff]   ;;  %v5889_v11 = vld [vmem:[%s7739_s1 + $0x11a4] ss:$16 sps:$4 sm:$0xff]  }
 0x1f8   :  { %3879 = vmatprep.subr.bf16.mxu0 %v5797_v17  ;;  %4248 = vmatprep.subr.bf16.mxu1 %v5800_v14  ;;  %v5892_v17 = vld [vmem:[%s7739_s1 + $0x11ac] ss:$16 sps:$4 sm:$0xff]   ;;  %v5887_v14 = vld [vmem:[%s7739_s1 + $0x11a0] ss:$16 sps:$4 sm:$0xff]  }
 0x1fb   :  { %3880 = vmatpush1.bf16.msra.mxu0 %v5795_v19  ;;  %4249 = vmatpush1.bf16.msra.mxu1 %v5798_v20  ;;  %v5890_v19 = vld [vmem:[%s7739_s1 + $0x11a8] ss:$16 sps:$4 sm:$0xff]   ;;  %v5895_v20 = vld [vmem:[%s7739_s1 + $0x11c4] ss:$16 sps:$4 sm:$0xff]  }
 0x1fc   :  { %3881 = vmatprep.subr.bf16.mxu0 %v5803_v21  ;;  %4250 = vmatprep.subr.bf16.mxu1 %v5806_v22  ;;  %v5898_v21 = vld [vmem:[%s7739_s1 + $0x11cc] ss:$16 sps:$4 sm:$0xff]   ;;  %v5893_v22 = vld [vmem:[%s7739_s1 + $0x11c0] ss:$16 sps:$4 sm:$0xff]  }
 0x1ff   :  { %3882 = vmatpush1.bf16.msra.mxu0 %v5801_v23  ;;  %4251 = vmatpush1.bf16.msra.mxu1 %v5804_v18  ;;  %v5896_v23 = vld [vmem:[%s7739_s1 + $0x11c8] ss:$16 sps:$4 sm:$0xff]   ;;  %v5901_v18 = vld [vmem:[%s7739_s1 + $0x11e4] ss:$16 sps:$4 sm:$0xff]  }
 0x200   :  { %3892 = vmatprep.subr.bf16.mxu0 %v5811_v25  ;;  %4261 = vmatprep.subr.bf16.mxu1 %v5814_v26  ;;  %v5904_v25 = vld [vmem:[%s7739_s1 + $0x11ec] ss:$16 sps:$4 sm:$0xff]   ;;  %v5899_v26 = vld [vmem:[%s7739_s1 + $0x11e0] ss:$16 sps:$4 sm:$0xff]  }
 0x202   :  { %3884 = vmatmul.mubr.bf16.vlgmr.msra.gmra.mrb[0].mxu0 %v4373_v16  ;;  %4253 = vmatmul.mubr.bf16.vlgmr.msra.gmra.mrb[0].mxu1 %v4373_v16  ;;  %v5902_v16 = vld [vmem:[%s7739_s1 + $0x11e8] ss:$16 sps:$4 sm:$0xff]  }
 0x203   :  { %3893 = vmatpush1.bf16.msra.mxu0 %v5809_v28  ;;  %4262 = vmatpush1.bf16.msra.mxu1 %v5812_v29  ;;  %v4375_v28 = vcombine.low %v7538_v27, %v7538_v27  ;;  %v601_v29 = vlaneseq }
 0x204   :  { %3894 = vmatprep.subr.bf16.mxu0 %v5817_v24  ;;  %4263 = vmatprep.subr.bf16.mxu1 %v5820_v30 }
 0x205   :  { %3924 = vmatprep.mubr.bf16.mxu0 %v4376_v31  ;;  %4293 = vmatprep.mubr.bf16.mxu1 %v4376_v31  ;;  %v602_v24 = vshrl.u32 %v601_v29, 7 }
 0x207   :  { %3895 = vmatpush1.bf16.msra.mxu0 %v5815_v32  ;;  %4264 = vmatpush1.bf16.msra.mxu1 %v5818_v33  ;;  %v603_v30 = vsub.s32 0, %v602_v24  ;;  %v611_v31 = vsub.s32 2, %v602_v24  ;;  %v599_v32 = vld [vmem:[%s7741_s2] sm:$0xf]  ;;  %v607_v33 = vsub.s32 1, %v602_v24 }
 0x208   :  { %3896 = vmatprep.subr.bf16.mxu0 %v5823_v34  ;;  %4265 = vmatprep.subr.bf16.mxu1 %v5826_v35  ;;  %v615_v34 = vsub.s32 3, %v602_v24 }
 0x209   :  { %v604_v35 = vrot.slane %v599_v32, %v603_v30 }
 0x20b   :  { %3897 = vmatpush1.bf16.msra.mxu0 %v5821_v36  ;;  %4266 = vmatpush1.bf16.msra.mxu1 %v5824_v37  ;;  %v612_v36 = vrot.slane %v599_v32, %v611_v31  ;;  %v608_v37 = vrot.slane %v599_v32, %v607_v33 }
 0x20c   :  { %3898 = vmatprep.subr.bf16.mxu0 %v5829_v38  ;;  %4267 = vmatprep.subr.bf16.mxu1 %v5832_v39  ;;  %v616_v38 = vrot.slane %v599_v32, %v615_v34 }
 0x20f   :  { %3899 = vmatpush1.bf16.msra.mxu0 %v5827_v40  ;;  %4268 = vmatpush1.bf16.msra.mxu1 %v5830_v41 }
 0x210   :  { %3900 = vmatprep.subr.bf16.mxu0 %v5835_v42  ;;  %4269 = vmatprep.subr.bf16.mxu1 %v5838_v43 }
 0x213   :  { %3901 = vmatpush1.bf16.msra.mxu0 %v5833_v44  ;;  %4270 = vmatpush1.bf16.msra.mxu1 %v5836_v45 }
 0x214   :  { %3902 = vmatprep.subr.bf16.mxu0 %v5841_v46  ;;  %4271 = vmatprep.subr.bf16.mxu1 %v5844_v47 }
 0x217   :  { %3903 = vmatpush1.bf16.msra.mxu0 %v5839_v48  ;;  %4272 = vmatpush1.bf16.msra.mxu1 %v5842_v49 }
 0x218   :  { %3904 = vmatprep.subr.bf16.mxu0 %v5847_v50  ;;  %4273 = vmatprep.subr.bf16.mxu1 %v5850_v51 }
 0x21b   :  { %3905 = vmatpush1.bf16.msra.mxu0 %v5845_v52  ;;  %4274 = vmatpush1.bf16.msra.mxu1 %v5848_v53 }
 0x21c   :  { %3906 = vmatprep.subr.bf16.mxu0 %v5853_v54  ;;  %4275 = vmatprep.subr.bf16.mxu1 %v5856_v55 }
 0x21f   :  { %3907 = vmatpush1.bf16.msra.mxu0 %v5851_v56  ;;  %4276 = vmatpush1.bf16.msra.mxu1 %v5854_v57 }
 0x220   :  { %3908 = vmatprep.subr.bf16.mxu0 %v5859_v58  ;;  %4277 = vmatprep.subr.bf16.mxu1 %v5862_v59 }
 0x223   :  { %3909 = vmatpush1.bf16.msra.mxu0 %v5857_v60  ;;  %4278 = vmatpush1.bf16.msra.mxu1 %v5860_v61 }
 0x224   :  { %3910 = vmatprep.subr.bf16.mxu0 %v5865_v62  ;;  %4279 = vmatprep.subr.bf16.mxu1 %v5868_v63 }
 0x227   :  { %3911 = vmatpush1.bf16.msra.mxu0 %v5863_v0  ;;  %4280 = vmatpush1.bf16.msra.mxu1 %v5866_v1 }
 0x228   :  { %3912 = vmatprep.subr.bf16.mxu0 %v5871_v2  ;;  %4281 = vmatprep.subr.bf16.mxu1 %v5874_v3 }
 0x22b   :  { %3913 = vmatpush1.bf16.msra.mxu0 %v5869_v4  ;;  %4282 = vmatpush1.bf16.msra.mxu1 %v5872_v5 }
 0x22c   :  { %3914 = vmatprep.subr.bf16.mxu0 %v5877_v6  ;;  %4283 = vmatprep.subr.bf16.mxu1 %v5880_v7 }
 0x22f   :  { %3915 = vmatpush1.bf16.msra.mxu0 %v5875_v8  ;;  %4284 = vmatpush1.bf16.msra.mxu1 %v5878_v9 }
 0x230   :  { %3916 = vmatprep.subr.bf16.mxu0 %v5883_v10  ;;  %4285 = vmatprep.subr.bf16.mxu1 %v5886_v12 }
 0x233   :  { %3917 = vmatpush1.bf16.msra.mxu0 %v5881_v13  ;;  %4286 = vmatpush1.bf16.msra.mxu1 %v5884_v15 }
 0x234   :  { %3918 = vmatprep.subr.bf16.mxu0 %v5889_v11  ;;  %4287 = vmatprep.subr.bf16.mxu1 %v5892_v17 }
 0x237   :  { %3919 = vmatpush1.bf16.msra.mxu0 %v5887_v14  ;;  %4288 = vmatpush1.bf16.msra.mxu1 %v5890_v19 }
 0x238   :  { %3920 = vmatprep.subr.bf16.mxu0 %v5895_v20  ;;  %4289 = vmatprep.subr.bf16.mxu1 %v5898_v21 }
 0x23b   :  { %3921 = vmatpush1.bf16.msra.mxu0 %v5893_v22  ;;  %4290 = vmatpush1.bf16.msra.mxu1 %v5896_v23 }
 0x23c   :  { %3922 = vmatprep.subr.bf16.mxu0 %v5901_v18  ;;  %4291 = vmatprep.subr.bf16.mxu1 %v5904_v25 }
 0x23f   :  { %3923 = vmatpush1.bf16.msra.mxu0 %v5899_v26  ;;  %4292 = vmatpush1.bf16.msra.mxu1 %v5902_v16 }
 0x242   :  { %3925 = vmatmul.mubr.bf16.vlgmr.msra.gmra.mrb[0].mxu0 %v4375_v28  ;;  %4294 = vmatmul.mubr.bf16.vlgmr.msra.gmra.mrb[0].mxu1 %v4375_v28 }
 0x315   :  { %v3926_v39 = vpop.f32.mrb[0].mxu0  ;;  %v4295_v27 = vpop.f32.mrb[0].mxu1 }
 0x316   :  { %v4957_v40 = vadd.f32 %v3926_v39, %v604_v35  ;;  %v4959_v41 = vadd.f32 %v4295_v27, %v612_v36  ;;  %v3928_v42 = vpop.f32.mrb[1].mxu0  ;;  %v4297_v43 = vpop.f32.mrb[1].mxu1 }
 0x317   :  { %v4958_v44 = vadd.f32 %v3928_v42, %v608_v37  ;;  %v4960_v45 = vadd.f32 %v4297_v43, %v616_v38  ;;  %v3930_v46 = vpop.f32.mrb[2].mxu0  ;;  %v4299_v47 = vpop.f32.mrb[2].mxu1 }
 0x318   :  { %v4302_v48 = vmax.f32 %v4957_v40, 0.0  ;;  %v4304_v49 = vmax.f32 %v4959_v41, 0.0  ;;  %v3931_v50 = vpop.f32.mrb[3].mxu0  ;;  %v4300_v51 = vpop.f32.mrb[3].mxu1 }
 0x319   :  { %v4303_v52 = vmax.f32 %v4958_v44, 0.0  ;;  %v4305_v53 = vmax.f32 %v4960_v45, 0.0 }
 0x31b   :  { %v4955_v54 = vpack.c.bf16 %v4303_v52, %v4302_v48  ;;  %v4956_v55 = vpack.c.bf16 %v4305_v53, %v4304_v49 }
 0x31d   :  { %4353 = vst [vmem:[%s7742_s3] sm:$0xff] %v4955_v54  ;;  %4354 = vst [vmem:[%s7742_s3 + $0x8] sm:$0xff] %v4956_v55 }

</bundles_post_ra>
